<compile_context>
chip_gen: v7x
topology: tpu7x:2x2x1
jax: 0.10.0
libtpu: 0.0.40
codegen_flags: <defaults>
</compile_context>

<pallas_src>
import numpy as np
import jax
import jax.numpy as jnp
from jax.experimental import pallas as pl
from jax.experimental.pallas import tpu as pltpu


def _round_up(x, m):
    return (x + m - 1) // m * m


def _vmem_limit_bytes():
    """Scoped-VMEM request: physical capacity minus headroom, capped at 100 MiB."""
    try:
        cap = int(pltpu.get_tpu_info().vmem_capacity_bytes)
    except Exception:
        cap = 64 * 2**20                      # conservative fallback (v7x physical VMEM)
    # Leave headroom for Mosaic internal scratch / semaphores; never request the
    # full physical VMEM (v7x: 64 MiB total -> ~52 MiB; v5e/v6e: 128 MiB -> 100 MiB).
    return max(32 * 2**20, min(100 * 2**20, cap - 12 * 2**20))


def _pick_row_tile(H, W, Cin, Cout_p, budget_bytes):
    """Output-row tile height TH: TH | H, and TH*W lane-dense (multiple of 128)
    unless TH == H (then blocks span the full flattened spatial dim)."""
    def tile_bytes(th):
        m_t = th * W
        xt = (th + 2) * (W + 2) * Cin * 2          # bf16 halo'd input tile
        wt = 9 * Cin * Cout_p * 2                  # bf16 folded weights
        yt = m_t * Cout_p * 2                      # bf16 conv-out tile
        acc = m_t * Cout_p * 4                     # f32 accumulator
        ot = m_t * Cout_p * 4                      # f32 epilogue output tile
        return 2 * xt + 2 * wt + 2 * yt + acc + 2 * ot + (1 << 20)

    cands = [d for d in range(1, H + 1)
             if H % d == 0 and ((d * W) % 128 == 0 or d == H)]
    feas = [d for d in cands if tile_bytes(d) <= budget_bytes]
    target_rows = 1024                             # MXU/DMA-friendly GEMM row count
    if feas:
        return min(feas, key=lambda d: (abs(d * W - target_rows), -d))
    return min(cands, key=tile_bytes)              # smallest footprint fallback


def vgg_layer_forward(x_nchw, w_oihw, b, gamma, beta, eps=1e-5):
    """Forward pass of vgg_layer. x: (N, Cin, H, W) f32 -> (N, Cout, H, W) f32."""
    # TODO(synk): the conv bias is dropped because it cancels exactly under
    # training-mode BatchNorm (batch statistics); re-add it for eval-mode BN.
    del b
    N, Cin, H, W = x_nchw.shape
    Cout = w_oihw.shape[0]
    M = H * W
    Cout_p = _round_up(Cout, 128)                  # lane-dense output channels

    vmem_limit = _vmem_limit_bytes()
    TH = _pick_row_tile(H, W, Cin, Cout_p, int(0.85 * vmem_limit))
    num_m = H // TH
    M_t = TH * W                                   # GEMM rows per tile
    G = N * num_m                                  # conv grid steps (all parallel)

    # ---- wrapper prep: NHWC, SAME spatial pad, bf16; halo'd row-tile slab ----
    x_nhwc = jnp.transpose(x_nchw, (0, 2, 3, 1))
    xp = jnp.pad(x_nhwc, ((0, 0), (1, 1), (1, 1), (0, 0))).astype(jnp.bfloat16)
    if num_m == 1:
        xt = xp                                    # (N, H+2, W+2, Cin) -- no copy needed
    else:
        xt = jnp.stack([xp[:, m * TH: m * TH + TH + 2] for m in range(num_m)],
                       axis=1)
        xt = xt.reshape(G, TH + 2, W + 2, Cin)     # ~1.1x input bytes, one pass

    # (Cout, Cin, 3, 3) -> (tap, Cin, Cout) -> zero-pad output channels -> bf16
    w9 = jnp.transpose(w_oihw, (2, 3, 1, 0)).reshape(9, Cin, Cout)
    w9 = jnp.pad(w9, ((0, 0), (0, 0), (0, Cout_p - Cout))).astype(jnp.bfloat16)

    # ---------------- conv + per-tile BN partial statistics ----------------
    def conv_stats_kernel(xt_ref, w_ref, y_ref, sum_ref, sq_ref):
        # xt_ref : (TH+2, W+2, Cin) bf16  halo'd input rows (channels on lanes)
        # w_ref  : (9, Cin, Cout_p) bf16  folded 3x3 weights
        # y_ref  : (TH*W, Cout_p)   bf16  conv output tile
        # sum/sq : (1, Cout_p)      f32   per-tile channel partial statistics
        acc = jnp.zeros((M_t, Cout_p), jnp.float32)
        tap = 0
        for dh in range(3):
            for dw in range(3):
                patch = xt_ref[pl.ds(dh, TH), pl.ds(dw, W), :]      # (TH, W, Cin)
                acc = acc + jnp.dot(patch.reshape(M_t, Cin), w_ref[tap],
                                    preferred_element_type=jnp.float32)
                tap += 1
        y_ref[...] = acc.astype(y_ref.dtype)
        sum_ref[...] = jnp.sum(acc, axis=0, keepdims=True)
        sq_ref[...] = jnp.sum(acc * acc, axis=0, keepdims=True)

    y, sums, sqs = pl.pallas_call(
        conv_stats_kernel,
        out_shape=(
            jax.ShapeDtypeStruct((G, M_t, Cout_p), jnp.bfloat16),
            jax.ShapeDtypeStruct((G, 1, Cout_p), jnp.float32),
            jax.ShapeDtypeStruct((G, 1, Cout_p), jnp.float32),
        ),
        grid_spec=pltpu.PrefetchScalarGridSpec(
            num_scalar_prefetch=0,
            grid=(G,),
            in_specs=[
                pl.BlockSpec((None, TH + 2, W + 2, Cin), lambda g: (g, 0, 0, 0)),
                # constant block index -> fetched once, reused across all steps
                pl.BlockSpec((9, Cin, Cout_p), lambda g: (0, 0, 0)),
            ],
            out_specs=[
                pl.BlockSpec((None, M_t, Cout_p), lambda g: (g, 0, 0)),
                pl.BlockSpec((None, 1, Cout_p), lambda g: (g, 0, 0)),
                pl.BlockSpec((None, 1, Cout_p), lambda g: (g, 0, 0)),
            ],
        ),
        compiler_params=pltpu.CompilerParams(
            dimension_semantics=("parallel",),
            vmem_limit_bytes=vmem_limit),
    )(xt, w9)

    # ---- BatchNorm2d training statistics (biased variance over N*H*W) ----
    count = jnp.float32(N * H * W)
    mean = jnp.sum(sums, axis=(0, 1)) / count
    var = jnp.maximum(jnp.sum(sqs, axis=(0, 1)) / count - mean * mean, 0.0)
    inv_std = jax.lax.rsqrt(var + eps)
    gamma_p = jnp.pad(gamma.astype(jnp.float32), (0, Cout_p - Cout))
    beta_p = jnp.pad(beta.astype(jnp.float32), (0, Cout_p - Cout))
    scale = (gamma_p * inv_std).reshape(1, Cout_p)
    bias = (beta_p - mean * gamma_p * inv_std).reshape(1, Cout_p)

    # ---- BN affine + LeakyReLU epilogue, emitting NCHW layout directly ----
    def bn_lrelu_kernel(y_ref, scale_ref, bias_ref, o_ref):
        # y_ref: (M_t, Cout_p) bf16 ; scale/bias: (1, Cout_p) f32 ; o_ref: (Cout, M_t) f32
        z = y_ref[...].astype(jnp.float32) * scale_ref[...] + bias_ref[...]
        z = jnp.where(z > 0, z, 0.2 * z)
        zt = jnp.transpose(z, (1, 0))              # aligned (Cout_p, M_t) transpose (XLU)
        o_ref[...] = zt[:Cout, :]                  # drop padded channels at the store

    out_ncm = pl.pallas_call(
        bn_lrelu_kernel,
        out_shape=jax.ShapeDtypeStruct((N, Cout, M), jnp.float32),
        grid_spec=pltpu.PrefetchScalarGridSpec(
            num_scalar_prefetch=0,
            grid=(N, num_m),
            in_specs=[
                pl.BlockSpec((None, M_t, Cout_p),
                             lambda n, m: (n * num_m + m, 0, 0)),
                pl.BlockSpec((1, Cout_p), lambda n, m: (0, 0)),
                pl.BlockSpec((1, Cout_p), lambda n, m: (0, 0)),
            ],
            out_specs=pl.BlockSpec((None, Cout, M_t), lambda n, m: (n, 0, m)),
        ),
        compiler_params=pltpu.CompilerParams(
            dimension_semantics=("parallel", "parallel"),
            vmem_limit_bytes=vmem_limit),
    )(y, scale, bias)

    # (N, Cout, H*W) -> (N, Cout, H, W): pure metadata reshape, no HBM traffic.
    return out_ncm.reshape(N, Cout, H, W)


def vgg_layer_reference(x_nchw, w_oihw, b, gamma, beta, eps=1e-5):
    """Pure-JAX f32 reference (mirrors PyTorch semantics in training mode)."""
    y = jax.lax.conv_general_dilated(
        x_nchw, w_oihw, window_strides=(1, 1), padding=((1, 1), (1, 1)),
        dimension_numbers=("NCHW", "OIHW", "NCHW"))
    y = y + b[None, :, None, None]
    mean = jnp.mean(y, axis=(0, 2, 3), keepdims=True)
    var = jnp.mean((y - mean) ** 2, axis=(0, 2, 3), keepdims=True)
    z = (y - mean) / jnp.sqrt(var + eps)
    z = z * gamma[None, :, None, None] + beta[None, :, None, None]
    return jnp.where(z > 0, z, 0.2 * z)


if __name__ == "__main__":
    key = jax.random.PRNGKey(0)
    N, Cin, Cout, H, W = 2, 4, 8, 16, 16

    kx, kw, kb, kg, kbe = jax.random.split(key, 5)
    x = jax.random.normal(kx, (N, Cin, H, W), dtype=jnp.float32)
    w = 0.1 * jax.random.normal(kw, (Cout, Cin, 3, 3), dtype=jnp.float32)
    b = 0.05 * jax.random.normal(kb, (Cout,), dtype=jnp.float32)
    gamma = 1.0 + 0.1 * jax.random.normal(kg, (Cout,), dtype=jnp.float32)
    beta = 0.1 * jax.random.normal(kbe, (Cout,), dtype=jnp.float32)

    fwd = jax.jit(vgg_layer_forward)
    out = jax.block_until_ready(fwd(x, w, b, gamma, beta))
    assert out.shape == (N, Cout, H, W) and out.dtype == jnp.float32

    ref = vgg_layer_reference(x, w, b, gamma, beta)
    # bf16 MXU operands + bf16 conv intermediate (f32 accumulation/statistics)
    # -> tolerance relaxed accordingly.
    np.testing.assert_allclose(np.asarray(out), np.asarray(ref), rtol=2e-2, atol=2e-2)
    print("KERNEL_OK")
</pallas_src>

<mosaic_0001>
module attributes {stable_mosaic.version = 11 : i64} {
  func.func @bn_lrelu_kernel(%arg0: i32, %arg1: i32, %arg2: memref<1x256x128xbf16, #tpu.memory_space<vmem>>, %arg3: memref<1x128xf32, #tpu.memory_space<vmem>>, %arg4: memref<1x128xf32, #tpu.memory_space<vmem>>, %arg5: memref<1x8x256xf32, #tpu.memory_space<vmem>>) attributes {dimension_semantics = [#tpu.dimension_semantics<parallel>, #tpu.dimension_semantics<parallel>], iteration_bounds = array<i64: 2, 1>, scalar_prefetch = 0 : i64, scratch_operands = 0 : i64, tpu.core_type = #tpu.core_type<tc>, window_params = [{transform_indices = @transform_0, window_bounds = array<i64: 1, 256, 128>}, {pipeline_mode = #tpu.pipeline_mode<synchronous>, transform_indices = @transform_1, window_bounds = array<i64: 1, 128>}, {pipeline_mode = #tpu.pipeline_mode<synchronous>, transform_indices = @transform_2, window_bounds = array<i64: 1, 128>}, {transform_indices = @transform_3, window_bounds = array<i64: 1, 8, 256>}]} {
    %c0 = arith.constant 0 : index
    %c0_0 = arith.constant 0 : index
    %c0_1 = arith.constant 0 : index
    %0 = vector.load %arg2[%c0, %c0_0, %c0_1] : memref<1x256x128xbf16, #tpu.memory_space<vmem>>, vector<1x256x128xbf16>
    %1 = vector.shape_cast %0 : vector<1x256x128xbf16> to vector<256x128xbf16>
    %2 = arith.extf %1 : vector<256x128xbf16> to vector<256x128xf32>
    %c0_2 = arith.constant 0 : index
    %c0_3 = arith.constant 0 : index
    %3 = vector.load %arg3[%c0_2, %c0_3] : memref<1x128xf32, #tpu.memory_space<vmem>>, vector<1x128xf32>
    %4 = vector.broadcast %3 : vector<1x128xf32> to vector<256x128xf32>
    %5 = arith.mulf %2, %4 : vector<256x128xf32>
    %c0_4 = arith.constant 0 : index
    %c0_5 = arith.constant 0 : index
    %6 = vector.load %arg4[%c0_4, %c0_5] : memref<1x128xf32, #tpu.memory_space<vmem>>, vector<1x128xf32>
    %7 = vector.broadcast %6 : vector<1x128xf32> to vector<256x128xf32>
    %8 = arith.addf %5, %7 : vector<256x128xf32>
    %cst = arith.constant 0.000000e+00 : f32
    %9 = vector.broadcast %cst : f32 to vector<256x128xf32>
    %10 = arith.cmpf ogt, %8, %9 : vector<256x128xf32>
    %cst_6 = arith.constant 2.000000e-01 : f32
    %11 = vector.broadcast %cst_6 : f32 to vector<256x128xf32>
    %12 = arith.mulf %11, %8 : vector<256x128xf32>
    %13 = arith.select %10, %8, %12 : vector<256x128xi1>, vector<256x128xf32>
    %14 = tpu.transpose %13, [1, 0] : vector<256x128xf32> -> vector<128x256xf32>
    %15 = vector.extract_strided_slice %14 {offsets = [0, 0], sizes = [8, 256], strides = [1, 1]} : vector<128x256xf32> to vector<8x256xf32>
    %c0_7 = arith.constant 0 : index
    %c0_8 = arith.constant 0 : index
    %c0_9 = arith.constant 0 : index
    %16 = vector.load %arg5[%c0_7, %c0_8, %c0_9] : memref<1x8x256xf32, #tpu.memory_space<vmem>>, vector<1x8x256xf32>
    %17 = vector.shape_cast %16 : vector<1x8x256xf32> to vector<8x256xf32>
    %18 = vector.shape_cast %15 : vector<8x256xf32> to vector<1x8x256xf32>
    tpu.vector_store %arg5[%c0_7, %c0_8, %c0_9], %18 {strides = array<i32>} : memref<1x8x256xf32, #tpu.memory_space<vmem>>, vector<1x8x256xf32>,
    return
  }
  func.func @transform_0(%arg0: i32, %arg1: i32) -> (i32, i32, i32) {
    %c1_i32 = arith.constant 1 : i32
    %0 = arith.muli %arg0, %c1_i32 : i32
    %1 = arith.addi %0, %arg1 : i32
    %c0_i32 = arith.constant 0 : i32
    %c0_i32_0 = arith.constant 0 : i32
    %c0_i32_1 = arith.constant 0 : i32
    return %1, %c0_i32, %c0_i32_0 : i32, i32, i32
  }
  func.func @transform_1(%arg0: i32, %arg1: i32) -> (i32, i32) {
    %c0_i32 = arith.constant 0 : i32
    %c0_i32_0 = arith.constant 0 : i32
    %c0_i32_1 = arith.constant 0 : i32
    return %c0_i32, %c0_i32_0 : i32, i32
  }
  func.func @transform_2(%arg0: i32, %arg1: i32) -> (i32, i32) {
    %c0_i32 = arith.constant 0 : i32
    %c0_i32_0 = arith.constant 0 : i32
    %c0_i32_1 = arith.constant 0 : i32
    return %c0_i32, %c0_i32_0 : i32, i32
  }
  func.func @transform_3(%arg0: i32, %arg1: i32) -> (i32, i32, i32) {
    %c0_i32 = arith.constant 0 : i32
    %c0_i32_0 = arith.constant 0 : i32
    return %arg0, %c0_i32, %arg1 : i32, i32, i32
  }
}

module attributes {stable_mosaic.version = 11 : i64} {
  func.func @conv_stats_kernel(%arg0: i32, %arg1: memref<1x18x18x4xbf16, #tpu.memory_space<vmem>>, %arg2: memref<9x4x128xbf16, #tpu.memory_space<vmem>>, %arg3: memref<1x256x128xbf16, #tpu.memory_space<vmem>>, %arg4: memref<1x1x128xf32, #tpu.memory_space<vmem>>, %arg5: memref<1x1x128xf32, #tpu.memory_space<vmem>>) attributes {dimension_semantics = [#tpu.dimension_semantics<parallel>], iteration_bounds = array<i64: 2>, scalar_prefetch = 0 : i64, scratch_operands = 0 : i64, tpu.core_type = #tpu.core_type<tc>, window_params = [{transform_indices = @transform_0, window_bounds = array<i64: 1, 18, 18, 4>}, {pipeline_mode = #tpu.pipeline_mode<synchronous>, transform_indices = @transform_1, window_bounds = array<i64: 9, 4, 128>}, {transform_indices = @transform_2, window_bounds = array<i64: 1, 256, 128>}, {transform_indices = @transform_3, window_bounds = array<i64: 1, 1, 128>}, {transform_indices = @transform_4, window_bounds = array<i64: 1, 1, 128>}]} {
    %cst = arith.constant 0.000000e+00 : f32
    %0 = vector.broadcast %cst : f32 to vector<256x128xf32>
    %c0 = arith.constant 0 : index
    %c0_0 = arith.constant 0 : index
    %c0_1 = arith.constant 0 : index
    %c0_2 = arith.constant 0 : index
    %1 = vector.load %arg1[%c0, %c0_0, %c0_1, %c0_2] : memref<1x18x18x4xbf16, #tpu.memory_space<vmem>>, vector<1x16x16x4xbf16>
    %2 = vector.shape_cast %1 : vector<1x16x16x4xbf16> to vector<16x16x4xbf16>
    %3 = vector.shape_cast %2 : vector<16x16x4xbf16> to vector<256x4xbf16>
    %c0_3 = arith.constant 0 : index
    %c0_4 = arith.constant 0 : index
    %c0_5 = arith.constant 0 : index
    %4 = vector.load %arg2[%c0_3, %c0_4, %c0_5] : memref<9x4x128xbf16, #tpu.memory_space<vmem>>, vector<1x4x128xbf16>
    %5 = vector.shape_cast %4 : vector<1x4x128xbf16> to vector<4x128xbf16>
    %cst_6 = arith.constant dense<0.000000e+00> : vector<256x128xf32>
    %6 = tpu.matmul %3, %5, %cst_6 {dimension_numbers = #tpu.dot_dimension_numbers<[1], [0], [0], [1], [0, 0, 1, 1], [], []>} : vector<256x4xbf16>, vector<4x128xbf16>, vector<256x128xf32> -> vector<256x128xf32>
    %7 = arith.addf %0, %6 : vector<256x128xf32>
    %c0_7 = arith.constant 0 : index
    %c0_8 = arith.constant 0 : index
    %c1 = arith.constant 1 : index
    %c0_9 = arith.constant 0 : index
    %8 = vector.load %arg1[%c0_7, %c0_8, %c1, %c0_9] : memref<1x18x18x4xbf16, #tpu.memory_space<vmem>>, vector<1x16x16x4xbf16>
    %9 = vector.shape_cast %8 : vector<1x16x16x4xbf16> to vector<16x16x4xbf16>
    %10 = vector.shape_cast %9 : vector<16x16x4xbf16> to vector<256x4xbf16>
    %c1_10 = arith.constant 1 : index
    %c0_11 = arith.constant 0 : index
    %c0_12 = arith.constant 0 : index
    %11 = vector.load %arg2[%c1_10, %c0_11, %c0_12] : memref<9x4x128xbf16, #tpu.memory_space<vmem>>, vector<1x4x128xbf16>
    %12 = vector.shape_cast %11 : vector<1x4x128xbf16> to vector<4x128xbf16>
    %cst_13 = arith.constant dense<0.000000e+00> : vector<256x128xf32>
    %13 = tpu.matmul %10, %12, %cst_13 {dimension_numbers = #tpu.dot_dimension_numbers<[1], [0], [0], [1], [0, 0, 1, 1], [], []>} : vector<256x4xbf16>, vector<4x128xbf16>, vector<256x128xf32> -> vector<256x128xf32>
    %14 = arith.addf %7, %13 : vector<256x128xf32>
    %c0_14 = arith.constant 0 : index
    %c0_15 = arith.constant 0 : index
    %c2 = arith.constant 2 : index
    %c0_16 = arith.constant 0 : index
    %15 = vector.load %arg1[%c0_14, %c0_15, %c2, %c0_16] : memref<1x18x18x4xbf16, #tpu.memory_space<vmem>>, vector<1x16x16x4xbf16>
    %16 = vector.shape_cast %15 : vector<1x16x16x4xbf16> to vector<16x16x4xbf16>
    %17 = vector.shape_cast %16 : vector<16x16x4xbf16> to vector<256x4xbf16>
    %c2_17 = arith.constant 2 : index
    %c0_18 = arith.constant 0 : index
    %c0_19 = arith.constant 0 : index
    %18 = vector.load %arg2[%c2_17, %c0_18, %c0_19] : memref<9x4x128xbf16, #tpu.memory_space<vmem>>, vector<1x4x128xbf16>
    %19 = vector.shape_cast %18 : vector<1x4x128xbf16> to vector<4x128xbf16>
    %cst_20 = arith.constant dense<0.000000e+00> : vector<256x128xf32>
    %20 = tpu.matmul %17, %19, %cst_20 {dimension_numbers = #tpu.dot_dimension_numbers<[1], [0], [0], [1], [0, 0, 1, 1], [], []>} : vector<256x4xbf16>, vector<4x128xbf16>, vector<256x128xf32> -> vector<256x128xf32>
    %21 = arith.addf %14, %20 : vector<256x128xf32>
    %c0_21 = arith.constant 0 : index
    %c1_22 = arith.constant 1 : index
    %c0_23 = arith.constant 0 : index
    %c0_24 = arith.constant 0 : index
    %22 = vector.load %arg1[%c0_21, %c1_22, %c0_23, %c0_24] : memref<1x18x18x4xbf16, #tpu.memory_space<vmem>>, vector<1x16x16x4xbf16>
    %23 = vector.shape_cast %22 : vector<1x16x16x4xbf16> to vector<16x16x4xbf16>
    %24 = vector.shape_cast %23 : vector<16x16x4xbf16> to vector<256x4xbf16>
    %c3 = arith.constant 3 : index
    %c0_25 = arith.constant 0 : index
    %c0_26 = arith.constant 0 : index
    %25 = vector.load %arg2[%c3, %c0_25, %c0_26] : memref<9x4x128xbf16, #tpu.memory_space<vmem>>, vector<1x4x128xbf16>
    %26 = vector.shape_cast %25 : vector<1x4x128xbf16> to vector<4x128xbf16>
    %cst_27 = arith.constant dense<0.000000e+00> : vector<256x128xf32>
    %27 = tpu.matmul %24, %26, %cst_27 {dimension_numbers = #tpu.dot_dimension_numbers<[1], [0], [0], [1], [0, 0, 1, 1], [], []>} : vector<256x4xbf16>, vector<4x128xbf16>, vector<256x128xf32> -> vector<256x128xf32>
    %28 = arith.addf %21, %27 : vector<256x128xf32>
    %c0_28 = arith.constant 0 : index
    %c1_29 = arith.constant 1 : index
    %c1_30 = arith.constant 1 : index
    %c0_31 = arith.constant 0 : index
    %29 = vector.load %arg1[%c0_28, %c1_29, %c1_30, %c0_31] : memref<1x18x18x4xbf16, #tpu.memory_space<vmem>>, vector<1x16x16x4xbf16>
    %30 = vector.shape_cast %29 : vector<1x16x16x4xbf16> to vector<16x16x4xbf16>
    %31 = vector.shape_cast %30 : vector<16x16x4xbf16> to vector<256x4xbf16>
    %c4 = arith.constant 4 : index
    %c0_32 = arith.constant 0 : index
    %c0_33 = arith.constant 0 : index
    %32 = vector.load %arg2[%c4, %c0_32, %c0_33] : memref<9x4x128xbf16, #tpu.memory_space<vmem>>, vector<1x4x128xbf16>
    %33 = vector.shape_cast %32 : vector<1x4x128xbf16> to vector<4x128xbf16>
    %cst_34 = arith.constant dense<0.000000e+00> : vector<256x128xf32>
    %34 = tpu.matmul %31, %33, %cst_34 {dimension_numbers = #tpu.dot_dimension_numbers<[1], [0], [0], [1], [0, 0, 1, 1], [], []>} : vector<256x4xbf16>, vector<4x128xbf16>, vector<256x128xf32> -> vector<256x128xf32>
    %35 = arith.addf %28, %34 : vector<256x128xf32>
    %c0_35 = arith.constant 0 : index
    %c1_36 = arith.constant 1 : index
    %c2_37 = arith.constant 2 : index
    %c0_38 = arith.constant 0 : index
    %36 = vector.load %arg1[%c0_35, %c1_36, %c2_37, %c0_38] : memref<1x18x18x4xbf16, #tpu.memory_space<vmem>>, vector<1x16x16x4xbf16>
    %37 = vector.shape_cast %36 : vector<1x16x16x4xbf16> to vector<16x16x4xbf16>
    %38 = vector.shape_cast %37 : vector<16x16x4xbf16> to vector<256x4xbf16>
    %c5 = arith.constant 5 : index
    %c0_39 = arith.constant 0 : index
    %c0_40 = arith.constant 0 : index
    %39 = vector.load %arg2[%c5, %c0_39, %c0_40] : memref<9x4x128xbf16, #tpu.memory_space<vmem>>, vector<1x4x128xbf16>
    %40 = vector.shape_cast %39 : vector<1x4x128xbf16> to vector<4x128xbf16>
    %cst_41 = arith.constant dense<0.000000e+00> : vector<256x128xf32>
    %41 = tpu.matmul %38, %40, %cst_41 {dimension_numbers = #tpu.dot_dimension_numbers<[1], [0], [0], [1], [0, 0, 1, 1], [], []>} : vector<256x4xbf16>, vector<4x128xbf16>, vector<256x128xf32> -> vector<256x128xf32>
    %42 = arith.addf %35, %41 : vector<256x128xf32>
    %c0_42 = arith.constant 0 : index
    %c2_43 = arith.constant 2 : index
    %c0_44 = arith.constant 0 : index
    %c0_45 = arith.constant 0 : index
    %43 = vector.load %arg1[%c0_42, %c2_43, %c0_44, %c0_45] : memref<1x18x18x4xbf16, #tpu.memory_space<vmem>>, vector<1x16x16x4xbf16>
    %44 = vector.shape_cast %43 : vector<1x16x16x4xbf16> to vector<16x16x4xbf16>
    %45 = vector.shape_cast %44 : vector<16x16x4xbf16> to vector<256x4xbf16>
    %c6 = arith.constant 6 : index
    %c0_46 = arith.constant 0 : index
    %c0_47 = arith.constant 0 : index
    %46 = vector.load %arg2[%c6, %c0_46, %c0_47] : memref<9x4x128xbf16, #tpu.memory_space<vmem>>, vector<1x4x128xbf16>
    %47 = vector.shape_cast %46 : vector<1x4x128xbf16> to vector<4x128xbf16>
    %cst_48 = arith.constant dense<0.000000e+00> : vector<256x128xf32>
    %48 = tpu.matmul %45, %47, %cst_48 {dimension_numbers = #tpu.dot_dimension_numbers<[1], [0], [0], [1], [0, 0, 1, 1], [], []>} : vector<256x4xbf16>, vector<4x128xbf16>, vector<256x128xf32> -> vector<256x128xf32>
    %49 = arith.addf %42, %48 : vector<256x128xf32>
    %c0_49 = arith.constant 0 : index
    %c2_50 = arith.constant 2 : index
    %c1_51 = arith.constant 1 : index
    %c0_52 = arith.constant 0 : index
    %50 = vector.load %arg1[%c0_49, %c2_50, %c1_51, %c0_52] : memref<1x18x18x4xbf16, #tpu.memory_space<vmem>>, vector<1x16x16x4xbf16>
    %51 = vector.shape_cast %50 : vector<1x16x16x4xbf16> to vector<16x16x4xbf16>
    %52 = vector.shape_cast %51 : vector<16x16x4xbf16> to vector<256x4xbf16>
    %c7 = arith.constant 7 : index
    %c0_53 = arith.constant 0 : index
    %c0_54 = arith.constant 0 : index
    %53 = vector.load %arg2[%c7, %c0_53, %c0_54] : memref<9x4x128xbf16, #tpu.memory_space<vmem>>, vector<1x4x128xbf16>
    %54 = vector.shape_cast %53 : vector<1x4x128xbf16> to vector<4x128xbf16>
    %cst_55 = arith.constant dense<0.000000e+00> : vector<256x128xf32>
    %55 = tpu.matmul %52, %54, %cst_55 {dimension_numbers = #tpu.dot_dimension_numbers<[1], [0], [0], [1], [0, 0, 1, 1], [], []>} : vector<256x4xbf16>, vector<4x128xbf16>, vector<256x128xf32> -> vector<256x128xf32>
    %56 = arith.addf %49, %55 : vector<256x128xf32>
    %c0_56 = arith.constant 0 : index
    %c2_57 = arith.constant 2 : index
    %c2_58 = arith.constant 2 : index
    %c0_59 = arith.constant 0 : index
    %57 = vector.load %arg1[%c0_56, %c2_57, %c2_58, %c0_59] : memref<1x18x18x4xbf16, #tpu.memory_space<vmem>>, vector<1x16x16x4xbf16>
    %58 = vector.shape_cast %57 : vector<1x16x16x4xbf16> to vector<16x16x4xbf16>
    %59 = vector.shape_cast %58 : vector<16x16x4xbf16> to vector<256x4xbf16>
    %c8 = arith.constant 8 : index
    %c0_60 = arith.constant 0 : index
    %c0_61 = arith.constant 0 : index
    %60 = vector.load %arg2[%c8, %c0_60, %c0_61] : memref<9x4x128xbf16, #tpu.memory_space<vmem>>, vector<1x4x128xbf16>
    %61 = vector.shape_cast %60 : vector<1x4x128xbf16> to vector<4x128xbf16>
    %cst_62 = arith.constant dense<0.000000e+00> : vector<256x128xf32>
    %62 = tpu.matmul %59, %61, %cst_62 {dimension_numbers = #tpu.dot_dimension_numbers<[1], [0], [0], [1], [0, 0, 1, 1], [], []>} : vector<256x4xbf16>, vector<4x128xbf16>, vector<256x128xf32> -> vector<256x128xf32>
    %63 = arith.addf %56, %62 : vector<256x128xf32>
    %64 = arith.truncf %63 : vector<256x128xf32> to vector<256x128xbf16>
    %c0_63 = arith.constant 0 : index
    %c0_64 = arith.constant 0 : index
    %c0_65 = arith.constant 0 : index
    %65 = vector.load %arg3[%c0_63, %c0_64, %c0_65] : memref<1x256x128xbf16, #tpu.memory_space<vmem>>, vector<1x256x128xbf16>
    %66 = vector.shape_cast %65 : vector<1x256x128xbf16> to vector<256x128xbf16>
    %67 = vector.shape_cast %64 : vector<256x128xbf16> to vector<1x256x128xbf16>
    tpu.vector_store %arg3[%c0_63, %c0_64, %c0_65], %67 {strides = array<i32>} : memref<1x256x128xbf16, #tpu.memory_space<vmem>>, vector<1x256x128xbf16>,
    %cst_66 = arith.constant dense<0.000000e+00> : vector<128xf32>
    %68 = vector.multi_reduction <add>, %63, %cst_66 [0] : vector<256x128xf32> to vector<128xf32>
    %69 = vector.shape_cast %68 : vector<128xf32> to vector<1x128xf32>
    %c0_67 = arith.constant 0 : index
    %c0_68 = arith.constant 0 : index
    %c0_69 = arith.constant 0 : index
    %70 = vector.load %arg4[%c0_67, %c0_68, %c0_69] : memref<1x1x128xf32, #tpu.memory_space<vmem>>, vector<1x1x128xf32>
    %71 = vector.shape_cast %70 : vector<1x1x128xf32> to vector<1x128xf32>
    %72 = vector.shape_cast %69 : vector<1x128xf32> to vector<1x1x128xf32>
    tpu.vector_store %arg4[%c0_67, %c0_68, %c0_69], %72 {strides = array<i32>} : memref<1x1x128xf32, #tpu.memory_space<vmem>>, vector<1x1x128xf32>,
    %73 = arith.mulf %63, %63 : vector<256x128xf32>
    %cst_70 = arith.constant dense<0.000000e+00> : vector<128xf32>
    %74 = vector.multi_reduction <add>, %73, %cst_70 [0] : vector<256x128xf32> to vector<128xf32>
    %75 = vector.shape_cast %74 : vector<128xf32> to vector<1x128xf32>
    %c0_71 = arith.constant 0 : index
    %c0_72 = arith.constant 0 : index
    %c0_73 = arith.constant 0 : index
    %76 = vector.load %arg5[%c0_71, %c0_72, %c0_73] : memref<1x1x128xf32, #tpu.memory_space<vmem>>, vector<1x1x128xf32>
    %77 = vector.shape_cast %76 : vector<1x1x128xf32> to vector<1x128xf32>
    %78 = vector.shape_cast %75 : vector<1x128xf32> to vector<1x1x128xf32>
    tpu.vector_store %arg5[%c0_71, %c0_72, %c0_73], %78 {strides = array<i32>} : memref<1x1x128xf32, #tpu.memory_space<vmem>>, vector<1x1x128xf32>,
    return
  }
  func.func @transform_0(%arg0: i32) -> (i32, i32, i32, i32) {
    %c0_i32 = arith.constant 0 : i32
    %c0_i32_0 = arith.constant 0 : i32
    %c0_i32_1 = arith.constant 0 : i32
    %c0_i32_2 = arith.constant 0 : i32
    return %arg0, %c0_i32, %c0_i32_0, %c0_i32_1 : i32, i32, i32, i32
  }
  func.func @transform_1(%arg0: i32) -> (i32, i32, i32) {
    %c0_i32 = arith.constant 0 : i32
    %c0_i32_0 = arith.constant 0 : i32
    %c0_i32_1 = arith.constant 0 : i32
    %c0_i32_2 = arith.constant 0 : i32
    return %c0_i32, %c0_i32_0, %c0_i32_1 : i32, i32, i32
  }
  func.func @transform_2(%arg0: i32) -> (i32, i32, i32) {
    %c0_i32 = arith.constant 0 : i32
    %c0_i32_0 = arith.constant 0 : i32
    %c0_i32_1 = arith.constant 0 : i32
    return %arg0, %c0_i32, %c0_i32_0 : i32, i32, i32
  }
  func.func @transform_3(%arg0: i32) -> (i32, i32, i32) {
    %c0_i32 = arith.constant 0 : i32
    %c0_i32_0 = arith.constant 0 : i32
    %c0_i32_1 = arith.constant 0 : i32
    return %arg0, %c0_i32, %c0_i32_0 : i32, i32, i32
  }
  func.func @transform_4(%arg0: i32) -> (i32, i32, i32) {
    %c0_i32 = arith.constant 0 : i32
    %c0_i32_0 = arith.constant 0 : i32
    %c0_i32_1 = arith.constant 0 : i32
    return %arg0, %c0_i32, %c0_i32_0 : i32, i32, i32
  }
}

</mosaic_0001>

<bundles_post_ra>
// kernel: vgg_layer_forward.3
= control target key start
LH: loop header
LB: loop body
LE: loop exit
PB: predicated region body
PF: predicated region fallthrough
CT: control target
= control target key end

     0   :  { %s748_s12 = smov 0   ;;  %s750_s13 = smov 0   ;;  %s881_s0 = inlined_call_operand.vmem [shape: bf16[2,256,128], index: 0, kind: input, shape index: {}]   ;;  %s882_s1 = inlined_call_operand.vmem [shape: f32[1,128], index: 1, kind: input, shape index: {}]   ;;  %s883_s2 = inlined_call_operand.vmem [shape: f32[1,128], index: 2, kind: input, shape index: {}]   ;;  %s884_s3 = inlined_call_operand.vmem [shape: f32[2,8,256], index: 3, kind: output, shape index: {}]  }
   0x1   :  { %s752_s14 = smov 0  }
   0x2 LB: > { %s25_s15 = sadd.s32 1, %s722_s13  ;;  %p590_p0 = scmp.ge.s32.totalorder %s726_s14, 1  ;;  %s726_s14 = sphi %s752_s14, %s13_s14   ;;  %s722_s13 = sphi %s750_s13, %s886_s13   ;;  %s718_s12 = sphi %s748_s12, %s885_s12  }
   0x3   : > { %p27_p1 = scmp.ge.s32.totalorder %s25_s15, 2  ;;  %p155_p2 = scmp.lt.s32.totalorder %s726_s14, 3 }
   0x5   : > { %s888_s15 = smov (%p27_p1, %s25_s15), 0  ;;  %p156_p3 = pnand %p590_p0, %p155_p2 }
   0x6   : > { %p185_p4 = scmp.lt.s32.totalorder (!%p156_p3), %s718_s12, 1  ;;  %v777_v0 = vld [vmem:[%s882_s1] ss:$0 sm:$0xff] (!%p156_p3) }
   0x7   : > { %159 = sbr.rel (%p156_p3) target bundleno = 158 (0x9e), region = 32  ;;  %v786_v9 = vld [vmem:[%s883_s2] ss:$0 sm:$0xff] (!%p156_p3) }
   0xe   : > { %s890_s12 = smov (!%p185_p4, %s718_s12), 1 }
   0xf   : > { %s599_s16 = sshll.u32 %s890_s12, 7  ;;  %s600_s24 = sshll.u32 %s890_s12, 4 }
  0x10   : > { %s772_s19 = scalar_lea.vmem %s881_s0, %s599_s16  ;;  %s199_s27 = scalar_lea.vmem %s884_s3, %s600_s24 }
  0x11   : > { %v672_v1 = vld [vmem:[%s772_s19 + $0x40] sm:$0xff]   ;;  %v673_v3 = vld [vmem:[%s772_s19 + $0x48] sm:$0xff]   ;;  %v674_v36 = vld [vmem:[%s772_s19 + $0x50] sm:$0xff]  }
  0x12   : > { %v602_v2 = vld [vmem:[%s772_s19] sm:$0xff]   ;;  %v635_v4 = vunpack.c.l.bf16 %v672_v1  ;;  %v636_v6 = vunpack.c.h.bf16 %v672_v1  ;;  %v665_v8 = vld [vmem:[%s772_s19 + $0x8] sm:$0xff]   ;;  %v639_v10 = vunpack.c.l.bf16 %v673_v3  ;;  %v640_v12 = vunpack.c.h.bf16 %v673_v3  ;;  %v666_v37 = vld [vmem:[%s772_s19 + $0x10] sm:$0xff]  }
  0x13   : > { %v603_v5 = vunpack.c.l.bf16 %v602_v2  ;;  %v604_v7 = vunpack.c.h.bf16 %v602_v2  ;;  %v607_v11 = vunpack.c.l.bf16 %v665_v8  ;;  %v608_v13 = vunpack.c.h.bf16 %v665_v8  ;;  %v675_v39 = vld [vmem:[%s772_s19 + $0x58] sm:$0xff]   ;;  %v668_v8 = vld [vmem:[%s772_s19 + $0x20] sm:$0xff]  }
  0x14   : > { %v288_v14 = vmul.f32 %v635_v4, %v777_v0  ;;  %v289_v16 = vmul.f32 %v636_v6, %v777_v0  ;;  %v290_v18 = vmul.f32 %v639_v10, %v777_v0  ;;  %v291_v20 = vmul.f32 %v640_v12, %v777_v0  ;;  %v667_v43 = vld [vmem:[%s772_s19 + $0x18] sm:$0xff]  }
  0x15   : > { %v272_v15 = vmul.f32 %v603_v5, %v777_v0  ;;  %v273_v17 = vmul.f32 %v604_v7, %v777_v0  ;;  %v274_v19 = vmul.f32 %v607_v11, %v777_v0  ;;  %v275_v28 = vmul.f32 %v608_v13, %v777_v0  ;;  %v676_v7 = vld [vmem:[%s772_s19 + $0x60] sm:$0xff]  }
  0x16   : > { %v327_v21 = vadd.f32 %v786_v9, %v288_v14  ;;  %v328_v23 = vadd.f32 %v786_v9, %v289_v16  ;;  %v329_v25 = vadd.f32 %v786_v9, %v290_v18  ;;  %v330_v27 = vadd.f32 %v786_v9, %v291_v20 }
  0x17   : > { %v311_v22 = vadd.f32 %v786_v9, %v272_v15  ;;  %v312_v24 = vadd.f32 %v786_v9, %v273_v17  ;;  %v313_v26 = vadd.f32 %v786_v9, %v274_v19  ;;  %v314_v38 = vadd.f32 %v786_v9, %v275_v28 }
  0x18   : > { %vm359_vm0 = vcmp.gt.f32.partialorder %v327_v21, 0.0  ;;  %v391_v29 = vmul.f32 0.2, %v327_v21  ;;  %vm360_vm2 = vcmp.gt.f32.partialorder %v328_v23, 0.0  ;;  %v392_v31 = vmul.f32 0.2, %v328_v23 }
  0x19   : > { %vm343_vm1 = vcmp.gt.f32.partialorder %v311_v22, 0.0  ;;  %v375_v30 = vmul.f32 0.2, %v311_v22  ;;  %vm344_vm3 = vcmp.gt.f32.partialorder %v312_v24, 0.0  ;;  %v376_v32 = vmul.f32 0.2, %v312_v24 }
  0x1a   : > { %v423_v33 = vsel %vm359_vm0, %v327_v21, %v391_v29  ;;  %vm361_vm4 = vcmp.gt.f32.partialorder %v329_v25, 0.0  ;;  %v393_v35 = vmul.f32 0.2, %v329_v25  ;;  %v424_v40 = vsel %vm360_vm2, %v328_v23, %v392_v31  ;;  %v669_v31 = vld [vmem:[%s772_s19 + $0x28] sm:$0xff]  }
  0x1b   : > { %v407_v34 = vsel %vm343_vm1, %v311_v22, %v375_v30  ;;  %471 = vxpose.xlu1.b32.start [1/16] (narrow) %v423_v33, 8  ;;  %v408_v41 = vsel %vm344_vm3, %v312_v24, %v376_v32  ;;  %vm345_vm5 = vcmp.gt.f32.partialorder %v313_v26, 0.0  ;;  %v377_v42 = vmul.f32 0.2, %v313_v26 }
  0x1c   : > { %439 = vxpose.xlu0.b32.start [1/16] (narrow) %v407_v34, 8  ;;  %v425_v44 = vsel %vm361_vm4, %v329_v25, %v393_v35  ;;  %vm362_vm6 = vcmp.gt.f32.partialorder %v330_v27, 0.0  ;;  %v643_v45 = vunpack.c.l.bf16 %v674_v36  ;;  %v611_v46 = vunpack.c.l.bf16 %v666_v37 }
  0x1d   : > { %v394_v47 = vmul.f32 0.2, %v330_v27  ;;  %v644_v48 = vunpack.c.h.bf16 %v674_v36  ;;  %v612_v49 = vunpack.c.h.bf16 %v666_v37  ;;  %v647_v50 = vunpack.c.l.bf16 %v675_v39 }
  0x1e   : > { %v378_v51 = vmul.f32 0.2, %v314_v38  ;;  %v292_v52 = vmul.f32 %v643_v45, %v777_v0  ;;  %v276_v53 = vmul.f32 %v611_v46, %v777_v0  ;;  %v615_v54 = vunpack.c.l.bf16 %v667_v43 }
  0x1f   : > { %472 = vxpose.xlu1.b32.cont [2/16] (narrow) %v424_v40, 8  ;;  %v409_v55 = vsel %vm345_vm5, %v313_v26, %v377_v42  ;;  %vm346_vm7 = vcmp.gt.f32.partialorder %v314_v38, 0.0  ;;  %v293_v56 = vmul.f32 %v644_v48, %v777_v0  ;;  %v277_v57 = vmul.f32 %v612_v49, %v777_v0  ;;  %v677_v26 = vld [vmem:[%s772_s19 + $0x68] sm:$0xff]   ;;  %v678_v48 = vld [vmem:[%s772_s19 + $0x70] sm:$0xff]  }
  0x20   : > { %440 = vxpose.xlu0.b32.cont [2/16] (narrow) %v408_v41, 8  ;;  %v331_v58 = vadd.f32 %v786_v9, %v292_v52  ;;  %v315_v59 = vadd.f32 %v786_v9, %v276_v53  ;;  %v294_v61 = vmul.f32 %v647_v50, %v777_v0  ;;  %v648_v62 = vunpack.c.h.bf16 %v675_v39  ;;  %v670_v53 = vld [vmem:[%s772_s19 + $0x30] sm:$0xff]  }
  0x21   : > { %v332_v60 = vadd.f32 %v786_v9, %v293_v56  ;;  %v426_v63 = vsel %vm362_vm6, %v330_v27, %v394_v47  ;;  %v410_v1 = vsel %vm346_vm7, %v314_v38, %v378_v51  ;;  %v278_v3 = vmul.f32 %v615_v54, %v777_v0 }
  0x22   : > { %v395_v2 = vmul.f32 0.2, %v331_v58  ;;  %vm363_vm8 = vcmp.gt.f32.partialorder %v331_v58, 0.0  ;;  %v379_v4 = vmul.f32 0.2, %v315_v59  ;;  %v316_v5 = vadd.f32 %v786_v9, %v277_v57 }
  0x23   : > { %473 = vxpose.xlu1.b32.cont [3/16] (narrow) %v425_v44, 8  ;;  %v616_v6 = vunpack.c.h.bf16 %v667_v43  ;;  %vm347_vm9 = vcmp.gt.f32.partialorder %v315_v59, 0.0  ;;  %v396_v10 = vmul.f32 0.2, %v332_v60  ;;  %v333_v11 = vadd.f32 %v786_v9, %v294_v61 }
  0x24   : > { %441 = vxpose.xlu0.b32.cont [3/16] (narrow) %v409_v55, 8  ;;  %v295_v12 = vmul.f32 %v648_v62, %v777_v0  ;;  %v427_v13 = vsel %vm363_vm8, %v331_v58, %v395_v2  ;;  %vm364_vm10 = vcmp.gt.f32.partialorder %v332_v60, 0.0  ;;  %v317_v14 = vadd.f32 %v786_v9, %v278_v3 }
  0x25   : > { %v651_v15 = vunpack.c.l.bf16 %v676_v7  ;;  %v411_v16 = vsel %vm347_vm9, %v315_v59, %v379_v4  ;;  %v380_v17 = vmul.f32 0.2, %v316_v5  ;;  %v279_v18 = vmul.f32 %v616_v6, %v777_v0 }
  0x26   : > { %v619_v19 = vunpack.c.l.bf16 %v668_v8  ;;  %vm348_vm11 = vcmp.gt.f32.partialorder %v316_v5, 0.0  ;;  %v428_v20 = vsel %vm364_vm10, %v332_v60, %v396_v10  ;;  %vm365_vm12 = vcmp.gt.f32.partialorder %v333_v11, 0.0 }
  0x27   : > { %474 = vxpose.xlu1.b32.cont [4/16] (narrow) %v426_v63, 8  ;;  %v397_v21 = vmul.f32 0.2, %v333_v11  ;;  %v334_v22 = vadd.f32 %v786_v9, %v295_v12  ;;  %vm349_vm13 = vcmp.gt.f32.partialorder %v317_v14, 0.0  ;;  %v381_v23 = vmul.f32 0.2, %v317_v14 }
  0x28   : > { %442 = vxpose.xlu0.b32.cont [4/16] (narrow) %v410_v1, 8  ;;  %v296_v24 = vmul.f32 %v651_v15, %v777_v0  ;;  %v652_v25 = vunpack.c.h.bf16 %v676_v7  ;;  %v412_v27 = vsel %vm348_vm11, %v316_v5, %v380_v17  ;;  %v318_v28 = vadd.f32 %v786_v9, %v279_v18  ;;  %v679_v12 = vld [vmem:[%s772_s19 + $0x78] sm:$0xff]  }
  0x29   : > { %v280_v29 = vmul.f32 %v619_v19, %v777_v0  ;;  %v620_v30 = vunpack.c.h.bf16 %v668_v8  ;;  %v429_v32 = vsel %vm365_vm12, %v333_v11, %v397_v21  ;;  %v398_v33 = vmul.f32 0.2, %v334_v22 }
  0x2a   : > { %v655_v34 = vunpack.c.l.bf16 %v677_v26  ;;  %v413_v35 = vsel %vm349_vm13, %v317_v14, %v381_v23  ;;  %vm366_vm14 = vcmp.gt.f32.partialorder %v334_v22, 0.0  ;;  %v335_v36 = vadd.f32 %v786_v9, %v296_v24 }
  0x2b   : > { %475 = vxpose.xlu1.b32.cont [5/16] (narrow) %v427_v13, 8  ;;  %v297_v37 = vmul.f32 %v652_v25, %v777_v0  ;;  %v382_v38 = vmul.f32 0.2, %v318_v28  ;;  %v319_v39 = vadd.f32 %v786_v9, %v280_v29  ;;  %v281_v40 = vmul.f32 %v620_v30, %v777_v0  ;;  %v671_v13 = vld [vmem:[%s772_s19 + $0x38] sm:$0xff]  }
  0x2c   : > { %443 = vxpose.xlu0.b32.cont [5/16] (narrow) %v411_v16, 8  ;;  %v623_v41 = vunpack.c.l.bf16 %v669_v31  ;;  %vm350_vm15 = vcmp.gt.f32.partialorder %v318_v28, 0.0  ;;  %v430_v42 = vsel %vm366_vm14, %v334_v22, %v398_v33  ;;  %v298_v43 = vmul.f32 %v655_v34, %v777_v0 }
  0x2d   : > { %v656_v44 = vunpack.c.h.bf16 %v677_v26  ;;  %vm367_vm0 = vcmp.gt.f32.partialorder %v335_v36, 0.0  ;;  %v399_v45 = vmul.f32 0.2, %v335_v36  ;;  %v336_v46 = vadd.f32 %v786_v9, %v297_v37 }
  0x2e   : > { %v624_v47 = vunpack.c.h.bf16 %v669_v31  ;;  %v414_v49 = vsel %vm350_vm15, %v318_v28, %v382_v38  ;;  %v383_v50 = vmul.f32 0.2, %v319_v39  ;;  %v320_v51 = vadd.f32 %v786_v9, %v281_v40 }
  0x2f   : > { %476 = vxpose.xlu1.b32.cont [6/16] (narrow) %v428_v20, 8  ;;  %v282_v52 = vmul.f32 %v623_v41, %v777_v0  ;;  %vm351_vm1 = vcmp.gt.f32.partialorder %v319_v39, 0.0  ;;  %v337_v54 = vadd.f32 %v786_v9, %v298_v43  ;;  %v299_v55 = vmul.f32 %v656_v44, %v777_v0 }
  0x30   : > { %444 = vxpose.xlu0.b32.cont [6/16] (narrow) %v412_v27, 8  ;;  %v659_v56 = vunpack.c.l.bf16 %v678_v48  ;;  %v431_v57 = vsel %vm367_vm0, %v335_v36, %v399_v45  ;;  %v283_v58 = vmul.f32 %v624_v47, %v777_v0  ;;  %v627_v59 = vunpack.c.l.bf16 %v670_v53 }
  0x31   : > { %v415_v60 = vsel %vm351_vm1, %v319_v39, %v383_v50  ;;  %v400_v61 = vmul.f32 0.2, %v336_v46  ;;  %v384_v62 = vmul.f32 0.2, %v320_v51  ;;  %v321_v63 = vadd.f32 %v786_v9, %v282_v52 }
  0x32   : > { %vm368_vm2 = vcmp.gt.f32.partialorder %v336_v46, 0.0  ;;  %vm352_vm3 = vcmp.gt.f32.partialorder %v320_v51, 0.0  ;;  %v401_v1 = vmul.f32 0.2, %v337_v54  ;;  %v338_v2 = vadd.f32 %v786_v9, %v299_v55 }
  0x33   : > { %477 = vxpose.xlu1.b32.cont [7/16] (narrow) %v429_v32, 8  ;;  %v300_v3 = vmul.f32 %v659_v56, %v777_v0  ;;  %v660_v4 = vunpack.c.h.bf16 %v678_v48  ;;  %vm369_vm4 = vcmp.gt.f32.partialorder %v337_v54, 0.0  ;;  %v322_v5 = vadd.f32 %v786_v9, %v283_v58 }
  0x34   : > { %445 = vxpose.xlu0.b32.cont [7/16] (narrow) %v413_v35, 8  ;;  %v284_v6 = vmul.f32 %v627_v59, %v777_v0  ;;  %v628_v7 = vunpack.c.h.bf16 %v670_v53  ;;  %v432_v8 = vsel %vm368_vm2, %v336_v46, %v400_v61  ;;  %v416_v10 = vsel %vm352_vm3, %v320_v51, %v384_v62 }
  0x35   : > { %v385_v11 = vmul.f32 0.2, %v321_v63  ;;  %vm353_vm5 = vcmp.gt.f32.partialorder %v321_v63, 0.0  ;;  %v433_v14 = vsel %vm369_vm4, %v337_v54, %v401_v1  ;;  %v402_v15 = vmul.f32 0.2, %v338_v2 }
  0x36   : > { %v339_v16 = vadd.f32 %v786_v9, %v300_v3  ;;  %v301_v17 = vmul.f32 %v660_v4, %v777_v0  ;;  %vm370_vm6 = vcmp.gt.f32.partialorder %v338_v2, 0.0  ;;  %v386_v18 = vmul.f32 0.2, %v322_v5 }
  0x37   : > { %478 = vxpose.xlu1.b32.cont [8/16] (narrow) %v430_v42, 8  ;;  %v323_v19 = vadd.f32 %v786_v9, %v284_v6  ;;  %v285_v20 = vmul.f32 %v628_v7, %v777_v0  ;;  %v417_v21 = vsel %vm353_vm5, %v321_v63, %v385_v11  ;;  %vm354_vm7 = vcmp.gt.f32.partialorder %v322_v5, 0.0 }
  0x38   : > { %446 = vxpose.xlu0.b32.cont [8/16] (narrow) %v414_v49, 8  ;;  %v663_v22 = vunpack.c.l.bf16 %v679_v12  ;;  %v631_v23 = vunpack.c.l.bf16 %v671_v13  ;;  %v434_v24 = vsel %vm370_vm6, %v338_v2, %v402_v15  ;;  %vm371_vm8 = vcmp.gt.f32.partialorder %v339_v16, 0.0 }
  0x39   : > { %v403_v25 = vmul.f32 0.2, %v339_v16  ;;  %v340_v26 = vadd.f32 %v786_v9, %v301_v17  ;;  %v418_v27 = vsel %vm354_vm7, %v322_v5, %v386_v18  ;;  %vm355_vm9 = vcmp.gt.f32.partialorder %v323_v19, 0.0 }
  0x3a   : > { %v387_v28 = vmul.f32 0.2, %v323_v19  ;;  %v324_v29 = vadd.f32 %v786_v9, %v285_v20  ;;  %v302_v30 = vmul.f32 %v663_v22, %v777_v0  ;;  %v286_v31 = vmul.f32 %v631_v23, %v777_v0 }
  0x3b   : > { %479 = vxpose.xlu1.b32.cont [9/16] (narrow) %v431_v57, 8  ;;  %v664_v32 = vunpack.c.h.bf16 %v679_v12  ;;  %v632_v33 = vunpack.c.h.bf16 %v671_v13  ;;  %vm372_vm10 = vcmp.gt.f32.partialorder %v340_v26, 0.0  ;;  %v404_v34 = vmul.f32 0.2, %v340_v26 }
  0x3c   : > { %447 = vxpose.xlu0.b32.cont [9/16] (narrow) %v415_v60, 8  ;;  %v435_v35 = vsel %vm371_vm8, %v339_v16, %v403_v25  ;;  %v419_v36 = vsel %vm355_vm9, %v323_v19, %v387_v28  ;;  %vm356_vm11 = vcmp.gt.f32.partialorder %v324_v29, 0.0  ;;  %v388_v37 = vmul.f32 0.2, %v324_v29 }
  0x3d   : > { %v341_v38 = vadd.f32 %v786_v9, %v302_v30  ;;  %v325_v39 = vadd.f32 %v786_v9, %v286_v31  ;;  %v303_v40 = vmul.f32 %v664_v32, %v777_v0  ;;  %v287_v41 = vmul.f32 %v632_v33, %v777_v0 }
  0x3e   : > { %v436_v42 = vsel %vm372_vm10, %v340_v26, %v404_v34  ;;  %v420_v43 = vsel %vm356_vm11, %v324_v29, %v388_v37 }
  0x3f   : > { %480 = vxpose.xlu1.b32.cont [10/16] (narrow) %v432_v8, 8  ;;  %v405_v44 = vmul.f32 0.2, %v341_v38  ;;  %v389_v45 = vmul.f32 0.2, %v325_v39  ;;  %v342_v46 = vadd.f32 %v786_v9, %v303_v40  ;;  %v326_v47 = vadd.f32 %v786_v9, %v287_v41 }
  0x40   : > { %448 = vxpose.xlu0.b32.cont [10/16] (narrow) %v416_v10, 8  ;;  %vm373_vm12 = vcmp.gt.f32.partialorder %v341_v38, 0.0  ;;  %vm357_vm13 = vcmp.gt.f32.partialorder %v325_v39, 0.0 }
  0x41   : > { %v437_v48 = vsel %vm373_vm12, %v341_v38, %v405_v44  ;;  %v421_v49 = vsel %vm357_vm13, %v325_v39, %v389_v45  ;;  %v406_v50 = vmul.f32 0.2, %v342_v46  ;;  %v390_v51 = vmul.f32 0.2, %v326_v47 }
  0x42   : > { %vm374_vm14 = vcmp.gt.f32.partialorder %v342_v46, 0.0  ;;  %vm358_vm15 = vcmp.gt.f32.partialorder %v326_v47, 0.0 }
  0x43   : > { %481 = vxpose.xlu1.b32.cont [11/16] (narrow) %v433_v14, 8  ;;  %v438_v0 = vsel %vm374_vm14, %v342_v46, %v406_v50  ;;  %v422_v52 = vsel %vm358_vm15, %v326_v47, %v390_v51 }
  0x44   : > { %449 = vxpose.xlu0.b32.cont [11/16] (narrow) %v417_v21, 8 }
  0x47   : > { %482 = vxpose.xlu1.b32.cont [12/16] (narrow) %v434_v24, 8 }
  0x48   : > { %450 = vxpose.xlu0.b32.cont [12/16] (narrow) %v418_v27, 8 }
  0x4b   : > { %483 = vxpose.xlu1.b32.cont [13/16] (narrow) %v435_v35, 8 }
  0x4c   : > { %451 = vxpose.xlu0.b32.cont [13/16] (narrow) %v419_v36, 8 }
  0x4f   : > { %484 = vxpose.xlu1.b32.cont [14/16] (narrow) %v436_v42, 8 }
  0x50   : > { %452 = vxpose.xlu0.b32.cont [14/16] (narrow) %v420_v43, 8 }
  0x53   : > { %485 = vxpose.xlu1.b32.cont [15/16] (narrow) %v437_v48, 8 }
  0x54   : > { %453 = vxpose.xlu0.b32.cont [15/16] (narrow) %v421_v49, 8 }
  0x57   : > { %486 = vxpose.xlu1.b32.end [16/16] (narrow) %v438_v0, 8 }
  0x58   : > { %454 = vxpose.xlu0.b32.end [16/16] (narrow) %v422_v52, 8 }
  0x9b   : > { %v487_v9 = vpop.trf.xlu1 }
  0x9c   : > { %v455_v53 = vpop.trf.xlu0  ;;  %504 = vst [vmem:[%s199_s27 + $0x8] sm:$0xff] %v487_v9 }
  0x9d   : > { %503 = vst [vmem:[%s199_s27] sm:$0xff] %v455_v53 }
  0x9e PF: > { %s13_s14 = sadd.s32 1, %s726_s14   ;;  %s885_s12 = smov %s722_s13 }
  0x9f   : > { %p10_p5 = scmp.ge.s32.totalorder %s13_s14, 4   ;;  %s886_s13 = smov %s888_s15 }
  0xa1   :  { %12 = sbr.rel (!%p10_p5) target bundleno = 2 (0x2), region = 62 }

// kernel: vgg_layer_forward.2
= control target key start
LH: loop header
LB: loop body
LE: loop exit
PB: predicated region body
PF: predicated region fallthrough
CT: control target
= control target key end

     0   :  { %s6728_s15 = smov 0   ;;  %s8484_s0 = inlined_call_operand.vmem [shape: bf16[2,18,18,4], index: 0, kind: input, shape index: {}]   ;;  %s8485_s1 = inlined_call_operand.vmem [shape: bf16[9,4,128], index: 1, kind: input, shape index: {}]   ;;  %s8486_s2 = inlined_call_operand.vmem [shape: bf16[2,256,128], index: 2, kind: output, shape index: {0}]   ;;  %s8487_s3 = inlined_call_operand.vmem [shape: f32[2,1,128], index: 3, kind: output, shape index: {1}]   ;;  %s8488_s4 = inlined_call_operand.vmem [shape: f32[2,1,128], index: 4, kind: output, shape index: {2}]  }
   0x1 LB: > { %s5148_s16 = sadd.s32 4294967295, %s6701_s15   ;;  %p5152_p0 = scmp.ge.s32.totalorder %s6701_s15, 1  ;;  %s6701_s15 = sphi %s6728_s15, %s15_s15  }
   0x2   : > { %p167_p1 = scmp.lt.s32.totalorder %s6701_s15, 3 }
   0x4   : > { %p168_p2 = pnand %p5152_p0, %p167_p1 }
   0x6   : > { %171 = sbr.rel (%p168_p2) target bundleno = 603 (0x25b), region = 28 }
   0xd   : > { %v5156_v0 = vld [vmem:[%s8485_s1 + $0x2] sm:$0x3]  ;;  %vm751_vm0 = vcmask 1041408   ;;  %v5383_v1 = vld [vmem:[%s8485_s1 + $0x8] sm:$0x3]  ;;  %p199_p3 = scmp.lt.s32.totalorder %s5148_s16, 1 }
   0xe   : > { %6571 = vmatprep.subr.msk.bf16.mxu1 %vm751_vm0, %v5156_v0  ;;  %6575 = vmatprep.subr.msk.bf16.mxu0 %vm751_vm0, %v5383_v1  ;;  %v753_v2 = vsel %vm751_vm0, %v5156_v0, 0  ;;  %v6746_v3 = vsel %vm751_vm0, %v5383_v1, 0  ;;  %v248_v4 = vld [vmem:[%s8485_s1] sm:$0x3]  ;;  %v5448_v5 = vld [vmem:[%s8485_s1 + $0xa] sm:$0x3] }
   0xf   : > { %8502 = vst [vmem:[#allocation2_spill] sm:$0xff] %v6746_v3  ;;  %6008 = vmatpush3.bf16.msra.mxu1 %v753_v2  ;;  %6144 = vmatpush3.bf16.msra.mxu0 %v6746_v3  ;;  %s8557_s16 = smov (!%p199_p3, %s5148_s16), 1  ;;  %vm265_vm1 = vsmask.f32 3328  ;;  %vm266_vm2 = vsmask.f32 7440 }
  0x10   : > { %6572 = vmatprep.subr.msk.bf16.mxu1 %vm751_vm0, %v248_v4  ;;  %6577 = vmatprep.subr.msk.bf16.mxu0 %vm751_vm0, %v5448_v5  ;;  %s6581_s25 = smul.u32 216, %s8557_s16  ;;  %vm702_vm3 = vcmask 31744   ;;  %v6776_v17 = vsel %vm751_vm0, %v248_v4, 0  ;;  %v6782_v26 = vld [vmem:[%s8485_s1 + $0xc] sm:$0x3]  ;;  %vm6789_vm4 = vmor %vm265_vm1, %vm266_vm2  ;;  %v6795_v37 = vsel %vm751_vm0, %v5448_v5, 0 }
  0x11   : > { %v6799_v41 = vsel %vm751_vm0, %v6782_v26, 0  ;;  %vm1256_vm5 = vcmask 1042432   ;;  %vm1257_vm6 = vcmask 1046532   ;;  %s5726_s19 = sshll.u32 %s8557_s16, 7 }
  0x12   : > { %s6763_s28 = scalar_lea.vmem %s8484_s0, %s6581_s25  ;;  %vm7015_vm7 = vmor %vm1256_vm5, %vm1257_vm6  ;;  %s8451_s22 = scalar_lea.vmem %s8486_s2, %s5726_s19 }
  0x13   : > { %v216_v6 = vld [vmem:[%s6763_s28] sm:$0xf]  ;;  %v217_v7 = vld [vmem:[%s6763_s28 + $0x4] sm:$0xf]  ;;  %v249_v8 = vld [vmem:[%s6763_s28 + $0x8] sm:$0x1]  ;;  %s211_s25 = scalar_lea.vmem %s8487_s3, %s8557_s16 }
  0x14   : > { %v269_v9 = vshrl.u32 %v216_v6, 16  ;;  %v272_v10 = vshll.u32 %v216_v6, 16  ;;  %v278_v11 = vshll.u32 %v217_v7, 16  ;;  %v282_v12 = vshrl.u32 %v217_v7, 16  ;;  %v5335_v13 = vld [vmem:[%s6763_s28 + $0xc] sm:$0xf] }
  0x15   : > { %v288_v14 = vshll.u32 %v249_v8, 16  ;;  %v6770_v15 = vld [vmem:[%s6763_s28 + $0x10] sm:$0xf]  ;;  %v6773_v16 = vld [vmem:[%s6763_s28 + $0x14] sm:$0x1]  ;;  %v2073_v23 = vshrl.u32 %v5335_v13, 16 }
  0x16   : > { %v271_v18 = vrot.slane %v269_v9, 4  ;;  %v274_v19 = vrot.slane %v272_v10, 5  ;;  %v280_v20 = vrot.slane %v278_v11, 5  ;;  %v284_v21 = vrot.slane %v282_v12, 4  ;;  %v218_v31 = vld [vmem:[%s6763_s28 + $0xc] sm:$0xf] }
  0x17   : > { %v290_v22 = vrot.slane %v288_v14, 5  ;;  %v2076_v24 = vshll.u32 %v5335_v13, 16  ;;  %v2082_v25 = vshll.u32 %v6770_v15, 16  ;;  %v2086_v29 = vshrl.u32 %v6770_v15, 16  ;;  %v219_v36 = vld [vmem:[%s6763_s28 + $0x10] sm:$0xf] }
  0x18   : > { %v275_v27 = vor.u32 %v274_v19, %v271_v18  ;;  %v285_v28 = vor.u32 %v284_v21, %v280_v20  ;;  %v2092_v30 = vshll.u32 %v6773_v16, 16  ;;  %v2075_v33 = vrot.slane %v2073_v23, 4  ;;  %v250_v44 = vld [vmem:[%s6763_s28 + $0x14] sm:$0x1]  ;;  %v5338_v55 = vld [vmem:[%s6763_s28 + $0x18] sm:$0xf] }
  0x19   : > { %v2078_v34 = vrot.slane %v2076_v24, 5  ;;  %v2084_v35 = vrot.slane %v2082_v25, 5  ;;  %v2088_v40 = vrot.slane %v2086_v29, 4  ;;  %v293_v45 = vshrl.u32 %v218_v31, 16  ;;  %v6808_v60 = vld [vmem:[%s6763_s28 + $0x1c] sm:$0xf] }
  0x1a   : > { %v276_v38 = vrot.slane %v275_v27, 4  ;;  %v286_v39 = vrot.slane %v285_v28, 4  ;;  %v2094_v43 = vrot.slane %v2092_v30, 5  ;;  %v296_v46 = vshll.u32 %v218_v31, 16  ;;  %v6816_v1 = vld [vmem:[%s6763_s28 + $0x20] sm:$0x1] }
  0x1b   : > { %v2079_v42 = vor.u32 %v2078_v34, %v2075_v33  ;;  %v2089_v49 = vor.u32 %v2088_v40, %v2084_v35  ;;  %v302_v50 = vshll.u32 %v219_v36, 16  ;;  %v295_v53 = vrot.slane %v293_v45, 4  ;;  %v220_v18 = vld [vmem:[%s6763_s28 + $0x18] sm:$0xf]  ;;  %v221_v23 = vld [vmem:[%s6763_s28 + $0x1c] sm:$0xf] }
  0x1c   : > { %v281_v47 = vsel %vm6789_vm4, %v276_v38, %v280_v20  ;;  %v291_v48 = vsel %vm6789_vm4, %v286_v39, %v290_v22  ;;  %v298_v54 = vrot.slane %v296_v46, 5  ;;  %v306_v58 = vshrl.u32 %v219_v36, 16  ;;  %v251_v31 = vld [vmem:[%s6763_s28 + $0x20] sm:$0x1]  ;;  %v5341_v40 = vld [vmem:[%s6763_s28 + $0x24] sm:$0xf] }
  0x1d   : > { %v5157_v51 = vcombine.low %v281_v47, %v291_v48  ;;  %v2080_v52 = vrot.slane %v2079_v42, 4  ;;  %v2090_v56 = vrot.slane %v2089_v49, 4  ;;  %v304_v57 = vrot.slane %v302_v50, 5  ;;  %v6839_v46 = vld [vmem:[%s6763_s28 + $0x28] sm:$0xf] }
  0x1e   : > { %v312_v59 = vshll.u32 %v250_v44, 16  ;;  %v2816_v62 = vrot.slane %v6770_v15, 5  ;;  %v2819_v63 = vrot.slane %v6773_v16, 5  ;;  %v299_v0 = vor.u32 %v298_v54, %v295_v53  ;;  %v6848_v54 = vld [vmem:[%s6763_s28 + $0x2c] sm:$0x1] }
  0x1f   : > { %6009 = vmatprep.mubr.msk.bf16.mxu1 %vm702_vm3, %v5157_v51  ;;  %v2085_v61 = vsel %vm6789_vm4, %v2080_v52, %v2084_v35  ;;  %v2095_v2 = vsel %vm6789_vm4, %v2090_v56, %v2094_v43  ;;  %v308_v4 = vrot.slane %v306_v58, 4  ;;  %v2097_v6 = vshrl.u32 %v5338_v55, 16  ;;  %v5237_v51 = vld [vmem:[%s8485_s1 + $0x4] sm:$0x3]  ;;  %v7048_v16 = vld [vmem:[%s6763_s28 + $0x7c] sm:$0xf] }
  0x20   : > { %v314_v5 = vrot.slane %v312_v59, 5  ;;  %v5384_v7 = vcombine.low %v2085_v61, %v2095_v2  ;;  %v300_v8 = vrot.slane %v299_v0, 4  ;;  %v2100_v9 = vshll.u32 %v5338_v55, 16  ;;  %v222_v0 = vld [vmem:[%s6763_s28 + $0x24] sm:$0xf] }
  0x21   : > { %v2106_v10 = vshll.u32 %v6808_v60, 16  ;;  %v309_v11 = vor.u32 %v308_v4, %v304_v57  ;;  %v2099_v12 = vrot.slane %v2097_v6, 4  ;;  %v2110_v13 = vshrl.u32 %v6808_v60, 16 }
  0x22   : > { %v2116_v14 = vshll.u32 %v6816_v1, 16  ;;  %6145 = vmatprep.mubr.msk.bf16.mxu0 %vm702_vm3, %v5384_v7  ;;  %v305_v19 = vsel %vm6789_vm4, %v300_v8, %v304_v57  ;;  %v2102_v20 = vrot.slane %v2100_v9, 5  ;;  %v2823_v22 = vrot.slane %v6808_v60, 5  ;;  %v223_v7 = vld [vmem:[%s6763_s28 + $0x28] sm:$0xf] }
  0x23   : > { %v2108_v21 = vrot.slane %v2106_v10, 5  ;;  %v310_v24 = vrot.slane %v309_v11, 4  ;;  %v2112_v25 = vrot.slane %v2110_v13, 4  ;;  %v2826_v28 = vrot.slane %v6816_v1, 5  ;;  %v252_v13 = vld [vmem:[%s6763_s28 + $0x2c] sm:$0x1] }
  0x24   : > { %v2118_v27 = vrot.slane %v2116_v14, 5  ;;  %v2103_v29 = vor.u32 %v2102_v20, %v2099_v12  ;;  %v6832_v30 = vrot.slane %v2823_v22, 4  ;;  %v317_v33 = vshrl.u32 %v220_v18, 16 }
  0x25   : > { %v320_v34 = vshll.u32 %v220_v18, 16  ;;  %v315_v35 = vsel %vm6789_vm4, %v310_v24, %v314_v5  ;;  %v2113_v36 = vor.u32 %v2112_v25, %v2108_v21  ;;  %v326_v38 = vshll.u32 %v221_v23, 16  ;;  %v5344_v24 = vld [vmem:[%s6763_s28 + $0x30] sm:$0xf] }
  0x26   : > { %v330_v39 = vshrl.u32 %v221_v23, 16  ;;  %v5158_v42 = vcombine.low %v305_v19, %v315_v35  ;;  %v2104_v43 = vrot.slane %v2103_v29, 4  ;;  %v319_v44 = vrot.slane %v317_v33, 4  ;;  %v6868_v33 = vld [vmem:[%s6763_s28 + $0x34] sm:$0xf] }
  0x27   : > { %v322_v45 = vrot.slane %v320_v34, 5  ;;  %v2114_v47 = vrot.slane %v2113_v36, 4  ;;  %v328_v48 = vrot.slane %v326_v38, 5  ;;  %v336_v50 = vshll.u32 %v251_v31, 16 }
  0x28   : > { %v332_v49 = vrot.slane %v330_v39, 4  ;;  %6010 = vmatmul.mubr.msk.bf16.vlgmr.msra.gmra.mrb[0].mxu1 %vm702_vm3, %v5158_v42  ;;  %v2109_v52 = vsel %vm6789_vm4, %v2104_v43, %v2108_v21  ;;  %v2121_v55 = vshrl.u32 %v5341_v40, 16  ;;  %v2124_v56 = vshll.u32 %v5341_v40, 16  ;;  %v6876_v40 = vld [vmem:[%s6763_s28 + $0x38] sm:$0x1] }
  0x29   : > { %v323_v53 = vor.u32 %v322_v45, %v319_v44  ;;  %6042 = vmatpush3.bf16.msra.mxu1 %v6776_v17  ;;  %v2119_v57 = vsel %vm6789_vm4, %v2114_v47, %v2118_v27  ;;  %v338_v59 = vrot.slane %v336_v50, 5  ;;  %v2130_v61 = vshll.u32 %v6839_v46, 16 }
  0x2a   : > { %v333_v58 = vor.u32 %v332_v49, %v328_v48  ;;  %v5385_v2 = vcombine.low %v2109_v52, %v2119_v57  ;;  %v2123_v5 = vrot.slane %v2121_v55, 4  ;;  %v2126_v6 = vrot.slane %v2124_v56, 5  ;;  %6573 = vmatprep.subr.msk.bf16.mxu1 %vm751_vm0, %v5237_v51  ;;  %v224_v52 = vld [vmem:[%s6763_s28 + $0x30] sm:$0xf] }
  0x2b   : > { %v324_v4 = vrot.slane %v323_v53, 4  ;;  %v2132_v9 = vrot.slane %v2130_v61, 5  ;;  %v2134_v17 = vshrl.u32 %v6839_v46, 16  ;;  %v2140_v10 = vshll.u32 %v6848_v54, 16 }
  0x2c   : > { %v334_v8 = vrot.slane %v333_v58, 4  ;;  %6146 = vmatmul.mubr.msk.bf16.vlgmr.msra.gmra.mrb[0].mxu0 %vm702_vm3, %v5385_v2  ;;  %v2127_v12 = vor.u32 %v2126_v6, %v2123_v5  ;;  %v341_v14 = vshrl.u32 %v222_v0, 16  ;;  %v344_v18 = vshll.u32 %v222_v0, 16  ;;  %v225_v58 = vld [vmem:[%s6763_s28 + $0x34] sm:$0xf] }
  0x2d   : > { %v329_v11 = vsel %vm6789_vm4, %v324_v4, %v328_v48  ;;  %6178 = vmatpush3.bf16.msra.mxu0 %v6795_v37  ;;  %v2136_v20 = vrot.slane %v2134_v17, 4  ;;  %v2142_v21 = vrot.slane %v2140_v10, 5  ;;  %v350_v23 = vshll.u32 %v223_v7, 16  ;;  %v253_v4 = vld [vmem:[%s6763_s28 + $0x38] sm:$0x1] }
  0x2e   : > { %v339_v19 = vsel %vm6789_vm4, %v334_v8, %v338_v59  ;;  %v2128_v27 = vrot.slane %v2127_v12, 4  ;;  %v343_v29 = vrot.slane %v341_v14, 4  ;;  %v346_v31 = vrot.slane %v344_v18, 5  ;;  %6578 = vmatprep.subr.msk.bf16.mxu0 %vm751_vm0, %v6782_v26  ;;  %v5347_v12 = vld [vmem:[%s6763_s28 + $0x3c] sm:$0xf] }
  0x2f   : > { %v5159_v25 = vcombine.low %v329_v11, %v339_v19  ;;  %v2137_v34 = vor.u32 %v2136_v20, %v2132_v9  ;;  %v352_v35 = vrot.slane %v350_v23, 5  ;;  %v354_v37 = vshrl.u32 %v223_v7, 16  ;;  %v6893_v20 = vld [vmem:[%s6763_s28 + $0x40] sm:$0xf] }
  0x30   : > { %v360_v36 = vshll.u32 %v252_v13, 16  ;;  %v2133_v38 = vsel %vm6789_vm4, %v2128_v27, %v2132_v9  ;;  %v347_v39 = vor.u32 %v346_v31, %v343_v29  ;;  %v2145_v42 = vshrl.u32 %v5344_v24, 16 }
  0x31   : > { %6013 = vmatprep.mubr.msk.bf16.mxu1 %vm702_vm3, %v5159_v25  ;;  %v2148_v43 = vshll.u32 %v5344_v24, 16  ;;  %v2138_v44 = vrot.slane %v2137_v34, 4  ;;  %v356_v45 = vrot.slane %v354_v37, 4  ;;  %v2154_v26 = vshll.u32 %v6868_v33, 16  ;;  %v6898_v34 = vld [vmem:[%s6763_s28 + $0x44] sm:$0x1] }
  0x32   : > { %v362_v47 = vrot.slane %v360_v36, 5  ;;  %v348_v48 = vrot.slane %v347_v39, 4  ;;  %v2147_v49 = vrot.slane %v2145_v42, 4  ;;  %v2158_v51 = vshrl.u32 %v6868_v33, 16  ;;  %v226_v42 = vld [vmem:[%s6763_s28 + $0x3c] sm:$0xf] }
  0x33   : > { %v2150_v50 = vrot.slane %v2148_v43, 5  ;;  %v2143_v53 = vsel %vm6789_vm4, %v2138_v44, %v2142_v21  ;;  %v357_v55 = vor.u32 %v356_v45, %v352_v35  ;;  %v2156_v56 = vrot.slane %v2154_v26, 5  ;;  %v227_v26 = vld [vmem:[%s6763_s28 + $0x40] sm:$0xf] }
  0x34   : > { %v2164_v57 = vshll.u32 %v6876_v40, 16  ;;  %v5386_v59 = vcombine.low %v2133_v38, %v2143_v53  ;;  %v353_v61 = vsel %vm6789_vm4, %v348_v48, %v352_v35  ;;  %v2160_v2 = vrot.slane %v2158_v51, 4 }
  0x35   : > { %v2151_v0 = vor.u32 %v2150_v50, %v2147_v49  ;;  %v358_v5 = vrot.slane %v357_v55, 4  ;;  %v365_v7 = vshrl.u32 %v224_v52, 16  ;;  %v368_v8 = vshll.u32 %v224_v52, 16 }
  0x36   : > { %v2166_v6 = vrot.slane %v2164_v57, 5  ;;  %6149 = vmatprep.mubr.msk.bf16.mxu0 %vm702_vm3, %v5386_v59  ;;  %v2161_v17 = vor.u32 %v2160_v2, %v2156_v56  ;;  %v374_v10 = vshll.u32 %v225_v58, 16  ;;  %v378_v11 = vshrl.u32 %v225_v58, 16  ;;  %v5350_v2 = vld [vmem:[%s6763_s28 + $0x48] sm:$0xf] }
  0x37   : > { %v2152_v9 = vrot.slane %v2151_v0, 4  ;;  %v363_v13 = vsel %vm6789_vm4, %v358_v5, %v362_v47  ;;  %v367_v14 = vrot.slane %v365_v7, 4  ;;  %v370_v18 = vrot.slane %v368_v8, 5  ;;  %v6916_v8 = vld [vmem:[%s6763_s28 + $0x4c] sm:$0xf] }
  0x38   : > { %v384_v19 = vshll.u32 %v253_v4, 16  ;;  %v5160_v21 = vcombine.low %v353_v61, %v363_v13  ;;  %v2162_v24 = vrot.slane %v2161_v17, 4  ;;  %v376_v25 = vrot.slane %v374_v10, 5  ;;  %v254_v61 = vld [vmem:[%s6763_s28 + $0x44] sm:$0x1] }
  0x39   : > { %v2157_v23 = vsel %vm6789_vm4, %v2152_v9, %v2156_v56  ;;  %v371_v27 = vor.u32 %v370_v18, %v367_v14  ;;  %v380_v29 = vrot.slane %v378_v11, 4  ;;  %v2169_v35 = vshrl.u32 %v5347_v12, 16 }
  0x3a   : > { %v386_v31 = vrot.slane %v384_v19, 5  ;;  %6014 = vmatmul.mubr.msk.bf16.gmra.mrb[4].mxu1 %vm702_vm3, %v5160_v21  ;;  %v2167_v37 = vsel %vm6789_vm4, %v2162_v24, %v2166_v6  ;;  %v2172_v36 = vshll.u32 %v5347_v12, 16  ;;  %v2178_v38 = vshll.u32 %v6893_v20, 16 }
  0x3b   : > { %v2182_v39 = vshrl.u32 %v6893_v20, 16  ;;  %v5387_v43 = vcombine.low %v2157_v23, %v2167_v37  ;;  %v372_v44 = vrot.slane %v371_v27, 4  ;;  %v381_v45 = vor.u32 %v380_v29, %v376_v25  ;;  %v6924_v23 = vld [vmem:[%s6763_s28 + $0x50] sm:$0x1]  ;;  %v6928_v27 = vld [vmem:[%s6763_s28 + $0x48] sm:$0xf] }
  0x3c   : > { %v2171_v47 = vrot.slane %v2169_v35, 4  ;;  %v2174_v48 = vrot.slane %v2172_v36, 5  ;;  %v2180_v49 = vrot.slane %v2178_v38, 5  ;;  %v2188_v51 = vshll.u32 %v6898_v34, 16  ;;  %v6931_v36 = vld [vmem:[%s6763_s28 + $0x4c] sm:$0xf] }
  0x3d   : > { %v2184_v50 = vrot.slane %v2182_v39, 4  ;;  %6150 = vmatmul.mubr.msk.bf16.gmra.mrb[4].mxu0 %vm702_vm3, %v5387_v43  ;;  %v377_v52 = vsel %vm6789_vm4, %v372_v44, %v376_v25  ;;  %v382_v53 = vrot.slane %v381_v45, 4  ;;  %v389_v55 = vshrl.u32 %v226_v42, 16 }
  0x3e   : > { %v392_v56 = vshll.u32 %v226_v42, 16  ;;  %v2175_v57 = vor.u32 %v2174_v48, %v2171_v47  ;;  %v2190_v59 = vrot.slane %v2188_v51, 5  ;;  %v398_v0 = vshll.u32 %v227_v26, 16 }
  0x3f   : > { %v2185_v58 = vor.u32 %v2184_v50, %v2180_v49  ;;  %v387_v4 = vsel %vm6789_vm4, %v382_v53, %v386_v31  ;;  %v391_v5 = vrot.slane %v389_v55, 4  ;;  %v402_v7 = vshrl.u32 %v227_v26, 16  ;;  %v255_v26 = vld [vmem:[%s6763_s28 + $0x50] sm:$0x1]  ;;  %v5353_v53 = vld [vmem:[%s6763_s28 + $0x54] sm:$0xf] }
  0x40   : > { %v394_v6 = vrot.slane %v392_v56, 5  ;;  %v5161_v9 = vcombine.low %v377_v52, %v387_v4  ;;  %v2176_v17 = vrot.slane %v2175_v57, 4  ;;  %v400_v11 = vrot.slane %v398_v0, 5  ;;  %v6947_v4 = vld [vmem:[%s6763_s28 + $0x58] sm:$0xf] }
  0x41   : > { %v2186_v10 = vrot.slane %v2185_v58, 4  ;;  %v404_v13 = vrot.slane %v402_v7, 4  ;;  %v408_v14 = vshll.u32 %v254_v61, 16  ;;  %v2193_v18 = vshrl.u32 %v5350_v2, 16 }
  0x42   : > { %v395_v12 = vor.u32 %v394_v6, %v391_v5  ;;  %6017 = vmatprep.mubr.msk.bf16.mxu1 %vm702_vm3, %v5161_v9  ;;  %v2181_v19 = vsel %vm6789_vm4, %v2176_v17, %v2180_v49  ;;  %v2196_v24 = vshll.u32 %v5350_v2, 16  ;;  %v2202_v25 = vshll.u32 %v6916_v8, 16 }
  0x43   : > { %v2191_v21 = vsel %vm6789_vm4, %v2186_v10, %v2190_v59  ;;  %v405_v35 = vor.u32 %v404_v13, %v400_v11  ;;  %v410_v37 = vrot.slane %v408_v14, 5  ;;  %v2195_v38 = vrot.slane %v2193_v18, 4 }
  0x44   : > { %v5388_v29 = vcombine.low %v2181_v19, %v2191_v21  ;;  %v396_v31 = vrot.slane %v395_v12, 4  ;;  %v2198_v39 = vrot.slane %v2196_v24, 5  ;;  %v2204_v42 = vrot.slane %v2202_v25, 5  ;;  %v6953_v12 = vld [vmem:[%s6763_s28 + $0x5c] sm:$0x1] }
  0x45   : > { %v2206_v43 = vshrl.u32 %v6916_v8, 16  ;;  %v406_v45 = vrot.slane %v405_v35, 4  ;;  %v2212_v47 = vshll.u32 %v6924_v23, 16  ;;  %v413_v48 = vshrl.u32 %v6928_v27, 16  ;;  %v6957_v24 = vld [vmem:[%s6763_s28 + $0x54] sm:$0xf] }
  0x46   : > { %6153 = vmatprep.mubr.msk.bf16.mxu0 %vm702_vm3, %v5388_v29  ;;  %v401_v44 = vsel %vm6789_vm4, %v396_v31, %v400_v11  ;;  %v2199_v49 = vor.u32 %v2198_v39, %v2195_v38  ;;  %v416_v51 = vshll.u32 %v6928_v27, 16  ;;  %v422_v52 = vshll.u32 %v6931_v36, 16 }
  0x47   : > { %v2208_v50 = vrot.slane %v2206_v43, 4  ;;  %v411_v55 = vsel %vm6789_vm4, %v406_v45, %v410_v37  ;;  %v2214_v56 = vrot.slane %v2212_v47, 5  ;;  %v415_v57 = vrot.slane %v413_v48, 4  ;;  %v6963_v37 = vld [vmem:[%s6763_s28 + $0x58] sm:$0xf] }
  0x48   : > { %v426_v58 = vshrl.u32 %v6931_v36, 16  ;;  %v5162_v59 = vcombine.low %v401_v44, %v411_v55  ;;  %v2200_v61 = vrot.slane %v2199_v49, 4  ;;  %v418_v2 = vrot.slane %v416_v51, 5 }
  0x49   : > { %v2209_v0 = vor.u32 %v2208_v50, %v2204_v42  ;;  %v424_v5 = vrot.slane %v422_v52, 5  ;;  %v432_v7 = vshll.u32 %v255_v26, 16  ;;  %v2217_v9 = vshrl.u32 %v5353_v53, 16  ;;  %v256_v26 = vld [vmem:[%s6763_s28 + $0x5c] sm:$0x1] }
  0x4a   : > { %v428_v6 = vrot.slane %v426_v58, 4  ;;  %6018 = vmatmul.mubr.msk.bf16.gmra.mrb[8].mxu1 %vm702_vm3, %v5162_v59  ;;  %v2205_v17 = vsel %vm6789_vm4, %v2200_v61, %v2204_v42  ;;  %v419_v11 = vor.u32 %v418_v2, %v415_v57  ;;  %v2220_v13 = vshll.u32 %v5353_v53, 16  ;;  %v5356_v53 = vld [vmem:[%s6763_s28 + $0x60] sm:$0xf]  ;;  %v6977_v59 = vld [vmem:[%s6763_s28 + $0x64] sm:$0xf] }
  0x4b   : > { %v2210_v10 = vrot.slane %v2209_v0, 4  ;;  %v434_v18 = vrot.slane %v432_v7, 5  ;;  %v2219_v19 = vrot.slane %v2217_v9, 4  ;;  %v2226_v21 = vshll.u32 %v6947_v4, 16  ;;  %v6984_v9 = vld [vmem:[%s6763_s28 + $0x68] sm:$0x1] }
  0x4c   : > { %v429_v14 = vor.u32 %v428_v6, %v424_v5  ;;  %v420_v29 = vrot.slane %v419_v11, 4  ;;  %v2222_v31 = vrot.slane %v2220_v13, 5  ;;  %v2230_v35 = vshrl.u32 %v6947_v4, 16 }
  0x4d   : > { %v2215_v25 = vsel %vm6789_vm4, %v2210_v10, %v2214_v56  ;;  %v2228_v42 = vrot.slane %v2226_v21, 5  ;;  %v2236_v43 = vshll.u32 %v6953_v12, 16  ;;  %v437_v48 = vshrl.u32 %v6957_v24, 16 }
  0x4e   : > { %v5389_v38 = vcombine.low %v2205_v17, %v2215_v25  ;;  %v430_v39 = vrot.slane %v429_v14, 4  ;;  %v425_v44 = vsel %vm6789_vm4, %v420_v29, %v424_v5  ;;  %v2223_v45 = vor.u32 %v2222_v31, %v2219_v19  ;;  %v6988_v19 = vld [vmem:[%s6763_s28 + $0x60] sm:$0xf] }
  0x4f   : > { %v2232_v47 = vrot.slane %v2230_v35, 4  ;;  %v2238_v50 = vrot.slane %v2236_v43, 5  ;;  %v440_v51 = vshll.u32 %v6957_v24, 16  ;;  %v446_v52 = vshll.u32 %v6963_v37, 16  ;;  %v6994_v35 = vld [vmem:[%s6763_s28 + $0x64] sm:$0xf] }
  0x50   : > { %6154 = vmatmul.mubr.msk.bf16.gmra.mrb[8].mxu0 %vm702_vm3, %v5389_v38  ;;  %v435_v49 = vsel %vm6789_vm4, %v430_v39, %v434_v18  ;;  %v2224_v56 = vrot.slane %v2223_v45, 4  ;;  %v439_v58 = vrot.slane %v437_v48, 4  ;;  %v450_v2 = vshrl.u32 %v6963_v37, 16 }
  0x51   : > { %v5163_v55 = vcombine.low %v425_v44, %v435_v49  ;;  %v2233_v57 = vor.u32 %v2232_v47, %v2228_v42  ;;  %v442_v61 = vrot.slane %v440_v51, 5  ;;  %v448_v0 = vrot.slane %v446_v52, 5 }
  0x52   : > { %v456_v5 = vshll.u32 %v256_v26, 16  ;;  %v2229_v6 = vsel %vm6789_vm4, %v2224_v56, %v2228_v42  ;;  %v2241_v17 = vshrl.u32 %v5356_v53, 16  ;;  %v2244_v10 = vshll.u32 %v5356_v53, 16 }
  0x53   : > { %6021 = vmatprep.mubr.msk.bf16.mxu1 %vm702_vm3, %v5163_v55  ;;  %v2234_v7 = vrot.slane %v2233_v57, 4  ;;  %v443_v11 = vor.u32 %v442_v61, %v439_v58  ;;  %v452_v13 = vrot.slane %v450_v2, 4  ;;  %v2250_v18 = vshll.u32 %v6977_v59, 16  ;;  %v5416_v58 = vld [vmem:[%s6763_s28 + $0xc] sm:$0xe] }
  0x54   : > { %v458_v14 = vrot.slane %v456_v5, 5  ;;  %v2243_v25 = vrot.slane %v2241_v17, 4  ;;  %v2246_v29 = vrot.slane %v2244_v10, 5  ;;  %v2254_v31 = vshrl.u32 %v6977_v59, 16 }
  0x55   : > { %v2239_v21 = vsel %vm6789_vm4, %v2234_v7, %v2238_v50  ;;  %v444_v39 = vrot.slane %v443_v11, 4  ;;  %v453_v42 = vor.u32 %v452_v13, %v448_v0  ;;  %v2252_v43 = vrot.slane %v2250_v18, 5  ;;  %v257_v50 = vld [vmem:[%s6763_s28 + $0x68] sm:$0x1] }
  0x56   : > { %v5390_v38 = vcombine.low %v2229_v6, %v2239_v21  ;;  %v2247_v44 = vor.u32 %v2246_v29, %v2243_v25  ;;  %v2256_v45 = vrot.slane %v2254_v31, 4  ;;  %v2260_v47 = vshll.u32 %v6984_v9, 16  ;;  %v7022_v29 = vld [vmem:[%s6763_s28 + $0x70] sm:$0xf] }
  0x57   : > { %v461_v26 = vshrl.u32 %v6988_v19, 16  ;;  %v449_v48 = vsel %vm6789_vm4, %v444_v39, %v448_v0  ;;  %v454_v49 = vrot.slane %v453_v42, 4  ;;  %v464_v51 = vshll.u32 %v6988_v19, 16  ;;  %v7009_v0 = vld [vmem:[%s6763_s28 + $0x6c] sm:$0xf] }
  0x58   : > { %6157 = vmatprep.mubr.msk.bf16.mxu0 %vm702_vm3, %v5390_v38  ;;  %v470_v52 = vshll.u32 %v6994_v35, 16  ;;  %v2248_v53 = vrot.slane %v2247_v44, 4  ;;  %v2257_v55 = vor.u32 %v2256_v45, %v2252_v43  ;;  %v2262_v56 = vrot.slane %v2260_v47, 5 }
  0x59   : > { %v463_v57 = vrot.slane %v461_v26, 4  ;;  %v459_v61 = vsel %vm6789_vm4, %v454_v49, %v458_v14  ;;  %v466_v2 = vrot.slane %v464_v51, 5  ;;  %v474_v6 = vshrl.u32 %v6994_v35, 16  ;;  %v258_v26 = vld [vmem:[%s6763_s28 + $0x74] sm:$0x1] }
  0x5a   : > { %v472_v5 = vrot.slane %v470_v52, 5  ;;  %v5164_v7 = vcombine.low %v449_v48, %v459_v61  ;;  %v2253_v17 = vsel %vm6789_vm4, %v2248_v53, %v2252_v43  ;;  %v2258_v10 = vrot.slane %v2257_v55, 4  ;;  %v5417_v48 = vld [vmem:[%s6763_s28 + $0x18] sm:$0xe] }
  0x5b   : > { %v480_v11 = vshll.u32 %v257_v50, 16  ;;  %v467_v14 = vor.u32 %v466_v2, %v463_v57  ;;  %v476_v18 = vrot.slane %v474_v6, 4  ;;  %v5432_v21 = vrot.slane %v5416_v58, 9  ;;  %v7041_v53 = vld [vmem:[%s6763_s28 + $0x78] sm:$0xf] }
  0x5c   : > { %v2818_v25 = vrot.slane %v2816_v62, 4  ;;  %6022 = vmatmul.mubr.msk.bf16.gmra.mrb[12].mxu1 %vm702_vm3, %v5164_v7  ;;  %v2263_v31 = vsel %vm6789_vm4, %v2258_v10, %v2262_v56  ;;  %v485_v39 = vshrl.u32 %v7009_v0, 16  ;;  %v488_v42 = vshll.u32 %v7009_v0, 16  ;;  %v259_v57 = vld [vmem:[%s6763_s28 + $0x80] sm:$0x1] }
  0x5d   : > { %v482_v38 = vrot.slane %v480_v11, 5  ;;  %v5391_v43 = vcombine.low %v2253_v17, %v2263_v31  ;;  %v468_v44 = vrot.slane %v467_v14, 4  ;;  %v477_v45 = vor.u32 %v476_v18, %v472_v5  ;;  %v5418_v10 = vld [vmem:[%s6763_s28 + $0x24] sm:$0xe] }
  0x5e   : > { %v2817_v47 = vsel %vm7015_vm7, %v5432_v21, %v2816_v62  ;;  %v2820_v49 = vsel %vm7015_vm7, %v2818_v25, %v2819_v63  ;;  %v487_v50 = vrot.slane %v485_v39, 4  ;;  %v490_v51 = vrot.slane %v488_v42, 5  ;;  %v7067_v39 = vld [vmem:[%s6763_s28 + $0x84] sm:$0xf] }
  0x5f   : > { %v494_v52 = vshll.u32 %v7022_v29, 16  ;;  %6158 = vmatmul.mubr.msk.bf16.gmra.mrb[12].mxu0 %vm702_vm3, %v5391_v43  ;;  %v473_v15 = vsel %vm6789_vm4, %v468_v44, %v472_v5  ;;  %v478_v62 = vrot.slane %v477_v45, 4  ;;  %v5449_v55 = vcombine.low %v2817_v47, %v2820_v49  ;;  %v7075_v43 = vld [vmem:[%s6763_s28 + $0x88] sm:$0xf] }
  0x60   : > { %v498_v56 = vshrl.u32 %v7022_v29, 16  ;;  %v491_v63 = vor.u32 %v490_v51, %v487_v50  ;;  %v504_v61 = vshll.u32 %v258_v26, 16  ;;  %v5433_v2 = vrot.slane %v5417_v48, 9 }
  0x61   : > { %v496_v58 = vrot.slane %v494_v52, 5  ;;  %v483_v6 = vsel %vm6789_vm4, %v478_v62, %v482_v38  ;;  %6179 = vmatprep.mubr.msk.bf16.mxu0 %vm702_vm3, %v5449_v55  ;;  %v2827_v5 = vsel %vm7015_vm7, %v6832_v30, %v2826_v28  ;;  %v509_v17 = vshrl.u32 %v7041_v53, 16  ;;  %v260_v52 = vld [vmem:[%s6763_s28 + $0x8c] sm:$0x1] }
  0x62   : > { %v500_v7 = vrot.slane %v498_v56, 4  ;;  %v5165_v11 = vcombine.low %v473_v15, %v483_v6  ;;  %v492_v14 = vrot.slane %v491_v63, 4  ;;  %v506_v18 = vrot.slane %v504_v61, 5 }
  0x63   : > { %v2824_v21 = vsel %vm7015_vm7, %v5433_v2, %v2823_v22  ;;  %v511_v38 = vrot.slane %v509_v17, 4  ;;  %v512_v1 = vshll.u32 %v7041_v53, 16  ;;  %v518_v30 = vshll.u32 %v7048_v16, 16  ;;  %v7080_v22 = vld [vmem:[%s8485_s1 + $0xe] sm:$0x3] }
  0x64   : > { %v501_v25 = vor.u32 %v500_v7, %v496_v58  ;;  %v5450_v31 = vcombine.low %v2824_v21, %v2827_v5  ;;  %6025 = vmatprep.mubr.msk.bf16.mxu1 %vm702_vm3, %v5165_v11  ;;  %v497_v28 = vsel %vm6789_vm4, %v492_v14, %v496_v58  ;;  %v522_v60 = vshrl.u32 %v7048_v16, 16  ;;  %v7099_v5 = vld [vmem:[%s6763_s28 + $0x90] sm:$0xf] }
  0x65   : > { %v528_v42 = vshll.u32 %v259_v57, 16  ;;  %v514_v45 = vrot.slane %v512_v1, 5  ;;  %v5434_v47 = vrot.slane %v5418_v10, 9  ;;  %v2830_v26 = vrot.slane %v6839_v46, 5  ;;  %v5419_v57 = vld [vmem:[%s6763_s28 + $0x30] sm:$0xe] }
  0x66   : > { %v502_v44 = vrot.slane %v501_v25, 4  ;;  %v520_v48 = vrot.slane %v518_v30, 5  ;;  %v524_v49 = vrot.slane %v522_v60, 4  ;;  %v2833_v51 = vrot.slane %v6848_v54, 5  ;;  %v7111_v30 = vld [vmem:[%s6763_s28 + $0x94] sm:$0xf] }
  0x67   : > { %v530_v50 = vrot.slane %v528_v42, 5  ;;  %6180 = vmatmul.mubr.msk.bf16.vlgmr.msra.gmra.mrb[0].mxu0 %vm702_vm3, %v5450_v31  ;;  %v515_v62 = vor.u32 %v514_v45, %v511_v38  ;;  %v2831_v55 = vsel %vm7015_vm7, %v5434_v47, %v2830_v26  ;;  %v2832_v56 = vrot.slane %v2830_v26, 4  ;;  %v261_v60 = vld [vmem:[%s6763_s28 + $0x98] sm:$0x1]  ;;  %v5420_v26 = vld [vmem:[%s6763_s28 + $0x3c] sm:$0xe] }
  0x68   : > { %v507_v15 = vsel %vm6789_vm4, %v502_v44, %v506_v18  ;;  %6212 = vmatpush3.bf16.msra.mxu0 %v6799_v41  ;;  %v525_v46 = vor.u32 %v524_v49, %v520_v48  ;;  %v533_v58 = vshrl.u32 %v7067_v39, 16  ;;  %v536_v54 = vshll.u32 %v7067_v39, 16 }
  0x69   : > { %v5166_v63 = vcombine.low %v497_v28, %v507_v15  ;;  %v516_v61 = vrot.slane %v515_v62, 4  ;;  %v2834_v2 = vsel %vm7015_vm7, %v2832_v56, %v2833_v51  ;;  %v542_v6 = vshll.u32 %v7075_v43, 16  ;;  %6579 = vmatprep.subr.msk.bf16.mxu0 %vm751_vm0, %v7080_v22 }
  0x6a   : > { %v546_v7 = vshrl.u32 %v7075_v43, 16  ;;  %v526_v41 = vrot.slane %v525_v46, 4  ;;  %v5451_v17 = vcombine.low %v2831_v55, %v2834_v2  ;;  %v535_v10 = vrot.slane %v533_v58, 4  ;;  %v7131_v46 = vld [vmem:[%s6763_s28 + $0xa0] sm:$0xf] }
  0x6b   : > { %6026 = vmatmul.mubr.msk.bf16.gmra.mrb[16].mxu1 %vm702_vm3, %v5166_v63  ;;  %v538_v11 = vrot.slane %v536_v54, 5  ;;  %v521_v14 = vsel %vm6789_vm4, %v516_v61, %v520_v48  ;;  %v544_v18 = vrot.slane %v542_v6, 5  ;;  %v552_v25 = vshll.u32 %v260_v52, 16  ;;  %v7120_v52 = vld [vmem:[%s6763_s28 + $0x9c] sm:$0xf] }
  0x6c   : > { %v548_v21 = vrot.slane %v546_v7, 4  ;;  %v531_v31 = vsel %vm6789_vm4, %v526_v41, %v530_v50  ;;  %6183 = vmatprep.mubr.msk.bf16.mxu0 %vm702_vm3, %v5451_v17  ;;  %v5435_v1 = vrot.slane %v5419_v57, 9  ;;  %v2837_v28 = vrot.slane %v6868_v33, 5 }
  0x6d   : > { %v539_v38 = vor.u32 %v538_v11, %v535_v10  ;;  %v5167_v42 = vcombine.low %v521_v14, %v531_v31  ;;  %v554_v45 = vrot.slane %v552_v25, 5  ;;  %v2840_v47 = vrot.slane %v6876_v40, 5  ;;  %v262_v10 = vld [vmem:[%s6763_s28 + $0xa4] sm:$0x1]  ;;  %v5421_v11 = vld [vmem:[%s6763_s28 + $0x48] sm:$0xe] }
  0x6e   : > { %v549_v44 = vor.u32 %v548_v21, %v544_v18  ;;  %v2838_v49 = vsel %vm7015_vm7, %v5435_v1, %v2837_v28  ;;  %v2839_v50 = vrot.slane %v2837_v28, 4  ;;  %v557_v51 = vshrl.u32 %v7099_v5, 16 }
  0x6f   : > { %v540_v48 = vrot.slane %v539_v38, 4  ;;  %6029 = vmatprep.mubr.msk.bf16.mxu1 %vm702_vm3, %v5167_v42  ;;  %v560_v15 = vshll.u32 %v7099_v5, 16  ;;  %v566_v62 = vshll.u32 %v7111_v30, 16  ;;  %v570_v40 = vshrl.u32 %v7111_v30, 16 }
  0x70   : > { %v550_v33 = vrot.slane %v549_v44, 4  ;;  %v2841_v56 = vsel %vm7015_vm7, %v2839_v50, %v2840_v47  ;;  %v559_v57 = vrot.slane %v557_v51, 4  ;;  %v576_v63 = vshll.u32 %v261_v60, 16 }
  0x71   : > { %v545_v55 = vsel %vm6789_vm4, %v540_v48, %v544_v18  ;;  %v5452_v54 = vcombine.low %v2838_v49, %v2841_v56  ;;  %v562_v61 = vrot.slane %v560_v15, 5  ;;  %v568_v2 = vrot.slane %v566_v62, 5  ;;  %v7157_v56 = vld [vmem:[%s6763_s28 + $0xac] sm:$0xf] }
  0x72   : > { %v555_v58 = vsel %vm6789_vm4, %v550_v33, %v554_v45  ;;  %v572_v7 = vrot.slane %v570_v40, 4  ;;  %v578_v41 = vrot.slane %v576_v63, 5  ;;  %v5436_v17 = vrot.slane %v5420_v26, 9  ;;  %v7152_v33 = vld [vmem:[%s6763_s28 + $0xa8] sm:$0xf] }
  0x73   : > { %v5168_v6 = vcombine.low %v545_v55, %v555_v58  ;;  %6184 = vmatmul.mubr.msk.bf16.gmra.mrb[4].mxu0 %vm702_vm3, %v5452_v54  ;;  %v563_v14 = vor.u32 %v562_v61, %v559_v57  ;;  %v2844_v18 = vrot.slane %v6893_v20, 5  ;;  %v2847_v21 = vrot.slane %v6898_v34, 5  ;;  %v263_v61 = vld [vmem:[%s6763_s28 + $0xb0] sm:$0x1] }
  0x74   : > { %v581_v25 = vshrl.u32 %v7120_v52, 16  ;;  %v573_v31 = vor.u32 %v572_v7, %v568_v2  ;;  %v584_v38 = vshll.u32 %v7120_v52, 16  ;;  %v590_v1 = vshll.u32 %v7131_v46, 16 }
  0x75   : > { %6030 = vmatmul.mubr.msk.bf16.gmra.mrb[20].mxu1 %vm702_vm3, %v5168_v6  ;;  %v594_v28 = vshrl.u32 %v7131_v46, 16  ;;  %v564_v60 = vrot.slane %v563_v14, 4  ;;  %v2845_v42 = vsel %vm7015_vm7, %v5436_v17, %v2844_v18  ;;  %v2846_v20 = vrot.slane %v2844_v18, 4  ;;  %v7172_v14 = vld [vmem:[%s6763_s28 + $0xb4] sm:$0xf] }
  0x76   : > { %v583_v44 = vrot.slane %v581_v25, 4  ;;  %v574_v34 = vrot.slane %v573_v31, 4  ;;  %v586_v45 = vrot.slane %v584_v38, 5  ;;  %v592_v47 = vrot.slane %v590_v1, 5 }
  0x77   : > { %v596_v26 = vrot.slane %v594_v28, 4  ;;  %v569_v48 = vsel %vm6789_vm4, %v564_v60, %v568_v2  ;;  %v2848_v49 = vsel %vm7015_vm7, %v2846_v20, %v2847_v21  ;;  %v600_v50 = vshll.u32 %v262_v10, 16  ;;  %v5422_v2 = vld [vmem:[%s6763_s28 + $0x54] sm:$0xe] }
  0x78   : > { %v5437_v51 = vrot.slane %v5421_v11, 9  ;;  %v579_v15 = vsel %vm6789_vm4, %v574_v34, %v578_v41  ;;  %v5453_v62 = vcombine.low %v2845_v42, %v2848_v49  ;;  %v587_v40 = vor.u32 %v586_v45, %v583_v44  ;;  %v7181_v42 = vld [vmem:[%s6763_s28 + $0xb8] sm:$0xf]  ;;  %v264_v49 = vld [vmem:[%s6763_s28 + $0xbc] sm:$0x1] }
  0x79   : > { %v597_v55 = vor.u32 %v596_v26, %v592_v47  ;;  %v5169_v57 = vcombine.low %v569_v48, %v579_v15  ;;  %v602_v63 = vrot.slane %v600_v50, 5  ;;  %v2851_v58 = vrot.slane %v6916_v8, 5 }
  0x7a   : > { %v2854_v54 = vrot.slane %v6924_v23, 5  ;;  %6187 = vmatprep.mubr.msk.bf16.mxu0 %vm702_vm3, %v5453_v62  ;;  %v588_v6 = vrot.slane %v587_v40, 4  ;;  %v605_v41 = vshrl.u32 %v7152_v33, 16  ;;  %v608_v17 = vshll.u32 %v7152_v33, 16 }
  0x7b   : > { %v598_v7 = vrot.slane %v597_v55, 4  ;;  %6033 = vmatprep.mubr.msk.bf16.mxu1 %vm702_vm3, %v5169_v57  ;;  %v2852_v10 = vsel %vm7015_vm7, %v5437_v51, %v2851_v58  ;;  %v2853_v11 = vrot.slane %v2851_v58, 4  ;;  %v614_v8 = vshll.u32 %v7157_v56, 16  ;;  %v5423_v55 = vld [vmem:[%s6763_s28 + $0x60] sm:$0xe] }
  0x7c   : > { %v618_v23 = vshrl.u32 %v7157_v56, 16  ;;  %v593_v18 = vsel %vm6789_vm4, %v588_v6, %v592_v47  ;;  %v607_v25 = vrot.slane %v605_v41, 4  ;;  %v610_v31 = vrot.slane %v608_v17, 5  ;;  %v5424_v6 = vld [vmem:[%s6763_s28 + $0x6c] sm:$0xe] }
  0x7d   : > { %v603_v21 = vsel %vm6789_vm4, %v598_v7, %v602_v63  ;;  %v2855_v1 = vsel %vm7015_vm7, %v2853_v11, %v2854_v54  ;;  %v616_v28 = vrot.slane %v614_v8, 5  ;;  %v624_v34 = vshll.u32 %v263_v61, 16  ;;  %v5360_v11 = vld [vmem:[%s6763_s28 + $0x70] sm:$0xf]  ;;  %v5361_v8 = vld [vmem:[%s6763_s28 + $0x74] sm:$0x1] }
  0x7e   : > { %v5170_v38 = vcombine.low %v593_v18, %v603_v21  ;;  %v620_v60 = vrot.slane %v618_v23, 4  ;;  %v5454_v20 = vcombine.low %v2852_v10, %v2855_v1  ;;  %v611_v44 = vor.u32 %v610_v31, %v607_v25 }
  0x7f   : > { %v5438_v45 = vrot.slane %v5422_v2, 9  ;;  %v2858_v26 = vrot.slane %v6947_v4, 5  ;;  %v2861_v48 = vrot.slane %v6953_v12, 5  ;;  %v629_v50 = vshrl.u32 %v7172_v14, 16 }
  0x80   : > { %6034 = vmatmul.mubr.msk.bf16.gmra.mrb[24].mxu1 %vm702_vm3, %v5170_v38  ;;  %v621_v47 = vor.u32 %v620_v60, %v616_v28  ;;  %6188 = vmatmul.mubr.msk.bf16.gmra.mrb[8].mxu0 %vm702_vm3, %v5454_v20  ;;  %v612_v51 = vrot.slane %v611_v44, 4  ;;  %v626_v15 = vrot.slane %v624_v34, 5  ;;  %v632_v62 = vshll.u32 %v7172_v14, 16 }
  0x81   : > { %v638_v40 = vshll.u32 %v7181_v42, 16  ;;  %v2859_v4 = vsel %vm7015_vm7, %v5438_v45, %v2858_v26  ;;  %v2860_v12 = vrot.slane %v2858_v26, 4  ;;  %v631_v63 = vrot.slane %v629_v50, 4 }
  0x82   : > { %v622_v57 = vrot.slane %v621_v47, 4  ;;  %v617_v58 = vsel %vm6789_vm4, %v612_v51, %v616_v28  ;;  %v634_v54 = vrot.slane %v632_v62, 5  ;;  %v642_v2 = vshrl.u32 %v7181_v42, 16  ;;  %v5425_v47 = vld [vmem:[%s6763_s28 + $0x78] sm:$0xe] }
  0x83   : > { %v640_v61 = vrot.slane %v638_v40, 5  ;;  %v2862_v41 = vsel %vm7015_vm7, %v2860_v12, %v2861_v48  ;;  %v648_v17 = vshll.u32 %v264_v49, 16  ;;  %v5439_v10 = vrot.slane %v5423_v55, 9  ;;  %v6638_v51 = vld [vmem:[%s6763_s28] sm:$0xf] }
  0x84   : > { %v627_v7 = vsel %vm6789_vm4, %v622_v57, %v626_v15  ;;  %v5455_v18 = vcombine.low %v2859_v4, %v2862_v41  ;;  %v635_v21 = vor.u32 %v634_v54, %v631_v63  ;;  %v644_v25 = vrot.slane %v642_v2, 4  ;;  %v7219_v15 = vld [vmem:[%s6763_s28 + $0x4] sm:$0xf]  ;;  %v7223_v40 = vld [vmem:[%s6763_s28 + $0x7c] sm:$0xf] }
  0x85   : > { %v5171_v23 = vcombine.low %v617_v58, %v627_v7  ;;  %v650_v31 = vrot.slane %v648_v17, 5  ;;  %v2865_v38 = vrot.slane %v6977_v59, 5  ;;  %v2868_v1 = vrot.slane %v6984_v9, 5  ;;  %v7226_v55 = vld [vmem:[%s6763_s28 + $0x80] sm:$0x1] }
  0x86   : > { %v5440_v28 = vrot.slane %v5424_v6, 9  ;;  %6191 = vmatprep.mubr.msk.bf16.mxu0 %vm702_vm3, %v5455_v18  ;;  %v636_v60 = vrot.slane %v635_v21, 4  ;;  %v645_v20 = vor.u32 %v644_v25, %v640_v61  ;;  %v2872_v44 = vrot.slane %v5360_v11, 5  ;;  %v5366_v57 = vld [vmem:[%s6763_s28 + $0x88] sm:$0xf] }
  0x87   : > { %6037 = vmatprep.mubr.msk.bf16.mxu1 %vm702_vm3, %v5171_v23  ;;  %v2875_v34 = vrot.slane %v5361_v8, 5  ;;  %v2866_v45 = vsel %vm7015_vm7, %v5439_v10, %v2865_v38  ;;  %v2867_v59 = vrot.slane %v2865_v38, 4  ;;  %v5189_v62 = vcombine.low %v6638_v51, %v7219_v15  ;;  %v5367_v54 = vld [vmem:[%s6763_s28 + $0x8c] sm:$0x1]  ;;  %v5369_v17 = vld [vmem:[%s6763_s28 + $0x94] sm:$0xf] }
  0x88   : > { %v641_v9 = vsel %vm6789_vm4, %v636_v60, %v640_v61  ;;  %v646_v26 = vrot.slane %v645_v20, 4  ;;  %v2873_v48 = vsel %vm7015_vm7, %v5440_v28, %v2872_v44  ;;  %v2874_v49 = vrot.slane %v2872_v44, 4  ;;  %v5426_v61 = vld [vmem:[%s6763_s28 + $0x84] sm:$0xe]  ;;  %v5427_v23 = vld [vmem:[%s6763_s28 + $0x90] sm:$0xe] }
  0x89   : > { %v2869_v50 = vsel %vm7015_vm7, %v2867_v59, %v2868_v1  ;;  %v5441_v58 = vrot.slane %v5425_v47, 9  ;;  %v2879_v7 = vrot.slane %v7223_v40, 5  ;;  %v2882_v41 = vrot.slane %v7226_v55, 5  ;;  %v5370_v25 = vld [vmem:[%s6763_s28 + $0x98] sm:$0x1] }
  0x8a   : > { %v651_v4 = vsel %vm6789_vm4, %v646_v26, %v650_v31  ;;  %v5456_v12 = vcombine.low %v2866_v45, %v2869_v50  ;;  %v2876_v63 = vsel %vm7015_vm7, %v2874_v49, %v2875_v34  ;;  %v5442_v10 = vrot.slane %v5426_v61, 9  ;;  %v5372_v31 = vld [vmem:[%s6763_s28 + $0xa0] sm:$0xf]  ;;  %v5373_v60 = vld [vmem:[%s6763_s28 + $0xa4] sm:$0x1] }
  0x8b   : > { %v5172_v2 = vcombine.low %v641_v9, %v651_v4  ;;  %v5457_v6 = vcombine.low %v2873_v48, %v2876_v63  ;;  %v2886_v11 = vrot.slane %v5366_v57, 5  ;;  %v2889_v8 = vrot.slane %v5367_v54, 5  ;;  %v5428_v20 = vld [vmem:[%s6763_s28 + $0x9c] sm:$0xe]  ;;  %v6640_v44 = vld [vmem:[%s6763_s28 + $0xc] sm:$0xf] }
  0x8c   : > { %6192 = vmatmul.mubr.msk.bf16.gmra.mrb[12].mxu0 %vm702_vm3, %v5456_v12  ;;  %v2880_v18 = vsel %vm7015_vm7, %v5441_v58, %v2879_v7  ;;  %v2881_v21 = vrot.slane %v2879_v7, 4  ;;  %v2893_v28 = vrot.slane %v5369_v17, 5  ;;  %v7253_v34 = vld [vmem:[%s6763_s28 + $0x10] sm:$0xf]  ;;  %v6642_v47 = vld [vmem:[%s6763_s28 + $0x18] sm:$0xf] }
  0x8d   : > { %6038 = vmatmul.mubr.msk.bf16.gmra.mrb[28].mxu1 %vm702_vm3, %v5172_v2  ;;  %6195 = vmatprep.mubr.msk.bf16.mxu0 %vm702_vm3, %v5457_v6  ;;  %v2887_v38 = vsel %vm7015_vm7, %v5442_v10, %v2886_v11  ;;  %v2888_v1 = vrot.slane %v2886_v11, 4  ;;  %v5190_v45 = vcombine.low %v6640_v44, %v7253_v34  ;;  %v7260_v9 = vld [vmem:[%s6763_s28 + $0x1c] sm:$0xf]  ;;  %v5443_v48 = vrot.slane %v5427_v23, 9  ;;  %v5375_v57 = vld [vmem:[%s6763_s28 + $0xac] sm:$0xf] }
  0x8e   : > { %6043 = vmatprep.mubr.msk.bf16.mxu1 %vm702_vm3, %v5189_v62  ;;  %v2883_v59 = vsel %vm7015_vm7, %v2881_v21, %v2882_v41  ;;  %v5191_v26 = vcombine.low %v6642_v47, %v7260_v9  ;;  %v2895_v51 = vrot.slane %v2893_v28, 4  ;;  %v2896_v62 = vrot.slane %v5370_v25, 5  ;;  %v6644_v54 = vld [vmem:[%s8485_s1 + $0x4] sm:$0x3]  ;;  %v5378_v2 = vld [vmem:[%s6763_s28 + $0xb8] sm:$0xf] }
  0x8f   : > { %v5458_v49 = vcombine.low %v2880_v18, %v2883_v59  ;;  %v2890_v50 = vsel %vm7015_vm7, %v2888_v1, %v2889_v8  ;;  %v5444_v12 = vrot.slane %v5428_v20, 9  ;;  %v2900_v63 = vrot.slane %v5372_v31, 5  ;;  %v7275_v7 = vld [vmem:[%s8485_s1 + $0x6] sm:$0x3]  ;;  %v5376_v10 = vld [vmem:[%s6763_s28 + $0xb0] sm:$0x1] }
  0x90   : > { %v5459_v4 = vcombine.low %v2887_v38, %v2890_v50  ;;  %v2903_v58 = vrot.slane %v5373_v60, 5  ;;  %v1470_v61 = vsel %vm751_vm0, %v6644_v54, 0  ;;  %v2894_v41 = vsel %vm7015_vm7, %v5443_v48, %v2893_v28  ;;  %v5429_v11 = vld [vmem:[%s6763_s28 + $0xa8] sm:$0xe]  ;;  %v5379_v25 = vld [vmem:[%s6763_s28 + $0xbc] sm:$0x1] }
  0x91   : > { %v2902_v6 = vrot.slane %v2900_v63, 4  ;;  %v2897_v17 = vsel %vm7015_vm7, %v2895_v51, %v2896_v62  ;;  %v2907_v8 = vrot.slane %v5375_v57, 5  ;;  %v2901_v23 = vsel %vm7015_vm7, %v5444_v12, %v2900_v63  ;;  %v5430_v31 = vld [vmem:[%s6763_s28 + $0xb4] sm:$0xe]  ;;  %v6645_v38 = vld [vmem:[%s6763_s28 + $0x24] sm:$0xf] }
  0x92   : > { %v2914_v21 = vrot.slane %v5378_v2, 5  ;;  %v7296_v1 = vld [vmem:[%s6763_s28 + $0x28] sm:$0xf]  ;;  %v5460_v60 = vcombine.low %v2894_v41, %v2897_v17  ;;  %v5445_v44 = vrot.slane %v5429_v11, 9  ;;  %v2910_v59 = vrot.slane %v5376_v10, 5 }
  0x93   : > { %v2904_v18 = vsel %vm7015_vm7, %v2902_v6, %v2903_v58  ;;  %v5192_v28 = vcombine.low %v6645_v38, %v7296_v1  ;;  %v6647_v47 = vld [vmem:[%s6763_s28 + $0x30] sm:$0xf]  ;;  %v2917_v51 = vrot.slane %v5379_v25, 5  ;;  %v5381_v62 = vld [vmem:[%s6763_s28 + $0xc4] sm:$0xf]  ;;  %v2302_v25 = vshrl.u32 %v7223_v40, 16 }
  0x94   : > { %6196 = vmatmul.mubr.msk.bf16.gmra.mrb[16].mxu0 %vm702_vm3, %v5458_v49  ;;  %v5461_v20 = vcombine.low %v2901_v23, %v2904_v18  ;;  %v5446_v49 = vrot.slane %v5430_v31, 9  ;;  %v2916_v50 = vrot.slane %v2914_v21, 4  ;;  %v2908_v57 = vsel %vm7015_vm7, %v5445_v44, %v2907_v8  ;;  %v5431_v12 = vld [vmem:[%s6763_s28 + $0xc0] sm:$0xe]  ;;  %v6649_v41 = vld [vmem:[%s6763_s28 + $0x3c] sm:$0xf] }
  0x95   : > { %6044 = vmatmul.mubr.msk.bf16.vlgmr.msra.gmra.mrb[0].mxu1 %vm702_vm3, %v5190_v45  ;;  %6199 = vmatprep.mubr.msk.bf16.mxu0 %vm702_vm3, %v5459_v4  ;;  %v2909_v45 = vrot.slane %v2907_v8, 4  ;;  %v2921_v63 = vrot.slane %v5381_v62, 5  ;;  %v5447_v6 = vrot.slane %v5431_v12, 9  ;;  %v7321_v17 = vld [vmem:[%s6763_s28 + $0x40] sm:$0xf]  ;;  %v5195_v18 = vcombine.low %v6928_v27, %v6931_v36  ;;  %v6601_v62 = vld [vmem:[%s6763_s28 + $0x24] sm:$0xff]  }
  0x96   : > { %6076 = vmatpush3.bf16.msra.mxu1 %v1470_v61  ;;  %6047 = vmatprep.mubr.msk.bf16.mxu1 %vm702_vm3, %v5191_v26  ;;  %v7301_v26 = vld [vmem:[%s6763_s28 + $0x34] sm:$0xf]  ;;  %v2915_v58 = vsel %vm7015_vm7, %v5446_v49, %v2914_v21  ;;  %v2918_v54 = vsel %vm7015_vm7, %v2916_v50, %v2917_v51  ;;  %v5382_v61 = vld [vmem:[%s6763_s28 + $0xc8] sm:$0x1]  ;;  %v5194_v10 = vcombine.low %v6649_v41, %v7321_v17  ;;  %v2298_v21 = vshll.u32 %v7223_v40, 16 }
  0x97   : > { %6574 = vmatprep.subr.msk.bf16.mxu1 %vm751_vm0, %v7275_v7  ;;  %v5193_v48 = vcombine.low %v6647_v47, %v7301_v26  ;;  %v2911_v4 = vsel %vm7015_vm7, %v2909_v45, %v2910_v59  ;;  %v5463_v11 = vcombine.low %v2915_v58, %v2918_v54  ;;  %v2923_v8 = vrot.slane %v2921_v63, 4  ;;  %v1208_v45 = vld [vmem:[%s6763_s28] sm:$0xe]  ;;  %v1209_v59 = vld [vmem:[%s6763_s28 + $0xc] sm:$0xe] }
  0x98   : > { %v5462_v2 = vcombine.low %v2908_v57, %v2911_v4  ;;  %v2924_v23 = vrot.slane %v5382_v61, 5  ;;  %v2922_v31 = vsel %vm7015_vm7, %v5447_v6, %v2921_v63  ;;  %v7336_v27 = vrot.slane %v2298_v21, 5  ;;  %v1212_v41 = vld [vmem:[%s6763_s28 + $0x30] sm:$0xe] }
  0x99   : > { %v2304_v36 = vrot.slane %v2302_v25, 4  ;;  %v5197_v44 = vcombine.low %v6988_v19, %v6994_v35  ;;  %v2308_v47 = vshll.u32 %v7226_v55, 16  ;;  %v5221_v19 = vrot.slane %v1208_v45, 9 }
  0x9a   : > { %v2925_v38 = vsel %vm7015_vm7, %v2923_v8, %v2924_v23  ;;  %8507 = vst [vmem:[#allocation3_spill] sm:$0xff] %v7336_v27  ;;  %v5222_v35 = vrot.slane %v1209_v59, 9  ;;  %v1275_v4 = vrot.slane %v7260_v9, 5  ;;  %v1282_v12 = vrot.slane %v7296_v1, 5  ;;  %v1213_v8 = vld [vmem:[%s6763_s28 + $0x3c] sm:$0xe] }
  0x9b   : > { %v5464_v40 = vcombine.low %v2922_v31, %v2925_v38  ;;  %v2305_v49 = vor.u32 %v2304_v36, %v7336_v27  ;;  %v7356_v51 = vrot.slane %v2308_v47, 5  ;;  %v5198_v58 = vcombine.low %v7009_v0, %v7022_v29  ;;  %v1214_v31 = vld [vmem:[%s6763_s28 + $0x48] sm:$0xe]  ;;  %v6655_v59 = vld [vmem:[%s6763_s28 + $0x38] sm:$0x1] }
  0x9c   : > { %6200 = vmatmul.mubr.msk.bf16.gmra.mrb[20].mxu0 %vm702_vm3, %v5460_v60  ;;  %v5196_v60 = vcombine.low %v6957_v24, %v6963_v37  ;;  %v6652_v24 = vld [vmem:[%s6763_s28 + $0x14] sm:$0x1]  ;;  %v4110_v54 = vsel %vm751_vm0, %v7080_v22, 0  ;;  %v5199_v61 = vcombine.low %v7041_v53, %v7048_v16  ;;  %v5200_v6 = vcombine.low %v7067_v39, %v7075_v43  ;;  %v6653_v16 = vld [vmem:[%s6763_s28 + $0x20] sm:$0x1] }
  0x9d   : > { %6048 = vmatmul.mubr.msk.bf16.gmra.mrb[4].mxu1 %vm702_vm3, %v5192_v28  ;;  %6203 = vmatprep.mubr.msk.bf16.mxu0 %vm702_vm3, %v5461_v20  ;;  %v1268_v28 = vrot.slane %v7253_v34, 5  ;;  %v6599_v20 = vld [vmem:[%s6763_s28 + $0x18] sm:$0xff]   ;;  %v6651_v34 = vld [vmem:[%s6763_s28 + $0x8] sm:$0x1]  ;;  %v1271_v37 = vrot.slane %v6652_v24, 5  ;;  %8508 = vst [vmem:[#allocation4_spill] sm:$0xff] %v7356_v51  ;;  %v5201_v9 = vcombine.low %v7099_v5, %v7111_v30 }
  0x9e   : > { %6051 = vmatprep.mubr.msk.bf16.mxu1 %vm702_vm3, %v5193_v48  ;;  %v1261_v48 = vrot.slane %v7219_v15, 5  ;;  %v1264_v50 = vrot.slane %v6651_v34, 5  ;;  %v1210_v15 = vld [vmem:[%s6763_s28 + $0x18] sm:$0xe]  ;;  %v7361_v63 = vrot.slane %v2305_v49, 4  ;;  %v1278_v22 = vrot.slane %v6653_v16, 5 }
  0x9f   : > { %v1270_v55 = vrot.slane %v1268_v28, 4  ;;  %v5223_v1 = vrot.slane %v1210_v15, 9  ;;  %v7383_v29 = vsel %vm7015_vm7, %v5222_v35, %v1268_v28  ;;  %v1284_v25 = vrot.slane %v1282_v12, 4  ;;  %v5546_v24 = vld [vmem:[%s6763_s28 + $0x18] sm:$0xf] }
  0xa0   : > { %v1263_v57 = vrot.slane %v1261_v48, 4  ;;  %8509 = vst [vmem:[#allocation5_spill] sm:$0xff] %v7361_v63  ;;  %v7379_v0 = vsel %vm7015_vm7, %v5221_v19, %v1261_v48  ;;  %v1292_v47 = vrot.slane %v6655_v59, 5  ;;  %v7420_v49 = vsel %vm751_vm0, %v7275_v7, 0  ;;  %v5547_v7 = vld [vmem:[%s6763_s28 + $0x1c] sm:$0xf] }
  0xa1   : > { %v7387_v53 = vsel %vm7015_vm7, %v1270_v55, %v1271_v37  ;;  %v7424_v34 = vsel %vm7015_vm7, %v5223_v1, %v1275_v4  ;;  %v6605_v37 = vld [vmem:[%s6763_s28 + $0x3c] sm:$0xff]   ;;  %v5226_v35 = vrot.slane %v1213_v8, 9  ;;  %v6656_v55 = vld [vmem:[%s6763_s28 + $0x44] sm:$0x1]  ;;  %v3631_v8 = vshll.u32 %v5546_v24, 16 }
  0xa2   : > { %v7398_v23 = vsel %vm7015_vm7, %v1263_v57, %v1264_v50  ;;  %v1215_v50 = vld [vmem:[%s6763_s28 + $0x54] sm:$0xe]  ;;  %v1299_v15 = vrot.slane %v6656_v55, 5  ;;  %v5550_v39 = vld [vmem:[%s6763_s28 + $0x28] sm:$0xf] }
  0xa3   : > { %v6663_v5 = vld [vmem:[%s6763_s28 + $0x70] sm:$0xf] }
  0xa4   : > { %6204 = vmatmul.mubr.msk.bf16.gmra.mrb[24].mxu0 %vm702_vm3, %v5462_v2  ;;  %v1211_v2 = vld [vmem:[%s6763_s28 + $0x24] sm:$0xe]  ;;  %v1324_v30 = vrot.slane %v6663_v5, 5 }
  0xa5   : > { %6052 = vmatmul.mubr.msk.bf16.gmra.mrb[8].mxu1 %vm702_vm3, %v5194_v10  ;;  %6207 = vmatprep.mubr.msk.bf16.mxu0 %vm702_vm3, %v5463_v11  ;;  %v1289_v10 = vrot.slane %v7301_v26, 5  ;;  %v6603_v11 = vld [vmem:[%s6763_s28 + $0x30] sm:$0xff]   ;;  %v5224_v21 = vrot.slane %v1211_v2, 9 }
  0xa6   : > { %6055 = vmatprep.mubr.msk.bf16.mxu1 %vm702_vm3, %v5195_v18  ;;  %v7394_v26 = vld [vmem:[%s8485_s1 + $0x10] sm:$0x3]  ;;  %v1277_v18 = vrot.slane %v1275_v4, 4  ;;  %v1326_v48 = vrot.slane %v1324_v30, 4 }
  0xa7   : > { %v1291_v45 = vrot.slane %v1289_v10, 4  ;;  %v7431_v19 = vsel %vm7015_vm7, %v5224_v21, %v1282_v12  ;;  %v3641_v21 = vshrl.u32 %v5547_v7, 16 }
  0xa8   : > { %v7440_v4 = vsel %vm7015_vm7, %v1277_v18, %v1278_v22  ;;  %v3628_v22 = vshrl.u32 %v5546_v24, 16  ;;  %v3637_v18 = vshll.u32 %v5547_v7, 16  ;;  %v5549_v24 = vld [vmem:[%s6763_s28 + $0x24] sm:$0xf] }
  0xa9   : > { %v7453_v1 = vsel %vm7015_vm7, %v1291_v45, %v1292_v47 }
  0xaa   : > { %v3630_v43 = vrot.slane %v3628_v22, 4  ;;  %v7495_v7 = vrot.slane %v3637_v18, 5  ;;  %v3655_v22 = vshll.u32 %v5549_v24, 16  ;;  %v3665_v18 = vshrl.u32 %v5550_v39, 16 }
  0xac   : > { %6208 = vmatmul.mubr.msk.bf16.gmra.mrb[28].mxu0 %vm702_vm3, %v5464_v40  ;;  %v6654_v40 = vld [vmem:[%s6763_s28 + $0x2c] sm:$0x1]  ;;  %v3657_v27 = vrot.slane %v3655_v22, 5 }
  0xad   : > { %6056 = vmatmul.mubr.msk.bf16.gmra.mrb[12].mxu1 %vm702_vm3, %v5196_v60  ;;  %6213 = vmatprep.mubr.msk.bf16.mxu0 %vm702_vm3, %v6599_v20  ;;  %v1285_v28 = vrot.slane %v6654_v40, 5  ;;  %v1296_v60 = vrot.slane %v7321_v17, 5  ;;  %v6659_v40 = vld [vmem:[%s6763_s28 + $0x50] sm:$0x1]  ;;  %v6664_v17 = vld [vmem:[%s6763_s28 + $0x74] sm:$0x1] }
  0xae   : > { %6059 = vmatprep.mubr.msk.bf16.mxu1 %vm702_vm3, %v5197_v44  ;;  %v5225_v44 = vrot.slane %v1212_v41, 9  ;;  %v5228_v41 = vrot.slane %v1215_v50, 9  ;;  %v1216_v50 = vld [vmem:[%s6763_s28 + $0x60] sm:$0xe]  ;;  %v5551_v20 = vld [vmem:[%s6763_s28 + $0x2c] sm:$0x1] }
  0xaf   : > { %v1298_v12 = vrot.slane %v1296_v60, 4  ;;  %v7466_v45 = vsel %vm7015_vm7, %v5226_v35, %v1296_v60  ;;  %v6660_v35 = vld [vmem:[%s6763_s28 + $0x5c] sm:$0x1] }
  0xb0   : > { %v7449_v2 = vsel %vm7015_vm7, %v5225_v44, %v1289_v10  ;;  %v1313_v55 = vrot.slane %v6660_v35, 5  ;;  %v1217_v35 = vld [vmem:[%s6763_s28 + $0x6c] sm:$0xe] }
  0xb1   : > { %v7470_v59 = vsel %vm7015_vm7, %v1298_v12, %v1299_v15  ;;  %v6661_v15 = vld [vmem:[%s6763_s28 + $0x64] sm:$0xf]  ;;  %v3643_v12 = vrot.slane %v3641_v21, 4  ;;  %v5230_v5 = vrot.slane %v1217_v35, 9 }
  0xb2   : > { %v6611_v21 = vld [vmem:[%s6763_s28 + $0x60] sm:$0xff]  }
  0xb4   : > { %6214 = vmatmul.mubr.msk.bf16.vlgmr.msra.gmra.mrb[0].mxu0 %vm702_vm3, %v6601_v62  ;;  %v6657_v62 = vld [vmem:[%s6763_s28 + $0x4c] sm:$0xf] }
  0xb5   : > { %6060 = vmatmul.mubr.msk.bf16.gmra.mrb[16].mxu1 %vm702_vm3, %v5198_v58  ;;  %6246 = vmatpush3.bf16.msra.mxu0 %v4110_v54  ;;  %v1303_v57 = vrot.slane %v6657_v62, 5  ;;  %v7444_v58 = vsel %vm7015_vm7, %v1284_v25, %v1285_v28  ;;  %v5227_v54 = vrot.slane %v1214_v31, 9  ;;  %v1306_v28 = vrot.slane %v6659_v40, 5 }
  0xb6   : > { %6063 = vmatprep.mubr.msk.bf16.mxu1 %vm702_vm3, %v5199_v61  ;;  %6217 = vmatprep.mubr.msk.bf16.mxu0 %vm702_vm3, %v6603_v11  ;;  %v6607_v61 = vld [vmem:[%s6763_s28 + $0x48] sm:$0xff]   ;;  %v6658_v11 = vld [vmem:[%s6763_s28 + $0x58] sm:$0xf]  ;;  %v1317_v62 = vrot.slane %v6661_v15, 5  ;;  %v5553_v15 = vld [vmem:[%s6763_s28 + $0x34] sm:$0xf] }
  0xb7   : > { %6580 = vmatprep.subr.msk.bf16.mxu0 %vm751_vm0, %v7394_v26  ;;  %v1310_v16 = vrot.slane %v6658_v11, 5  ;;  %v1305_v31 = vrot.slane %v1303_v57, 4  ;;  %v7474_v47 = vsel %vm7015_vm7, %v5227_v54, %v1303_v57  ;;  %v5548_v57 = vld [vmem:[%s6763_s28 + $0x20] sm:$0x1]  ;;  %v5552_v54 = vld [vmem:[%s6763_s28 + $0x30] sm:$0xf] }
  0xb8   : > { %v5229_v11 = vrot.slane %v1216_v50, 9  ;;  %v3679_v50 = vshll.u32 %v5552_v54, 16  ;;  %v3647_v25 = vshll.u32 %v5548_v57, 16  ;;  %v3685_v36 = vshll.u32 %v5553_v15, 16 }
  0xb9   : > { %v7485_v60 = vsel %vm7015_vm7, %v5228_v41, %v1310_v16  ;;  %v7501_v41 = vsel %vm7015_vm7, %v1305_v31, %v1306_v28  ;;  %v1319_v31 = vrot.slane %v1317_v62, 4  ;;  %v3676_v28 = vshrl.u32 %v5552_v54, 16 }
  0xba   : > { %v7543_v35 = vrot.slane %v3685_v36, 5 }
  0xbc   : > { %6218 = vmatmul.mubr.msk.bf16.gmra.mrb[4].mxu0 %vm702_vm3, %v6605_v37  ;;  %v1312_v37 = vrot.slane %v1310_v16, 4  ;;  %v6662_v16 = vld [vmem:[%s6763_s28 + $0x68] sm:$0x1] }
  0xbd   : > { %6064 = vmatmul.mubr.msk.bf16.gmra.mrb[20].mxu1 %vm702_vm3, %v5200_v6  ;;  %6221 = vmatprep.mubr.msk.bf16.mxu0 %vm702_vm3, %v6607_v61  ;;  %v3633_v6 = vrot.slane %v3631_v8, 5  ;;  %v6609_v61 = vld [vmem:[%s6763_s28 + $0x54] sm:$0xff]   ;;  %v1320_v40 = vrot.slane %v6662_v16, 5  ;;  %v3661_v8 = vshll.u32 %v5550_v39, 16  ;;  %v3644_v16 = vor.u32 %v3643_v12, %v7495_v7 }
  0xbe   : > { %6067 = vmatprep.mubr.msk.bf16.mxu1 %vm702_vm3, %v5201_v9  ;;  %v3652_v9 = vshrl.u32 %v5549_v24, 16  ;;  %v7510_v44 = vsel %vm7015_vm7, %v1312_v37, %v1313_v55  ;;  %v1327_v24 = vrot.slane %v6664_v17, 5  ;;  %v3689_v39 = vshrl.u32 %v5553_v15, 16 }
  0xbf   : > { %v3634_v10 = vor.u32 %v3633_v6, %v3630_v43  ;;  %v7516_v37 = vrot.slane %v3661_v8, 5  ;;  %v3667_v55 = vrot.slane %v3665_v18, 4  ;;  %v8510_v43 = vcombine.low %v7120_v52, %v7131_v46  ;;  %v6665_v8 = vld [vmem:[%s6763_s28 + $0x7c] sm:$0xf]  ;;  %v7552_v18 = vld [vmem:[%s6763_s28 + $0x38] sm:$0x1] }
  0xc0   : > { %v3654_v38 = vrot.slane %v3652_v9, 4  ;;  %v7525_v17 = vsel %vm7015_vm7, %v5229_v11, %v1317_v62  ;;  %v7529_v57 = vsel %vm7015_vm7, %v1319_v31, %v1320_v40  ;;  %v3678_v6 = vrot.slane %v3676_v28, 4  ;;  %8512 = vst [vmem:[#allocation6_spill] sm:$0xff] %v7552_v18 }
  0xc1   : > { %v3681_v12 = vrot.slane %v3679_v50, 5  ;;  %v8511_v52 = vcombine.low %v7152_v33, %v7157_v56  ;;  %v3635_v46 = vrot.slane %v3634_v10, 4  ;;  %v3645_v54 = vrot.slane %v3644_v16, 4  ;;  %v6613_v33 = vld [vmem:[%s6763_s28 + $0x6c] sm:$0xff]   ;;  %v1219_v16 = vld [vmem:[%s6763_s28 + $0x84] sm:$0xe] }
  0xc2   : > { %v3671_v62 = vshll.u32 %v5551_v20, 16  ;;  %v7537_v11 = vsel %vm7015_vm7, %v5230_v5, %v1324_v30  ;;  %v7541_v40 = vsel %vm7015_vm7, %v1326_v48, %v1327_v24  ;;  %v3691_v9 = vrot.slane %v3689_v39, 4  ;;  %v6614_v48 = vld [vmem:[%s6763_s28 + $0x78] sm:$0xff]  }
  0xc3   : > { %v3658_v10 = vor.u32 %v3657_v27, %v3654_v38  ;;  %v3668_v20 = vor.u32 %v3667_v55, %v7516_v37  ;;  %v1331_v30 = vrot.slane %v6665_v8, 5  ;;  %v3682_v38 = vor.u32 %v3681_v12, %v3678_v6  ;;  %v5555_v5 = vld [vmem:[%s6763_s28 + $0x3c] sm:$0xf] }
  0xc4   : > { %6222 = vmatmul.mubr.msk.bf16.gmra.mrb[8].mxu0 %vm702_vm3, %v6609_v61  ;;  %v3649_v61 = vrot.slane %v3647_v25, 5  ;;  %v1218_v25 = vld [vmem:[%s6763_s28 + $0x78] sm:$0xe]  ;;  %v7568_v50 = vrot.slane %v3671_v62, 5  ;;  %v3692_v39 = vor.u32 %v3691_v9, %v7543_v35  ;;  %v3695_v55 = vshll.u32 %v7552_v18, 16 }
  0xc5   : > { %6068 = vmatmul.mubr.msk.bf16.gmra.mrb[24].mxu1 %vm702_vm3, %v8510_v43  ;;  %6225 = vmatprep.mubr.msk.bf16.mxu0 %vm702_vm3, %v6611_v21  ;;  %v3640_v21 = vsel %vm6789_vm4, %v3635_v46, %v7495_v7  ;;  %v5231_v24 = vrot.slane %v1218_v25, 9  ;;  %v6666_v43 = vld [vmem:[%s6763_s28 + $0x88] sm:$0xf]  ;;  %v7576_v7 = vld [vmem:[%s6763_s28 + $0x40] sm:$0xf]  ;;  %v3659_v12 = vrot.slane %v3658_v10, 4  ;;  %v8514_v62 = vcombine.low %v7172_v14, %v7181_v42 }
  0xc6   : > { %6071 = vmatprep.mubr.msk.bf16.mxu1 %vm702_vm3, %v8511_v52  ;;  %v3650_v31 = vsel %vm6789_vm4, %v3645_v54, %v3649_v61  ;;  %v1338_v6 = vrot.slane %v6666_v43, 5  ;;  %8513 = vst [vmem:[#allocation7_spill] sm:$0xff] %v7576_v7  ;;  %v3669_v52 = vrot.slane %v3668_v20, 4  ;;  %v1333_v46 = vrot.slane %v1331_v30, 4  ;;  %v6667_v54 = vld [vmem:[%s6763_s28 + $0x80] sm:$0x1] }
  0xc7   : > { %v1334_v61 = vrot.slane %v6667_v54, 5  ;;  %v3683_v9 = vrot.slane %v3682_v38, 4  ;;  %v5232_v25 = vrot.slane %v1219_v16, 9  ;;  %v3700_v8 = vshrl.u32 %v5555_v5, 16  ;;  %v6615_v10 = vld [vmem:[%s6763_s28 + $0x84] sm:$0xff]  }
  0xc8   : > { %v3703_v43 = vshll.u32 %v5555_v5, 16  ;;  %v7590_v20 = vcombine.low %v3640_v21, %v3650_v31  ;;  %v7594_v14 = vsel %vm751_vm0, %v7394_v26, 0  ;;  %v3713_v38 = vshrl.u32 %v7576_v7, 16  ;;  %v6616_v21 = vld [vmem:[%s6763_s28 + $0x90] sm:$0xff]   ;;  %v6672_v18 = vld [vmem:[%s6763_s28 + $0xa0] sm:$0xf] }
  0xc9   : > { %v3693_v16 = vrot.slane %v3692_v39, 4  ;;  %v3697_v5 = vrot.slane %v3695_v55, 5  ;;  %v1340_v54 = vrot.slane %v1338_v6, 4  ;;  %v3664_v31 = vsel %vm6789_vm4, %v3659_v12, %v7516_v37 }
  0xca   : > { %v3674_v26 = vsel %vm6789_vm4, %v3669_v52, %v7568_v50  ;;  %v7609_v39 = vsel %vm7015_vm7, %v5231_v24, %v1331_v30  ;;  %v7613_v55 = vsel %vm7015_vm7, %v1333_v46, %v1334_v61  ;;  %v3688_v37 = vsel %vm6789_vm4, %v3683_v9, %v7543_v35  ;;  %v5561_v30 = vld [vmem:[%s6763_s28 + $0x54] sm:$0xf]  ;;  %v7630_v24 = vld [vmem:[%s6763_s28 + $0x58] sm:$0xf]  ;;  %v7635_v61 = vld [vmem:[%s6763_s28 + $0x90] sm:$0xe] }
  0xcb   : > { %v7626_v12 = vsel %vm7015_vm7, %v5232_v25, %v1338_v6  ;;  %v3702_v50 = vrot.slane %v3700_v8, 4  ;;  %v3705_v52 = vrot.slane %v3703_v43, 5  ;;  %v3715_v46 = vrot.slane %v3713_v38, 4 }
  0xcc   : > { %6226 = vmatmul.mubr.msk.bf16.gmra.mrb[12].mxu0 %vm702_vm3, %v6613_v33  ;;  %v8515_v33 = vcombine.low %v7379_v0, %v7398_v23  ;;  %v6668_v0 = vld [vmem:[%s6763_s28 + $0x8c] sm:$0x1]  ;;  %v3698_v36 = vsel %vm6789_vm4, %v3693_v16, %v3697_v5  ;;  %v3748_v25 = vshrl.u32 %v5561_v30, 16  ;;  %v3751_v8 = vshll.u32 %v5561_v30, 16 }
  0xcd   : > { %6072 = vmatmul.mubr.msk.bf16.gmra.mrb[28].mxu1 %vm702_vm3, %v8514_v62  ;;  %6229 = vmatprep.mubr.msk.bf16.mxu0 %vm702_vm3, %v6614_v48  ;;  %v3709_v48 = vshll.u32 %v7576_v7, 16  ;;  %v1341_v23 = vrot.slane %v6668_v0, 5  ;;  %v5558_v62 = vld [vmem:[%s6763_s28 + $0x48] sm:$0xf]  ;;  %v7619_v0 = vld [vmem:[%s6763_s28 + $0x4c] sm:$0xf]  ;;  %v8517_v38 = vcombine.low %v7383_v29, %v7387_v53  ;;  %v7653_v16 = vcombine.low %v3664_v31, %v3674_v26 }
  0xce   : > { %6077 = vmatprep.mubr.msk.bf16.mxu1 %vm702_vm3, %v8515_v33  ;;  %v7616_v33 = vld [vmem:[%s6763_s28 + $0x44] sm:$0x1]  ;;  %v3724_v27 = vshrl.u32 %v5558_v62, 16  ;;  %v3727_v15 = vshll.u32 %v5558_v62, 16  ;;  %v3733_v6 = vshll.u32 %v7619_v0, 16  ;;  %v3737_v9 = vshrl.u32 %v7619_v0, 16 }
  0xcf   : > { %8516 = vst [vmem:[#allocation8_spill] sm:$0xff] %v7616_v33  ;;  %v7632_v28 = vrot.slane %v3709_v48, 5  ;;  %v7641_v35 = vsel %vm7015_vm7, %v1340_v54, %v1341_v23  ;;  %v3757_v43 = vshll.u32 %v7630_v24, 16  ;;  %v3761_v48 = vshrl.u32 %v7630_v24, 16  ;;  %v5564_v31 = vld [vmem:[%s6763_s28 + $0x60] sm:$0xf] }
  0xd0   : > { %v3719_v5 = vshll.u32 %v7616_v33, 16  ;;  %v5233_v54 = vrot.slane %v7635_v61, 9  ;;  %v8518_v23 = vcombine.low %v7424_v34, %v7440_v4  ;;  %v7664_v29 = vcombine.low %v3688_v37, %v3698_v36  ;;  %v6617_v26 = vld [vmem:[%s6763_s28 + $0x9c] sm:$0xff]   ;;  %v6618_v30 = vld [vmem:[%s6763_s28 + $0xa8] sm:$0xff]  }
  0xd1   : > { %v3706_v53 = vor.u32 %v3705_v52, %v3702_v50  ;;  %v3726_v62 = vrot.slane %v3724_v27, 4  ;;  %v7675_v34 = vrot.slane %v3733_v6, 5  ;;  %v3739_v4 = vrot.slane %v3737_v9, 4  ;;  %v6669_v36 = vld [vmem:[%s8485_s1 + $0x8] sm:$0x3] }
  0xd2   : > { %v3750_v27 = vrot.slane %v3748_v25, 4  ;;  %v3753_v37 = vrot.slane %v3751_v8, 5  ;;  %v7684_v50 = vrot.slane %v3757_v43, 5  ;;  %v3763_v52 = vrot.slane %v3761_v48, 4  ;;  %v6670_v6 = vld [vmem:[%s6763_s28 + $0x94] sm:$0xf] }
  0xd3   : > { %v7690_v9 = vld [vmem:[%s6763_s28 + $0x64] sm:$0xf]  ;;  %v3772_v61 = vshrl.u32 %v5564_v31, 16  ;;  %v7692_v22 = vrot.slane %v3706_v53, 4  ;;  %v1352_v25 = vrot.slane %v6672_v18, 5  ;;  %v3740_v43 = vor.u32 %v3739_v4, %v7675_v34 }
  0xd4   : > { %6230 = vmatmul.mubr.msk.bf16.gmra.mrb[16].mxu0 %vm702_vm3, %v6615_v10  ;;  %8519 = vst [vmem:[#allocation9_spill] sm:$0xff] %v7690_v9  ;;  %v3775_v10 = vshll.u32 %v5564_v31, 16  ;;  %v3754_v31 = vor.u32 %v3753_v37, %v3750_v27  ;;  %v3764_v53 = vor.u32 %v3763_v52, %v7684_v50  ;;  %v8520_v18 = vcombine.low %v7431_v19, %v7444_v58  ;;  %v6619_v37 = vld [vmem:[%s6763_s28 + $0xb4] sm:$0xff]  }
  0xd5   : > { %6078 = vmatmul.mubr.msk.bf16.vlgmr.msra.gmra.mrb[0].mxu1 %vm702_vm3, %v8517_v38  ;;  %6233 = vmatprep.mubr.msk.bf16.mxu0 %vm702_vm3, %v6616_v21  ;;  %v3729_v21 = vrot.slane %v3727_v15, 5  ;;  %v7673_v38 = vld [vmem:[%s6763_s28 + $0x50] sm:$0x1]  ;;  %v7682_v15 = vld [vmem:[%s6763_s28 + $0x5c] sm:$0x1]  ;;  %v8521_v27 = vcombine.low %v7449_v2, %v7453_v1  ;;  %v1354_v52 = vrot.slane %v1352_v25, 4 }
  0xd6   : > { %6110 = vmatpush3.bf16.msra.mxu1 %v7420_v49  ;;  %6081 = vmatprep.mubr.msk.bf16.mxu1 %vm702_vm3, %v8518_v23  ;;  %v3716_v49 = vor.u32 %v3715_v46, %v7632_v28  ;;  %v7686_v46 = vrot.slane %v3719_v5, 5  ;;  %v1345_v23 = vrot.slane %v6670_v6, 5  ;;  %v3743_v48 = vshll.u32 %v7673_v38, 16  ;;  %v1221_v5 = vld [vmem:[%s6763_s28 + $0x9c] sm:$0xe] }
  0xd7   : > { %6576 = vmatprep.subr.msk.bf16.mxu1 %vm751_vm0, %v6669_v36  ;;  %v6671_v36 = vld [vmem:[%s6763_s28 + $0x98] sm:$0x1]  ;;  %v3730_v7 = vor.u32 %v3729_v21, %v3726_v62  ;;  %v3767_v6 = vshll.u32 %v7682_v15, 16  ;;  %v3785_v62 = vshrl.u32 %v7690_v9, 16  ;;  %v3777_v4 = vrot.slane %v3775_v10, 5 }
  0xd8   : > { %v1348_v33 = vrot.slane %v6671_v36, 5  ;;  %v3717_v8 = vrot.slane %v3716_v49, 4  ;;  %v3781_v36 = vshll.u32 %v7690_v9, 16  ;;  %v7711_v21 = vsel %vm7015_vm7, %v5233_v54, %v1345_v23  ;;  %v7722_v2 = vld [vmem:[%s6763_s28 + $0x68] sm:$0x1] }
  0xd9   : > { %v3774_v49 = vrot.slane %v3772_v61, 4  ;;  %v3731_v19 = vrot.slane %v3730_v7, 4  ;;  %v5234_v58 = vrot.slane %v1221_v5, 9  ;;  %v3741_v3 = vrot.slane %v3740_v43, 4  ;;  %8522 = vst [vmem:[#allocation10_spill] sm:$0xff] %v7722_v2  ;;  %v6620_v5 = vld [vmem:[%s6763_s28 + $0xc0] sm:$0xff]  }
  0xda   : > { %v3745_v54 = vrot.slane %v3743_v48, 5  ;;  %v3769_v63 = vrot.slane %v3767_v6, 5  ;;  %v1359_v61 = vrot.slane %v7157_v56, 5  ;;  %v3755_v10 = vrot.slane %v3754_v31, 4  ;;  %v1223_v31 = vld [vmem:[%s6763_s28 + $0xb4] sm:$0xe] }
  0xdb   : > { %v3765_v51 = vrot.slane %v3764_v53, 4  ;;  %v7724_v1 = vrot.slane %v3781_v36, 5  ;;  %v3787_v7 = vrot.slane %v3785_v62, 4  ;;  %v3712_v43 = vsel %vm6789_vm4, %v7692_v22, %v7632_v28  ;;  %v6674_v62 = vld [vmem:[%s6763_s28 + $0xb0] sm:$0x1] }
  0xdc   : > { %6234 = vmatmul.mubr.msk.bf16.gmra.mrb[20].mxu0 %vm702_vm3, %v6617_v26  ;;  %v1347_v26 = vrot.slane %v1345_v23, 4  ;;  %v1222_v23 = vld [vmem:[%s6763_s28 + $0xa8] sm:$0xe]  ;;  %v3722_v48 = vsel %vm6789_vm4, %v3717_v8, %v7686_v46  ;;  %v3778_v6 = vor.u32 %v3777_v4, %v3774_v49  ;;  %v3736_v53 = vsel %vm6789_vm4, %v3731_v19, %v7675_v34  ;;  %v5567_v46 = vld [vmem:[%s6763_s28 + $0x6c] sm:$0xf] }
  0xdd   : > { %6082 = vmatmul.mubr.msk.bf16.gmra.mrb[4].mxu1 %vm702_vm3, %v8520_v18  ;;  %6237 = vmatprep.mubr.msk.bf16.mxu0 %vm702_vm3, %v6618_v30  ;;  %v6673_v18 = vld [vmem:[%s6763_s28 + $0xa4] sm:$0x1]  ;;  %v7744_v36 = vsel %vm7015_vm7, %v5234_v58, %v1352_v25  ;;  %v5235_v28 = vrot.slane %v1222_v23, 9  ;;  %v1361_v8 = vrot.slane %v1359_v61, 4  ;;  %v3791_v49 = vshll.u32 %v7722_v2, 16 }
  0xde   : > { %6085 = vmatprep.mubr.msk.bf16.mxu1 %vm702_vm3, %v8521_v27  ;;  %v1355_v30 = vrot.slane %v6673_v18, 5  ;;  %v7736_v56 = vsel %vm7015_vm7, %v1347_v26, %v1348_v33  ;;  %v3746_v33 = vsel %vm6789_vm4, %v3741_v3, %v3745_v54  ;;  %v1362_v26 = vrot.slane %v6674_v62, 5  ;;  %v5570_v18 = vld [vmem:[%s6763_s28 + $0x78] sm:$0xf]  ;;  %v7799_v54 = vld [vmem:[%s6763_s28 + $0xbc] sm:$0x1] }
  0xdf   : > { %v3760_v34 = vsel %vm6789_vm4, %v3755_v10, %v7684_v50  ;;  %v3770_v25 = vsel %vm6789_vm4, %v3765_v51, %v3769_v63  ;;  %v3788_v4 = vor.u32 %v3787_v7, %v7724_v1  ;;  %v5236_v27 = vrot.slane %v1223_v31, 9  ;;  %v7773_v51 = vld [vmem:[%s6763_s28 + $0x70] sm:$0xf]  ;;  %v7803_v10 = vld [vmem:[%s6763_s28 + $0x7c] sm:$0xf] }
  0xe0   : > { %v7748_v22 = vsel %vm7015_vm7, %v1354_v52, %v1355_v30  ;;  %v8524_v3 = vcombine.low %v7466_v45, %v7470_v59  ;;  %v7769_v19 = vrot.slane %v3778_v6, 4  ;;  %v1366_v50 = vrot.slane %v7181_v42, 5  ;;  %8525 = vst [vmem:[#allocation12_spill] sm:$0xff] %v7773_v51  ;;  %8527 = vst [vmem:[#allocation13_spill] sm:$0xff] %v7803_v10  ;;  %v5573_v7 = vld [vmem:[%s6763_s28 + $0x84] sm:$0xf] }
  0xe1   : > { %8523 = vst [vmem:[#allocation11_spill] sm:$0xff] %v7748_v22  ;;  %v3796_v63 = vshrl.u32 %v5567_v46, 16  ;;  %v8526_v45 = vcombine.low %v7474_v47, %v7501_v41  ;;  %v7781_v58 = vcombine.low %v3736_v53, %v3746_v33  ;;  %v7787_v42 = vsel %vm7015_vm7, %v5235_v28, %v1359_v61  ;;  %v6621_v61 = vld [vmem:[%s6763_s28 + $0xcc] sm:$0xff]   ;;  %v7815_v31 = vld [vmem:[%s6763_s28 + $0x88] sm:$0xf] }
  0xe2   : > { %v7790_v30 = vcombine.low %v3760_v34, %v3770_v25  ;;  %v7794_v47 = vsel %vm7015_vm7, %v1361_v8, %v1362_v26  ;;  %v7796_v41 = vrot.slane %v3791_v49, 5  ;;  %v3805_v6 = vshll.u32 %v7773_v51, 16  ;;  %8528 = vst [vmem:[#allocation14_spill] sm:$0xff] %v7815_v31  ;;  %v5576_v62 = vld [vmem:[%s6763_s28 + $0x90] sm:$0xf] }
  0xe3   : > { %v7821_v28 = vrot.slane %v1366_v50, 4  ;;  %v7823_v33 = vrot.slane %v3796_v63, 4  ;;  %v3809_v8 = vshrl.u32 %v7773_v51, 16  ;;  %v3820_v26 = vshrl.u32 %v5570_v18, 16  ;;  %v7830_v25 = vld [vmem:[%s6763_s28 + $0x94] sm:$0xf] }
  0xe4   : > { %6238 = vmatmul.mubr.msk.bf16.gmra.mrb[24].mxu0 %vm702_vm3, %v6619_v37  ;;  %v7767_v37 = vcombine.low %v3712_v43, %v3722_v48  ;;  %v7811_v43 = vsel %vm7015_vm7, %v5236_v27, %v1366_v50  ;;  %v3799_v48 = vshll.u32 %v5567_v46, 16  ;;  %v3823_v49 = vshll.u32 %v5570_v18, 16  ;;  %8529 = vst [vmem:[#allocation15_spill] sm:$0xff] %v7830_v25  ;;  %v7868_v2 = vld [vmem:[%s6763_s28 + $0x8c] sm:$0x1] }
  0xe5   : > { %6086 = vmatmul.mubr.msk.bf16.gmra.mrb[8].mxu1 %vm702_vm3, %v8524_v3  ;;  %6241 = vmatprep.mubr.msk.bf16.mxu0 %vm702_vm3, %v6620_v5  ;;  %v7807_v5 = vrot.slane %v3788_v4, 4  ;;  %v3829_v46 = vshll.u32 %v7803_v10, 16  ;;  %v3833_v34 = vshrl.u32 %v7803_v10, 16  ;;  %v3844_v4 = vshrl.u32 %v5573_v7, 16 }
  0xe6   : > { %6089 = vmatprep.mubr.msk.bf16.mxu1 %vm702_vm3, %v8526_v45  ;;  %v3847_v27 = vshll.u32 %v5573_v7, 16  ;;  %v3853_v3 = vshll.u32 %v7815_v31, 16  ;;  %v3857_v50 = vshrl.u32 %v7815_v31, 16  ;;  %v7840_v45 = vld [vmem:[%s6763_s28 + $0x74] sm:$0x1]  ;;  %v3801_v18 = vrot.slane %v3799_v48, 5 }
  0xe7   : > { %v3868_v52 = vshrl.u32 %v5576_v62, 16  ;;  %v3871_v53 = vshll.u32 %v5576_v62, 16  ;;  %v8530_v7 = vcombine.low %v7485_v60, %v7510_v44  ;;  %v3811_v59 = vrot.slane %v3809_v8, 4  ;;  %v5579_v48 = vld [vmem:[%s6763_s28 + $0x9c] sm:$0xf] }
  0xe8   : > { %v3877_v63 = vshll.u32 %v7830_v25, 16  ;;  %v3881_v23 = vshrl.u32 %v7830_v25, 16  ;;  %v8531_v62 = vcombine.low %v7525_v17, %v7529_v57  ;;  %v7858_v44 = vld [vmem:[%s6763_s28 + $0x80] sm:$0x1]  ;;  %v3822_v60 = vrot.slane %v3820_v26, 4 }
  0xe9   : > { %8532 = vst [vmem:[#allocation16_spill] sm:$0xff] %v7858_v44  ;;  %v3846_v31 = vrot.slane %v3844_v4, 4  ;;  %v3849_v8 = vrot.slane %v3847_v27, 5  ;;  %v7862_v10 = vrot.slane %v3853_v3, 5  ;;  %v3859_v51 = vrot.slane %v3857_v50, 4 }
  0xea   : > { %v7865_v25 = vld [vmem:[%s6763_s28 + $0xa0] sm:$0xf]  ;;  %v3870_v17 = vrot.slane %v3868_v52, 4  ;;  %v3873_v57 = vrot.slane %v3871_v53, 5  ;;  %v3895_v9 = vshll.u32 %v5579_v48, 16  ;;  %v3802_v26 = vor.u32 %v3801_v18, %v7823_v33 }
  0xeb   : > { %v3839_v27 = vshll.u32 %v7858_v44, 16  ;;  %v7877_v3 = vld [vmem:[%s6763_s28 + $0x98] sm:$0x1]  ;;  %v3901_v50 = vshll.u32 %v7865_v25, 16  ;;  %v3905_v52 = vshrl.u32 %v7865_v25, 16  ;;  %v3850_v22 = vor.u32 %v3849_v8, %v3846_v31 }
  0xec   : > { %6242 = vmatmul.mubr.msk.bf16.gmra.mrb[28].mxu0 %vm702_vm3, %v6621_v61  ;;  %v7848_v61 = vrot.slane %v3805_v6, 5  ;;  %v3835_v6 = vrot.slane %v3833_v34, 4  ;;  %v3883_v34 = vrot.slane %v3881_v23, 4  ;;  %v3863_v33 = vshll.u32 %v7868_v2, 16 }
  0xed   : > { %6090 = vmatmul.mubr.msk.bf16.gmra.mrb[12].mxu1 %vm702_vm3, %v8530_v7  ;;  %6247 = vmatprep.mubr.msk.bf16.mxu0 %vm702_vm3, %v7590_v20  ;;  %v3825_v7 = vrot.slane %v3823_v49, 5  ;;  %v7860_v20 = vrot.slane %v3829_v46, 5  ;;  %v3815_v49 = vshll.u32 %v7840_v45, 16  ;;  %v7872_v46 = vrot.slane %v3877_v63, 5 }
  0xee   : > { %6093 = vmatprep.mubr.msk.bf16.mxu1 %vm702_vm3, %v8531_v62  ;;  %v3892_v62 = vshrl.u32 %v5579_v48, 16  ;;  %v3812_v4 = vor.u32 %v3811_v59, %v7848_v61  ;;  %v3860_v23 = vor.u32 %v3859_v51, %v7862_v10  ;;  %v3874_v59 = vor.u32 %v3873_v57, %v3870_v17  ;;  %v7910_v57 = vld [vmem:[%s6763_s28 + $0xa4] sm:$0x1] }
  0xef   : > { %v3826_v53 = vor.u32 %v3825_v7, %v3822_v60  ;;  %v3836_v48 = vor.u32 %v3835_v6, %v7860_v20  ;;  %v3897_v18 = vrot.slane %v3895_v9, 5  ;;  %v8533_v44 = vcombine.low %v7537_v11, %v7541_v40 }
  0xf0   : > { %v3894_v63 = vrot.slane %v3892_v62, 4  ;;  %v8534_v31 = vrot.slane %v7799_v54, 5  ;;  %v3817_v51 = vrot.slane %v3815_v49, 5  ;;  %v3884_v60 = vor.u32 %v3883_v34, %v7872_v46  ;;  %v7913_v34 = vld [vmem:[%s6763_s28 + $0xac] sm:$0xf] }
  0xf1   : > { %v3887_v9 = vshll.u32 %v7877_v3, 16  ;;  %v8535_v11 = vcombine.low %v7609_v39, %v7613_v55  ;;  %v3803_v40 = vrot.slane %v3802_v26, 4  ;;  %v7906_v54 = vrot.slane %v3901_v50, 5 }
  0xf2   : > { %v3827_v7 = vrot.slane %v3826_v53, 4  ;;  %v3837_v6 = vrot.slane %v3836_v48, 4  ;;  %v3841_v8 = vrot.slane %v3839_v27, 5  ;;  %v3865_v17 = vrot.slane %v3863_v33, 5  ;;  %v7923_v48 = vld [vmem:[%s6763_s28 + $0xb0] sm:$0x1] }
  0xf3   : > { %v3851_v39 = vrot.slane %v3850_v22, 4  ;;  %v3861_v55 = vrot.slane %v3860_v23, 4  ;;  %v3875_v62 = vrot.slane %v3874_v59, 4  ;;  %v3898_v49 = vor.u32 %v3897_v18, %v3894_v63 }
  0xf4   : > { %6248 = vmatmul.mubr.msk.bf16.vlgmr.msra.gmra.mrb[0].mxu0 %vm702_vm3, %v7653_v16  ;;  %v7896_v16 = vsel %vm7015_vm7, %v7821_v28, %v8534_v31  ;;  %v3907_v28 = vrot.slane %v3905_v52, 4  ;;  %v3889_v26 = vrot.slane %v3887_v9, 5  ;;  %v3808_v52 = vsel %vm6789_vm4, %v3803_v40, %v7848_v61 }
  0xf5   : > { %6094 = vmatmul.mubr.msk.bf16.gmra.mrb[16].mxu1 %vm702_vm3, %v8533_v44  ;;  %6280 = vmatpush3.bf16.msra.mxu0 %v7594_v14  ;;  %v3813_v14 = vrot.slane %v3812_v4, 4  ;;  %v5582_v44 = vld [vmem:[%s6763_s28 + $0xa8] sm:$0xf]  ;;  %v3911_v22 = vshll.u32 %v7910_v57, 16  ;;  %v3832_v33 = vsel %vm6789_vm4, %v3827_v7, %v7860_v20  ;;  %v3842_v23 = vsel %vm6789_vm4, %v3837_v6, %v3841_v8 }
  0xf6   : > { %6097 = vmatprep.mubr.msk.bf16.mxu1 %vm702_vm3, %v8535_v11  ;;  %6251 = vmatprep.mubr.msk.bf16.mxu0 %vm702_vm3, %v7664_v29  ;;  %v3885_v29 = vrot.slane %v3884_v60, 4  ;;  %v3916_v4 = vshrl.u32 %v5582_v44, 16  ;;  %v3919_v50 = vshll.u32 %v5582_v44, 16  ;;  %v3908_v53 = vor.u32 %v3907_v28, %v7906_v54  ;;  %v5631_v11 = vld [vmem:[%s6763_s28 + $0x48] sm:$0xe] }
  0xf7   : > { %v3818_v27 = vsel %vm6789_vm4, %v3813_v14, %v3817_v51  ;;  %v3925_v59 = vshll.u32 %v7913_v34, 16  ;;  %v3929_v61 = vshrl.u32 %v7913_v34, 16  ;;  %v3856_v63 = vsel %vm6789_vm4, %v3851_v39, %v7862_v10  ;;  %v7988_v39 = vld [vmem:[%s6763_s28 + $0xb8] sm:$0xf] }
  0xf8   : > { %v3866_v18 = vsel %vm6789_vm4, %v3861_v55, %v3865_v17  ;;  %v3880_v20 = vsel %vm6789_vm4, %v3875_v62, %v7872_v46  ;;  %v3899_v31 = vrot.slane %v3898_v49, 4  ;;  %v8536_v51 = vcombine.low %v7626_v12, %v7641_v35 }
  0xf9   : > { %v3918_v10 = vrot.slane %v3916_v4, 4  ;;  %v3921_v60 = vrot.slane %v3919_v50, 5  ;;  %v3935_v9 = vshll.u32 %v7923_v48, 16  ;;  %v8537_v46 = vcombine.low %v7711_v21, %v7736_v56  ;;  %v5585_v21 = vld [vmem:[%s6763_s28 + $0xb4] sm:$0xf] }
  0xfa   : > { %v5252_v12 = vcombine.low %v7787_v42, %v7794_v47  ;;  %v8538_v35 = vsel %vm6789_vm4, %v7807_v5, %v7796_v41  ;;  %v3909_v14 = vrot.slane %v3908_v53, 4  ;;  %v3913_v28 = vrot.slane %v3911_v22, 5  ;;  %v5633_v4 = vld [vmem:[%s6763_s28 + $0x60] sm:$0xe]  ;;  %v5634_v53 = vld [vmem:[%s6763_s28 + $0x6c] sm:$0xe] }
  0xfb   : > { %v5253_v56 = vcombine.low %v7811_v43, %v7896_v16  ;;  %v7971_v44 = vcombine.low %v3808_v52, %v3818_v27  ;;  %v7973_v42 = vrot.slane %v3925_v59, 5  ;;  %v3931_v47 = vrot.slane %v3929_v61, 4  ;;  %v8547_v16 = vld [vmem:[#allocation4_spill] sm:$0xff] }
  0xfc   : > { %6252 = vmatmul.mubr.msk.bf16.gmra.mrb[4].mxu0 %vm702_vm3, %v7767_v37  ;;  %v3890_v37 = vsel %vm6789_vm4, %v3885_v29, %v3889_v26  ;;  %v7975_v41 = vcombine.low %v3832_v33, %v3842_v23  ;;  %v7977_v5 = vcombine.low %v3856_v63, %v3866_v18  ;;  %v3904_v6 = vsel %vm6789_vm4, %v3899_v31, %v7906_v54  ;;  %v8540_v23 = vld [vmem:[#allocation11_spill] sm:$0xff]  ;;  %v5588_v63 = vld [vmem:[%s6763_s28 + $0xc0] sm:$0xf]  ;;  %v8542_v18 = vld [vmem:[#allocation9_spill] sm:$0xff] }
  0xfd   : > { %6098 = vmatmul.mubr.msk.bf16.gmra.mrb[20].mxu1 %vm702_vm3, %v8536_v51  ;;  %6255 = vmatprep.mubr.msk.bf16.mxu0 %vm702_vm3, %v7781_v58  ;;  %v8539_v58 = vsel %vm6789_vm4, %v7769_v19, %v7724_v1  ;;  %v7979_v7 = vcombine.low %v3880_v20, %v3890_v37  ;;  %v5647_v1 = vrot.slane %v5631_v11, 9  ;;  %v5632_v19 = vld [vmem:[%s6763_s28 + $0x54] sm:$0xe]  ;;  %v3922_v8 = vor.u32 %v3921_v60, %v3918_v10  ;;  %v8543_v31 = vld [vmem:[#allocation10_spill] sm:$0xff] }
  0xfe   : > { %6101 = vmatprep.mubr.msk.bf16.mxu1 %vm702_vm3, %v8537_v46  ;;  %v5601_v40 = vcombine.low %v8539_v58, %v8538_v35  ;;  %v7985_v17 = vrot.slane %v3935_v9, 5  ;;  %v3940_v55 = vshrl.u32 %v5585_v21, 16  ;;  %v3914_v62 = vsel %vm6789_vm4, %v3909_v14, %v3913_v28  ;;  %v8544_v9 = vld [vmem:[#allocation12_spill] sm:$0xff]  ;;  %v8037_v35 = vld [vmem:[%s6763_s28 + $0xbc] sm:$0x1] }
  0xff   : > { %v3943_v49 = vshll.u32 %v5585_v21, 16  ;;  %v4399_v29 = vrot.slane %v7619_v0, 5  ;;  %v4402_v26 = vrot.slane %v7673_v38, 5  ;;  %v3932_v50 = vor.u32 %v3931_v47, %v7973_v42  ;;  %v8040_v58 = vld [vmem:[%s6763_s28 + $0xc4] sm:$0xf] }
 0x100   : > { %v5648_v52 = vrot.slane %v5632_v19, 9  ;;  %v4406_v54 = vrot.slane %v7630_v24, 5  ;;  %v4409_v27 = vrot.slane %v7682_v15, 5  ;;  %v3949_v22 = vshll.u32 %v7988_v39, 16  ;;  %v5635_v19 = vld [vmem:[%s6763_s28 + $0x78] sm:$0xe] }
 0x101   : > { %v3953_v33 = vshrl.u32 %v7988_v39, 16  ;;  %v8005_v0 = vsel %vm7015_vm7, %v5647_v1, %v4399_v29  ;;  %v4401_v38 = vrot.slane %v4399_v29, 4  ;;  %v8541_v59 = vcombine.low %v7744_v36, %v8540_v23  ;;  %v8545_v23 = vld [vmem:[#allocation13_spill] sm:$0xff] }
 0x102   : > { %v8012_v24 = vcombine.low %v3904_v6, %v3914_v62  ;;  %v8016_v15 = vsel %vm7015_vm7, %v5648_v52, %v4406_v54  ;;  %v5649_v61 = vrot.slane %v5633_v4, 9  ;;  %v4413_v20 = vrot.slane %v8542_v18, 5  ;;  %v6622_v6 = vld [vmem:[%s6763_s28 + $0xc] sm:$0xff]  }
 0x103   : > { %v8022_v36 = vsel %vm7015_vm7, %v4401_v38, %v4402_v26  ;;  %v4416_v51 = vrot.slane %v8543_v31, 5  ;;  %v5650_v37 = vrot.slane %v5634_v53, 9  ;;  %v4420_v11 = vrot.slane %v8544_v9, 5 }
 0x104   : > { %6256 = vmatmul.mubr.msk.bf16.gmra.mrb[8].mxu0 %vm702_vm3, %v7790_v30  ;;  %v4408_v30 = vrot.slane %v4406_v54, 4  ;;  %v5664_v10 = vcombine.low %v8005_v0, %v8022_v36  ;;  %v4423_v46 = vrot.slane %v7840_v45, 5  ;;  %v8046_v14 = vsel %vm7015_vm7, %v5649_v61, %v4413_v20 }
 0x105   : > { %6102 = vmatmul.mubr.msk.bf16.gmra.mrb[24].mxu1 %vm702_vm3, %v8541_v59  ;;  %6259 = vmatprep.mubr.msk.bf16.mxu0 %vm702_vm3, %v5601_v40  ;;  %v4415_v28 = vrot.slane %v4413_v20, 4  ;;  %v8048_v21 = vrot.slane %v3940_v55, 4  ;;  %v3964_v47 = vshrl.u32 %v5588_v63, 16  ;;  %v8052_v45 = vsel %vm7015_vm7, %v5650_v37, %v4420_v11  ;;  %v5362_v55 = vld [vmem:[%s6763_s28 + $0x78] sm:$0xf]  ;;  %v8546_v59 = vld [vmem:[#allocation16_spill] sm:$0xff] }
 0x106   : > { %6105 = vmatprep.mubr.msk.bf16.mxu1 %vm702_vm3, %v5252_v12  ;;  %v8030_v60 = vsel %vm7015_vm7, %v4408_v30, %v4409_v27  ;;  %v8034_v12 = vrot.slane %v3922_v8, 4  ;;  %v4422_v1 = vrot.slane %v4420_v11, 4  ;;  %v8056_v8 = vrot.slane %v3932_v50, 4 }
 0x107   : > { %v5665_v40 = vcombine.low %v8016_v15, %v8030_v60  ;;  %v8058_v62 = vrot.slane %v3943_v49, 5  ;;  %v3967_v29 = vshll.u32 %v5588_v63, 16  ;;  %v8062_v26 = vsel %vm7015_vm7, %v4415_v28, %v4416_v51  ;;  %v8549_v28 = vld [vmem:[#allocation14_spill] sm:$0xff] }
 0x108   : > { %v8065_v4 = vrot.slane %v3949_v22, 5  ;;  %v8067_v52 = vrot.slane %v3953_v33, 4  ;;  %v5666_v54 = vcombine.low %v8046_v14, %v8062_v26  ;;  %v8073_v27 = vsel %vm7015_vm7, %v4422_v1, %v4423_v46  ;;  %v5636_v33 = vld [vmem:[%s6763_s28 + $0x84] sm:$0xe]  ;;  %v6623_v1 = vld [vmem:[%s6763_s28 + $0x18] sm:$0xff]  }
 0x109   : > { %v3959_v49 = vshll.u32 %v8037_v35, 16  ;;  %v3973_v50 = vshll.u32 %v8040_v58, 16  ;;  %v5667_v53 = vcombine.low %v8052_v45, %v8073_v27  ;;  %v5651_v22 = vrot.slane %v5635_v19, 9  ;;  %v6685_v60 = vld [vmem:[%s6763_s28 + $0xa0] sm:$0xf] }
 0x10a   : > { %v3966_v38 = vrot.slane %v3964_v47, 4  ;;  %v4430_v30 = vrot.slane %v8546_v59, 5  ;;  %v2289_v61 = vshrl.u32 %v5362_v55, 16  ;;  %v3969_v63 = vrot.slane %v3967_v29, 5  ;;  %v5591_v29 = vld [vmem:[%s6763_s28 + $0xcc] sm:$0xf] }
 0x10b   : > { %v3977_v18 = vshrl.u32 %v8040_v58, 16  ;;  %v2292_v43 = vshll.u32 %v5362_v55, 16  ;;  %v5652_v37 = vrot.slane %v5636_v33, 9  ;;  %v3928_v9 = vsel %vm6789_vm4, %v8034_v12, %v7973_v42  ;;  %v8116_v55 = vld [vmem:[%s6763_s28 + $0xd0] sm:$0xf] }
 0x10c   : > { %6260 = vmatmul.mubr.msk.bf16.gmra.mrb[12].mxu0 %vm702_vm3, %v7971_v44  ;;  %v4427_v44 = vrot.slane %v8545_v23, 5  ;;  %v2291_v51 = vrot.slane %v2289_v61, 4  ;;  %v3946_v11 = vor.u32 %v8058_v62, %v8048_v21  ;;  %v4434_v47 = vrot.slane %v8549_v28, 5  ;;  %v6624_v21 = vld [vmem:[%s6763_s28 + $0x24] sm:$0xff]   ;;  %v6689_v27 = vld [vmem:[%s6763_s28 + $0xac] sm:$0xf] }
 0x10d   : > { %6106 = vmatmul.mubr.msk.bf16.gmra.mrb[28].mxu1 %vm702_vm3, %v5253_v56  ;;  %6263 = vmatprep.mubr.msk.bf16.mxu0 %vm702_vm3, %v7975_v41  ;;  %v8548_v56 = vld [vmem:[#allocation5_spill] sm:$0xff]  ;;  %v2294_v46 = vrot.slane %v2292_v43, 5  ;;  %v3938_v19 = vsel %vm6789_vm4, %v8056_v8, %v7985_v17  ;;  %v4437_v12 = vrot.slane %v7868_v2, 5  ;;  %v8124_v62 = vrot.slane %v3973_v50, 5  ;;  %v5637_v8 = vld [vmem:[%s6763_s28 + $0x90] sm:$0xe] }
 0x10e   : > { %6111 = vmatprep.mubr.msk.bf16.mxu1 %vm702_vm3, %v6622_v6  ;;  %v2311_v41 = vsel %vm6789_vm4, %v8548_v56, %v8547_v16  ;;  %v8098_v20 = vsel %vm7015_vm7, %v5651_v22, %v4427_v44  ;;  %v4429_v31 = vrot.slane %v4427_v44, 4  ;;  %v3956_v6 = vor.u32 %v8067_v52, %v8065_v4  ;;  %v8130_v52 = vld [vmem:[%s6763_s28 + $0xc8] sm:$0x1]  ;;  %v8551_v16 = vld [vmem:[#allocation2_spill] sm:$0xff] }
 0x10f   : > { %v3979_v22 = vrot.slane %v3977_v18, 4  ;;  %v2295_v17 = vor.u32 %v2294_v46, %v2291_v51  ;;  %v3961_v23 = vrot.slane %v3959_v49, 5  ;;  %v3970_v44 = vor.u32 %v3969_v63, %v3966_v38  ;;  %v8552_v51 = vld [vmem:[#allocation3_spill] sm:$0xff] }
 0x110   : > { %v8120_v42 = vsel %vm7015_vm7, %v4429_v31, %v4430_v30  ;;  %v8134_v59 = vsel %vm7015_vm7, %v5652_v37, %v4434_v47  ;;  %v4436_v30 = vrot.slane %v4434_v47, 4  ;;  %v3988_v2 = vshrl.u32 %v5591_v29, 16 }
 0x111   : > { %v5668_v33 = vcombine.low %v8098_v20, %v8120_v42  ;;  %v3991_v50 = vshll.u32 %v5591_v29, 16  ;;  %v3997_v61 = vshll.u32 %v8116_v55, 16  ;;  %v2296_v18 = vrot.slane %v2295_v17, 4  ;;  %v6625_v29 = vld [vmem:[%s6763_s28 + $0x30] sm:$0xff]  }
 0x112   : > { %v4001_v49 = vshrl.u32 %v8116_v55, 16  ;;  %v8145_v38 = vsel %vm7015_vm7, %v4436_v30, %v4437_v12  ;;  %v5653_v63 = vrot.slane %v5637_v8, 9  ;;  %v3980_v56 = vor.u32 %v3979_v22, %v8124_v62 }
 0x113   : > { %v3983_v31 = vshll.u32 %v8130_v52, 16  ;;  %v5669_v37 = vcombine.low %v8134_v59, %v8145_v38  ;;  %v5607_v46 = vcombine.low %v3928_v9, %v3938_v19  ;;  %v3947_v28 = vrot.slane %v3946_v11, 4  ;;  %v5638_v11 = vld [vmem:[%s6763_s28 + $0x9c] sm:$0xe] }
 0x114   : > { %6264 = vmatmul.mubr.msk.bf16.gmra.mrb[16].mxu0 %vm702_vm3, %v7977_v5  ;;  %v8550_v5 = vld [vmem:[#allocation15_spill] sm:$0xff]  ;;  %v3957_v47 = vrot.slane %v3956_v6, 4  ;;  %v3971_v12 = vrot.slane %v3970_v44, 4  ;;  %v4444_v8 = vrot.slane %v7877_v3, 5  ;;  %v3990_v30 = vrot.slane %v3988_v2, 4  ;;  %v6626_v19 = vld [vmem:[%s6763_s28 + $0x3c] sm:$0xff]  }
 0x115   : > { %6112 = vmatmul.mubr.msk.bf16.vlgmr.msra.gmra.mrb[0].mxu1 %vm702_vm3, %v6623_v1  ;;  %6267 = vmatprep.mubr.msk.bf16.mxu0 %vm702_vm3, %v7979_v7  ;;  %v4441_v43 = vrot.slane %v8550_v5, 5  ;;  %v2301_v7 = vsel %vm6789_vm4, %v2296_v18, %v8552_v51  ;;  %v3993_v18 = vrot.slane %v3991_v50, 5  ;;  %v8168_v5 = vrot.slane %v3997_v61, 5 }
 0x116   : > { %6314 = vmatpush3.bf16.msra.mxu1 %v8551_v16  ;;  %6115 = vmatprep.mubr.msk.bf16.mxu1 %vm702_vm3, %v6624_v21  ;;  %v8157_v1 = vcombine.low %v2301_v7, %v2311_v41  ;;  %v8161_v21 = vld [vmem:[%s6763_s28 + $0xd4] sm:$0x1]  ;;  %v4003_v9 = vrot.slane %v4001_v49, 4  ;;  %v3981_v41 = vrot.slane %v3980_v56, 4  ;;  %v3985_v6 = vrot.slane %v3983_v31, 5 }
 0x117   : > { %v8165_v22 = vsel %vm7015_vm7, %v5653_v63, %v4441_v43  ;;  %v4443_v17 = vrot.slane %v4441_v43, 4  ;;  %v3952_v63 = vsel %vm6789_vm4, %v3947_v28, %v8065_v4  ;;  %v3962_v2 = vsel %vm6789_vm4, %v3957_v47, %v3961_v23  ;;  %v6676_v16 = vld [vmem:[%s6763_s28 + $0x1c] sm:$0xf]  ;;  %v5639_v28 = vld [vmem:[%s6763_s28 + $0xa8] sm:$0xe] }
 0x118   : > { %v4007_v50 = vshll.u32 %v8161_v21, 16  ;;  %v5654_v61 = vrot.slane %v5638_v11, 9  ;;  %v4448_v49 = vrot.slane %v7865_v25, 5  ;;  %v3976_v4 = vsel %vm6789_vm4, %v3971_v12, %v8124_v62  ;;  %v5627_v62 = vld [vmem:[%s6763_s28 + $0x18] sm:$0xe]  ;;  %v6627_v47 = vld [vmem:[%s6763_s28 + $0x48] sm:$0xff]  }
 0x119   : > { %v8174_v44 = vsel %vm7015_vm7, %v4443_v17, %v4444_v8  ;;  %v4004_v43 = vor.u32 %v4003_v9, %v8168_v5  ;;  %v4451_v23 = vrot.slane %v7910_v57, 5  ;;  %v3986_v25 = vsel %vm6789_vm4, %v3981_v41, %v3985_v6  ;;  %v6677_v11 = vld [vmem:[%s6763_s28 + $0x20] sm:$0x1] }
 0x11a   : > { %v5670_v3 = vcombine.low %v8165_v22, %v8174_v44  ;;  %v4371_v56 = vrot.slane %v6676_v16, 5  ;;  %v8200_v31 = vsel %vm7015_vm7, %v5654_v61, %v4448_v49  ;;  %v4450_v51 = vrot.slane %v4448_v49, 4  ;;  %v5640_v49 = vld [vmem:[%s6763_s28 + $0xb4] sm:$0xe] }
 0x11b   : > { %v5608_v7 = vcombine.low %v3952_v63, %v3962_v2  ;;  %v4005_v17 = vrot.slane %v4004_v43, 4  ;;  %v5655_v41 = vrot.slane %v5639_v28, 9  ;;  %v4455_v6 = vrot.slane %v7913_v34, 5  ;;  %v5628_v2 = vld [vmem:[%s6763_s28 + $0x24] sm:$0xe] }
 0x11c   : > { %6268 = vmatmul.mubr.msk.bf16.gmra.mrb[20].mxu0 %vm702_vm3, %v8012_v24  ;;  %v3994_v24 = vor.u32 %v3993_v18, %v3990_v30  ;;  %v8205_v57 = vsel %vm7015_vm7, %v4450_v51, %v4451_v23  ;;  %v6628_v30 = vld [vmem:[%s6763_s28 + $0x54] sm:$0xff]   ;;  %v5643_v18 = vrot.slane %v5627_v62, 9  ;;  %v4373_v9 = vrot.slane %v4371_v56, 4  ;;  %v6680_v28 = vld [vmem:[%s6763_s28 + $0x2c] sm:$0x1] }
 0x11d   : > { %6116 = vmatmul.mubr.msk.bf16.gmra.mrb[4].mxu1 %vm702_vm3, %v6625_v29  ;;  %6271 = vmatprep.mubr.msk.bf16.mxu0 %vm702_vm3, %v5607_v46  ;;  %v4009_v46 = vrot.slane %v4007_v50, 5  ;;  %v5609_v29 = vcombine.low %v3976_v4, %v3986_v25  ;;  %v5671_v8 = vcombine.low %v8200_v31, %v8205_v57  ;;  %v4458_v63 = vrot.slane %v7923_v48, 5  ;;  %v6678_v50 = vld [vmem:[%s6763_s28 + $0x28] sm:$0xf]  ;;  %v5629_v25 = vld [vmem:[%s6763_s28 + $0x30] sm:$0xe] }
 0x11e   : > { %6119 = vmatprep.mubr.msk.bf16.mxu1 %vm702_vm3, %v6626_v19  ;;  %v3995_v12 = vrot.slane %v3994_v24, 4  ;;  %v4374_v19 = vrot.slane %v6677_v11, 5  ;;  %v4378_v61 = vrot.slane %v6678_v50, 5  ;;  %v8228_v48 = vsel %vm7015_vm7, %v5655_v41, %v4455_v6  ;;  %v6630_v11 = vld [vmem:[%s6763_s28 + $0x6c] sm:$0xff]   ;;  %v8553_v41 = vld [vmem:[#allocation6_spill] sm:$0xff] }
 0x11f   : > { %v4010_v34 = vsel %vm6789_vm4, %v4005_v17, %v4009_v46  ;;  %v4457_v24 = vrot.slane %v4455_v6, 4  ;;  %v4372_v43 = vsel %vm7015_vm7, %v5643_v18, %v4371_v56  ;;  %v5644_v51 = vrot.slane %v5628_v2, 9  ;;  %v5641_v50 = vld [vmem:[%s6763_s28 + $0xc0] sm:$0xe]  ;;  %v6694_v31 = vld [vmem:[%s6763_s28 + $0xc8] sm:$0x1] }
 0x120   : > { %v4000_v4 = vsel %vm6789_vm4, %v3995_v12, %v8168_v5  ;;  %v4375_v23 = vsel %vm7015_vm7, %v4373_v9, %v4374_v19  ;;  %v6679_v5 = vld [vmem:[%s6763_s28 + $0x34] sm:$0xf]  ;;  %v6629_v12 = vld [vmem:[%s6763_s28 + $0x60] sm:$0xff]   ;;  %v5645_v18 = vrot.slane %v5629_v25, 9  ;;  %v4465_v9 = vrot.slane %v8037_v35, 5 }
 0x121   : > { %v4385_v16 = vrot.slane %v6679_v5, 5  ;;  %v8239_v62 = vsel %vm7015_vm7, %v4457_v24, %v4458_v63  ;;  %v5610_v46 = vcombine.low %v4000_v4, %v4010_v34  ;;  %v5660_v17 = vcombine.low %v4372_v43, %v4375_v23  ;;  %v5630_v24 = vld [vmem:[%s6763_s28 + $0x3c] sm:$0xe] }
 0x122   : > { %v5672_v56 = vcombine.low %v8228_v48, %v8239_v62  ;;  %v4388_v6 = vrot.slane %v8553_v41, 5  ;;  %v4379_v35 = vsel %vm7015_vm7, %v5644_v51, %v4378_v61  ;;  %v5657_v5 = vrot.slane %v5641_v50, 9 }
 0x123   : > { %v4387_v19 = vrot.slane %v4385_v16, 4  ;;  %v4386_v23 = vsel %vm7015_vm7, %v5645_v18, %v4385_v16  ;;  %v4472_v51 = vrot.slane %v8130_v52, 5  ;;  %v2452_v57 = vshll.u32 %v6694_v31, 16 }
 0x124   : > { %6272 = vmatmul.mubr.msk.bf16.gmra.mrb[24].mxu0 %vm702_vm3, %v5608_v7  ;;  %v5656_v7 = vrot.slane %v5640_v49, 9 }
 0x125   : > { %6120 = vmatmul.mubr.msk.bf16.gmra.mrb[8].mxu1 %vm702_vm3, %v6627_v47  ;;  %6275 = vmatprep.mubr.msk.bf16.mxu0 %vm702_vm3, %v5609_v29  ;;  %v4381_v47 = vrot.slane %v6680_v28, 5  ;;  %v4462_v29 = vrot.slane %v7988_v39, 5  ;;  %v8554_v39 = vld [vmem:[#allocation7_spill] sm:$0xff]  ;;  %v4389_v25 = vsel %vm7015_vm7, %v4387_v19, %v4388_v6  ;;  %v5646_v28 = vrot.slane %v5630_v24, 9 }
 0x126   : > { %6123 = vmatprep.mubr.msk.bf16.mxu1 %vm702_vm3, %v6628_v30  ;;  %v4380_v30 = vrot.slane %v4378_v61, 4  ;;  %v4392_v49 = vrot.slane %v8554_v39, 5  ;;  %v4469_v61 = vrot.slane %v8040_v58, 5  ;;  %v6681_v39 = vld [vmem:[%s6763_s28 + $0x70] sm:$0xf]  ;;  %v4476_v24 = vrot.slane %v8116_v55, 5 }
 0x127   : > { %v8251_v63 = vsel %vm7015_vm7, %v5656_v7, %v4462_v29  ;;  %v4464_v2 = vrot.slane %v4462_v29, 4  ;;  %v5359_v7 = vld [vmem:[%s6763_s28 + $0x6c] sm:$0xf]  ;;  %v8555_v29 = vld [vmem:[#allocation8_spill] sm:$0xff] }
 0x128   : > { %v4382_v34 = vsel %vm7015_vm7, %v4380_v30, %v4381_v47  ;;  %v4394_v47 = vrot.slane %v4392_v49, 4  ;;  %v6631_v30 = vld [vmem:[%s6763_s28 + $0x78] sm:$0xff]   ;;  %v8282_v16 = vsel %vm7015_vm7, %v5657_v5, %v4469_v61  ;;  %v4471_v18 = vrot.slane %v4469_v61, 4 }
 0x129   : > { %v8258_v4 = vsel %vm7015_vm7, %v4464_v2, %v4465_v9  ;;  %v5662_v9 = vcombine.low %v4386_v23, %v4389_v25  ;;  %v2265_v19 = vshrl.u32 %v5359_v7, 16  ;;  %v2268_v41 = vshll.u32 %v5359_v7, 16 }
 0x12a   : > { %v5673_v43 = vcombine.low %v8251_v63, %v8258_v4  ;;  %v8287_v58 = vsel %vm7015_vm7, %v4471_v18, %v4472_v51  ;;  %v4393_v6 = vsel %vm7015_vm7, %v5646_v28, %v4392_v49  ;;  %v4479_v49 = vrot.slane %v8161_v21, 5  ;;  %v6633_v51 = vld [vmem:[%s6763_s28 + $0x90] sm:$0xff]   ;;  %v6634_v21 = vld [vmem:[%s6763_s28 + $0x9c] sm:$0xff]  }
 0x12b   : > { %v5674_v50 = vcombine.low %v8282_v16, %v8287_v58  ;;  %v2267_v23 = vrot.slane %v2265_v19, 4  ;;  %v2270_v25 = vrot.slane %v2268_v41, 5  ;;  %v4478_v7 = vrot.slane %v4476_v24, 4 }
 0x12c   : > { %6276 = vmatmul.mubr.msk.bf16.gmra.mrb[28].mxu0 %vm702_vm3, %v5610_v46  ;;  %v5661_v46 = vcombine.low %v4379_v35, %v4382_v34  ;;  %v2274_v35 = vshll.u32 %v6681_v39, 16  ;;  %v2278_v34 = vshrl.u32 %v6681_v39, 16 }
 0x12d   : > { %6124 = vmatmul.mubr.msk.bf16.gmra.mrb[12].mxu1 %vm702_vm3, %v6629_v12  ;;  %6281 = vmatprep.mubr.msk.bf16.mxu0 %vm702_vm3, %v5660_v17  ;;  %v4395_v12 = vrot.slane %v8555_v29, 5  ;;  %v5642_v17 = vld [vmem:[%s6763_s28 + $0xcc] sm:$0xe]  ;;  %v8309_v55 = vsel %vm7015_vm7, %v4478_v7, %v4479_v49 }
 0x12e   : > { %6127 = vmatprep.mubr.msk.bf16.mxu1 %vm702_vm3, %v6630_v11  ;;  %v6632_v11 = vld [vmem:[%s6763_s28 + $0x84] sm:$0xff]   ;;  %v5658_v52 = vrot.slane %v5642_v17, 9  ;;  %v2280_v28 = vrot.slane %v2278_v34, 4  ;;  %v6682_v17 = vld [vmem:[%s6763_s28 + $0x74] sm:$0x1] }
 0x12f   : > { %v4396_v2 = vsel %vm7015_vm7, %v4394_v47, %v4395_v12  ;;  %v5365_v47 = vld [vmem:[%s6763_s28 + $0x84] sm:$0xf]  ;;  %v2271_v12 = vor.u32 %v2270_v25, %v2267_v23  ;;  %v6636_v34 = vld [vmem:[%s6763_s28 + $0xb4] sm:$0xff]  }
 0x130   : > { %v8304_v5 = vsel %vm7015_vm7, %v5658_v52, %v4476_v24  ;;  %v5663_v61 = vcombine.low %v4393_v6, %v4396_v2  ;;  %v2316_v18 = vshll.u32 %v5365_v47, 16  ;;  %v5368_v6 = vld [vmem:[%s6763_s28 + $0x90] sm:$0xf]  ;;  %v6635_v2 = vld [vmem:[%s6763_s28 + $0xa8] sm:$0xff]  }
 0x131   : > { %v5675_v29 = vcombine.low %v8304_v5, %v8309_v55  ;;  %v2272_v52 = vrot.slane %v2271_v12, 4  ;;  %v2337_v23 = vshrl.u32 %v5368_v6, 16  ;;  %v2340_v25 = vshll.u32 %v5368_v6, 16 }
 0x132   : > { %v2370_v12 = vshll.u32 %v6685_v60, 16 }
 0x133   : > { %v2342_v14 = vrot.slane %v2340_v25, 5  ;;  %v6688_v25 = vld [vmem:[%s6763_s28 + $0xa4] sm:$0x1] }
 0x134   : > { %6282 = vmatmul.mubr.msk.bf16.vlgmr.msra.gmra.mrb[0].mxu0 %vm702_vm3, %v5661_v46  ;;  %v2276_v46 = vrot.slane %v2274_v35, 5  ;;  %v5371_v35 = vld [vmem:[%s6763_s28 + $0x9c] sm:$0xf]  ;;  %v8351_v6 = vrot.slane %v2370_v12, 5 }
 0x135   : > { %6128 = vmatmul.mubr.msk.bf16.gmra.mrb[16].mxu1 %vm702_vm3, %v6631_v30  ;;  %6285 = vmatprep.mubr.msk.bf16.mxu0 %vm702_vm3, %v5662_v9  ;;  %v2284_v30 = vshll.u32 %v6682_v17, 16  ;;  %v2313_v9 = vshrl.u32 %v5365_v47, 16  ;;  %v2364_v47 = vshll.u32 %v5371_v35, 16  ;;  %v6686_v17 = vld [vmem:[%s6763_s28 + $0x8c] sm:$0x1] }
 0x136   : > { %6131 = vmatprep.mubr.msk.bf16.mxu1 %vm702_vm3, %v6632_v11  ;;  %v2281_v13 = vor.u32 %v2280_v28, %v2276_v46  ;;  %v6683_v11 = vld [vmem:[%s6763_s28 + $0x88] sm:$0xf]  ;;  %v2277_v7 = vsel %vm6789_vm4, %v2272_v52, %v2276_v46 }
 0x137   : > { %v2322_v19 = vshll.u32 %v6683_v11, 16  ;;  %v2326_v41 = vshrl.u32 %v6683_v11, 16  ;;  %v2286_v0 = vrot.slane %v2284_v30, 5  ;;  %v2315_v36 = vrot.slane %v2313_v9, 4 }
 0x138   : > { %v2282_v39 = vrot.slane %v2281_v13, 4  ;;  %v2332_v30 = vshll.u32 %v6686_v17, 16  ;;  %v2339_v9 = vrot.slane %v2337_v23, 4  ;;  %v2366_v11 = vrot.slane %v2364_v47, 5 }
 0x139   : > { %v8328_v24 = vrot.slane %v2322_v19, 5  ;;  %v2328_v49 = vrot.slane %v2326_v41, 4  ;;  %v6637_v19 = vld [vmem:[%s6763_s28 + $0xc0] sm:$0xff]  }
 0x13a   : > { %v2287_v46 = vsel %vm6789_vm4, %v2282_v39, %v2286_v0  ;;  %v5374_v39 = vld [vmem:[%s6763_s28 + $0xa8] sm:$0xf] }
 0x13b   : > { %v2329_v13 = vor.u32 %v2328_v49, %v8328_v24  ;;  %v5392_v41 = vcombine.low %v2277_v7, %v2287_v46  ;;  %v2380_v7 = vshll.u32 %v6688_v25, 16  ;;  %v2388_v45 = vshll.u32 %v5374_v39, 16 }
 0x13c   : > { %6286 = vmatmul.mubr.msk.bf16.gmra.mrb[4].mxu0 %vm702_vm3, %v5663_v61  ;;  %v6684_v61 = vld [vmem:[%s6763_s28 + $0x94] sm:$0xf] }
 0x13d   : > { %6132 = vmatmul.mubr.msk.bf16.gmra.mrb[20].mxu1 %vm702_vm3, %v6633_v51  ;;  %6289 = vmatprep.mubr.msk.bf16.mxu0 %vm702_vm3, %v5664_v10  ;;  %v2318_v10 = vrot.slane %v2316_v18, 5  ;;  %v2346_v51 = vshll.u32 %v6684_v61, 16  ;;  %v2350_v28 = vshrl.u32 %v6684_v61, 16  ;;  %v2330_v0 = vrot.slane %v2329_v13, 4 }
 0x13e   : > { %6135 = vmatprep.mubr.msk.bf16.mxu1 %vm702_vm3, %v6634_v21  ;;  %v2361_v21 = vshrl.u32 %v5371_v35, 16  ;;  %v6687_v35 = vld [vmem:[%s6763_s28 + $0x98] sm:$0x1]  ;;  %v2385_v61 = vshrl.u32 %v5374_v39, 16  ;;  %v5380_v39 = vld [vmem:[%s6763_s28 + $0xc0] sm:$0xf] }
 0x13f   : > { %v2319_v15 = vor.u32 %v2318_v10, %v2315_v36  ;;  %v8348_v26 = vrot.slane %v2346_v51, 5  ;;  %v2334_v36 = vrot.slane %v2332_v30, 5  ;;  %v2343_v10 = vor.u32 %v2342_v14, %v2339_v9  ;;  %v5377_v51 = vld [vmem:[%s6763_s28 + $0xb4] sm:$0xf] }
 0x140   : > { %v2363_v18 = vrot.slane %v2361_v21, 4  ;;  %v2398_v21 = vshrl.u32 %v6689_v27, 16  ;;  %v2409_v20 = vshrl.u32 %v5377_v51, 16  ;;  %v2412_v42 = vshll.u32 %v5377_v51, 16 }
 0x141   : > { %v2320_v52 = vrot.slane %v2319_v15, 4  ;;  %v2335_v46 = vsel %vm6789_vm4, %v2330_v0, %v2334_v36  ;;  %v2344_v15 = vrot.slane %v2343_v10, 4  ;;  %v2382_v30 = vrot.slane %v2380_v7, 5 }
 0x142   : > { %v2367_v23 = vor.u32 %v2366_v11, %v2363_v18  ;;  %v2387_v9 = vrot.slane %v2385_v61, 4  ;;  %v2400_v11 = vrot.slane %v2398_v21, 4  ;;  %v6693_v61 = vld [vmem:[%s6763_s28 + $0xbc] sm:$0x1] }
 0x143   : > { %v2325_v47 = vsel %vm6789_vm4, %v2320_v52, %v8328_v24  ;;  %v2349_v0 = vsel %vm6789_vm4, %v2344_v15, %v8348_v26  ;;  %v2428_v22 = vshll.u32 %v6693_v61, 16 }
 0x144   : > { %6290 = vmatmul.mubr.msk.bf16.gmra.mrb[8].mxu0 %vm702_vm3, %v5665_v40  ;;  %v2374_v40 = vshrl.u32 %v6685_v60, 16  ;;  %v2368_v17 = vrot.slane %v2367_v23, 4  ;;  %v5394_v24 = vcombine.low %v2325_v47, %v2335_v46 }
 0x145   : > { %6136 = vmatmul.mubr.msk.bf16.gmra.mrb[24].mxu1 %vm702_vm3, %v6635_v2  ;;  %6293 = vmatprep.mubr.msk.bf16.mxu0 %vm702_vm3, %v5666_v54  ;;  %v2352_v54 = vrot.slane %v2350_v28, 4 }
 0x146   : > { %6139 = vmatprep.mubr.msk.bf16.mxu1 %vm702_vm3, %v6636_v34  ;;  %v2376_v2 = vrot.slane %v2374_v40, 4  ;;  %v2356_v34 = vshll.u32 %v6687_v35, 16  ;;  %v2373_v10 = vsel %vm6789_vm4, %v2368_v17, %v8351_v6  ;;  %v2454_v17 = vrot.slane %v2452_v57, 5 }
 0x147   : > { %v2353_v49 = vor.u32 %v2352_v54, %v8348_v26  ;;  %v2390_v54 = vrot.slane %v2388_v45, 5  ;;  %v6691_v26 = vld [vmem:[%s6763_s28 + $0xb0] sm:$0x1] }
 0x148   : > { %v2377_v28 = vor.u32 %v2376_v2, %v8351_v6  ;;  %v2358_v60 = vrot.slane %v2356_v34, 5  ;;  %v2404_v35 = vshll.u32 %v6691_v26, 16  ;;  %v2433_v34 = vshrl.u32 %v5380_v39, 16 }
 0x149   : > { %v2354_v13 = vrot.slane %v2353_v49, 4  ;;  %v2391_v38 = vor.u32 %v2390_v54, %v2387_v9  ;;  %v2436_v6 = vshll.u32 %v5380_v39, 16  ;;  %v6692_v49 = vld [vmem:[%s6763_s28 + $0xc4] sm:$0xf] }
 0x14a   : > { %v2378_v14 = vrot.slane %v2377_v28, 4  ;;  %v2442_v23 = vshll.u32 %v6692_v49, 16  ;;  %v2446_v25 = vshrl.u32 %v6692_v49, 16  ;;  %v2406_v45 = vrot.slane %v2404_v35, 5 }
 0x14b   : > { %v2359_v36 = vsel %vm6789_vm4, %v2354_v13, %v2358_v60  ;;  %v2392_v51 = vrot.slane %v2391_v38, 4  ;;  %v2430_v60 = vrot.slane %v2428_v22, 5 }
 0x14c   : > { %6294 = vmatmul.mubr.msk.bf16.gmra.mrb[12].mxu0 %vm702_vm3, %v5667_v53  ;;  %v2394_v53 = vshll.u32 %v6689_v27, 16  ;;  %v2383_v59 = vsel %vm6789_vm4, %v2378_v14, %v2382_v30  ;;  %v5395_v44 = vcombine.low %v2349_v0, %v2359_v36  ;;  %v2435_v27 = vrot.slane %v2433_v34, 4 }
 0x14d   : > { %6140 = vmatmul.mubr.msk.bf16.gmra.mrb[28].mxu1 %vm702_vm3, %v6637_v19  ;;  %6297 = vmatprep.mubr.msk.bf16.mxu0 %vm702_vm3, %v5668_v33  ;;  %v6690_v33 = vld [vmem:[%s6763_s28 + $0xb8] sm:$0xf]  ;;  %v2411_v19 = vrot.slane %v2409_v20, 4  ;;  %v2444_v21 = vrot.slane %v2442_v23, 5  ;;  %v2448_v47 = vrot.slane %v2446_v25, 4  ;;  %s214_s28 = scalar_lea.vmem %s8488_s4, %s8557_s16 }
 0x14e   : > { %6161 = vmatprep.mubr.msk.bf16.mxu1 %vm702_vm3, %v5392_v41  ;;  %v2418_v12 = vshll.u32 %v6690_v33, 16  ;;  %v2422_v40 = vshrl.u32 %v6690_v33, 16  ;;  %v2396_v18 = vrot.slane %v2394_v53, 5  ;;  %v2414_v41 = vrot.slane %v2412_v42, 5 }
 0x14f   : > { %v2438_v53 = vrot.slane %v2436_v6, 5 }
 0x150   : > { %v2420_v52 = vrot.slane %v2418_v12, 5  ;;  %v2424_v2 = vrot.slane %v2422_v40, 4  ;;  %v2397_v20 = vsel %vm6789_vm4, %v2392_v51, %v2396_v18  ;;  %v2449_v12 = vor.u32 %v2448_v47, %v2444_v21 }
 0x151   : > { %v2439_v33 = vor.u32 %v2438_v53, %v2435_v27 }
 0x152   : > { %v2425_v7 = vor.u32 %v2424_v2, %v2420_v52  ;;  %v2450_v13 = vrot.slane %v2449_v12, 4 }
 0x153   : > { %v2440_v40 = vrot.slane %v2439_v33, 4 }
 0x154   : > { %6298 = vmatmul.mubr.msk.bf16.gmra.mrb[16].mxu0 %vm702_vm3, %v5669_v37  ;;  %v2401_v37 = vor.u32 %v2400_v11, %v2396_v18  ;;  %v2426_v15 = vrot.slane %v2425_v7, 4  ;;  %v2455_v9 = vsel %vm6789_vm4, %v2450_v13, %v2454_v17 }
 0x155   : > { %6162 = vmatmul.mubr.msk.bf16.vlgmr.msra.gmra.mrb[16].mxu1 %vm702_vm3, %v8157_v1  ;;  %6301 = vmatprep.mubr.msk.bf16.mxu0 %vm702_vm3, %v5670_v3  ;;  %v2415_v1 = vor.u32 %v2414_v41, %v2411_v19  ;;  %v5396_v3 = vcombine.low %v2373_v10, %v2383_v59  ;;  %v2445_v30 = vsel %vm6789_vm4, %v2440_v40, %v2444_v21 }
 0x156   : > { %6165 = vmatprep.mubr.msk.bf16.mxu1 %vm702_vm3, %v5394_v24  ;;  %v2402_v28 = vrot.slane %v2401_v37, 4  ;;  %v2431_v48 = vsel %vm6789_vm4, %v2426_v15, %v2430_v60  ;;  %v5399_v14 = vcombine.low %v2445_v30, %v2455_v9 }
 0x157   : > { %v2416_v46 = vrot.slane %v2415_v1, 4 }
 0x158   : > { %v2407_v42 = vsel %vm6789_vm4, %v2402_v28, %v2406_v45 }
 0x159   : > { %v5397_v62 = vcombine.low %v2397_v20, %v2407_v42 }
 0x15c   : > { %6302 = vmatmul.mubr.msk.bf16.gmra.mrb[20].mxu0 %vm702_vm3, %v5671_v8  ;;  %v2421_v8 = vsel %vm6789_vm4, %v2416_v46, %v2420_v52 }
 0x15d   : > { %6166 = vmatmul.mubr.msk.bf16.gmra.mrb[20].mxu1 %vm702_vm3, %v5395_v44  ;;  %6305 = vmatprep.mubr.msk.bf16.mxu0 %vm702_vm3, %v5672_v56  ;;  %v5398_v56 = vcombine.low %v2421_v8, %v2431_v48 }
 0x15e   : > { %6169 = vmatprep.mubr.msk.bf16.mxu1 %vm702_vm3, %v5396_v3 }
 0x164   : > { %6306 = vmatmul.mubr.msk.bf16.gmra.mrb[24].mxu0 %vm702_vm3, %v5673_v43 }
 0x165   : > { %6170 = vmatmul.mubr.msk.bf16.gmra.mrb[24].mxu1 %vm702_vm3, %v5397_v62  ;;  %6309 = vmatprep.mubr.msk.bf16.mxu0 %vm702_vm3, %v5674_v50 }
 0x166   : > { %6173 = vmatprep.mubr.msk.bf16.mxu1 %vm702_vm3, %v5398_v56 }
 0x16c   : > { %6310 = vmatmul.mubr.msk.bf16.gmra.mrb[28].mxu0 %vm702_vm3, %v5675_v29 }
 0x16d   : > { %6174 = vmatmul.mubr.msk.bf16.gmra.mrb[28].mxu1 %vm702_vm3, %v5399_v14 }
 0x1e8   : > { %v6113_v63 = vpop.f32.mrb[0].mxu1 }
 0x1e9   : > { %v1865_v4 = vpop.f32.mrb[1].mxu1 }
 0x1ea   : > { %v6114_v43 = vpop.f32.mrb[2].mxu1 }
 0x1eb   : > { %v1868_v16 = vpop.f32.mrb[3].mxu1 }
 0x1f0   : > { %v6117_v58 = vpop.f32.mrb[4].mxu1 }
 0x1f1   : > { %v1881_v50 = vpop.f32.mrb[5].mxu1 }
 0x1f2   : > { %v6118_v54 = vpop.f32.mrb[6].mxu1 }
 0x1f3   : > { %v1884_v18 = vpop.f32.mrb[7].mxu1 }
 0x1f8   : > { %v6121_v11 = vpop.f32.mrb[8].mxu1 }
 0x1f9   : > { %v1897_v32 = vpop.f32.mrb[9].mxu1 }
 0x1fa   : > { %v6122_v24 = vpop.f32.mrb[10].mxu1 }
 0x1fb   : > { %v1900_v19 = vpop.f32.mrb[11].mxu1 }
 0x200   : > { %v8439_v41 = vpop.f32.mrb[12].mxu1 }
 0x201   : > { %v8441_v5 = vpop.f32.mrb[13].mxu1 }
 0x202   : > { %v8443_v55 = vpop.f32.mrb[14].mxu1 }
 0x203   : > { %v8445_v29 = vpop.f32.mrb[15].mxu1 }
 0x207   : > { %v6283_v52 = vpop.f32.mrb[0].mxu0 }
 0x208   : > { %v6315_v2 = vadd.f32 %v6283_v52, %v6113_v63  ;;  %v4616_v39 = vpop.f32.mrb[1].mxu0 }
 0x209   : > { %v6316_v0 = vadd.f32 %v4616_v39, %v1865_v4  ;;  %v6284_v36 = vpop.f32.mrb[2].mxu0 }
 0x20a   : > { %v6317_v10 = vadd.f32 %v6284_v36, %v6114_v43  ;;  %v4619_v59 = vpop.f32.mrb[3].mxu0  ;;  %v4975_v49 = vmul.f32 %v6315_v2, %v6315_v2 }
 0x20b   : > { %v6318_v38 = vadd.f32 %v4619_v59, %v1868_v16  ;;  %v4973_v26 = vmul.f32 %v6316_v0, %v6316_v0 }
 0x20c   : > { %v5767_v37 = vpack.c.bf16 %v6317_v10, %v6315_v2  ;;  %v4976_v22 = vmul.f32 %v6317_v10, %v6317_v10 }
 0x20d   : > { %v5762_v35 = vpack.c.bf16 %v6318_v38, %v6316_v0  ;;  %v4935_v34 = vadd.f32 %v6318_v38, %v6316_v0  ;;  %v4974_v6 = vmul.f32 %v6318_v38, %v6318_v38 }
 0x20e   : > { %5839 = vst [vmem:[%s8451_s22 + $0x8] sm:$0xff] %v5767_v37  }
 0x20f   : > { %5763 = vst [vmem:[%s8451_s22] sm:$0xff] %v5762_v35   ;;  %v4936_v23 = vadd.f32 %v6315_v2, %v4935_v34  ;;  %v5005_v25 = vadd.f32 %v4974_v6, %v4973_v26  ;;  %v6287_v1 = vpop.f32.mrb[4].mxu0 }
 0x210   : > { %v6319_v7 = vadd.f32 %v6287_v1, %v6117_v58  ;;  %v4632_v61 = vpop.f32.mrb[5].mxu0 }
 0x211   : > { %v5006_v44 = vadd.f32 %v5005_v25, %v4975_v49  ;;  %v6320_v3 = vadd.f32 %v4632_v61, %v1881_v50  ;;  %v4937_v51 = vadd.f32 %v6317_v10, %v4936_v23  ;;  %v6288_v28 = vpop.f32.mrb[6].mxu0 }
 0x212   : > { %v6321_v45 = vadd.f32 %v6288_v28, %v6118_v54  ;;  %v4635_v27 = vpop.f32.mrb[7].mxu0  ;;  %v4979_v12 = vmul.f32 %v6319_v7, %v6319_v7 }
 0x213   : > { %v4938_v53 = vadd.f32 %v6320_v3, %v4937_v51  ;;  %v4977_v21 = vmul.f32 %v6320_v3, %v6320_v3  ;;  %v5007_v47 = vadd.f32 %v5006_v44, %v4976_v22  ;;  %v6322_v46 = vadd.f32 %v4635_v27, %v1884_v18 }
 0x214   : > { %v5777_v15 = vpack.c.bf16 %v6321_v45, %v6319_v7  ;;  %v4980_v56 = vmul.f32 %v6321_v45, %v6321_v45 }
 0x215   : > { %v5008_v60 = vadd.f32 %v5007_v47, %v4977_v21  ;;  %v5772_v20 = vpack.c.bf16 %v6322_v46, %v6320_v3  ;;  %v4939_v42 = vadd.f32 %v6322_v46, %v4938_v53  ;;  %v4978_v33 = vmul.f32 %v6322_v46, %v6322_v46 }
 0x216   : > { %5841 = vst [vmem:[%s8451_s22 + $0x18] sm:$0xff] %v5777_v15  }
 0x217   : > { %5840 = vst [vmem:[%s8451_s22 + $0x10] sm:$0xff] %v5772_v20   ;;  %v4940_v31 = vadd.f32 %v6319_v7, %v4939_v42  ;;  %v5009_v57 = vadd.f32 %v5008_v60, %v4978_v33  ;;  %v6291_v8 = vpop.f32.mrb[8].mxu0 }
 0x218   : > { %v6323_v48 = vadd.f32 %v6291_v8, %v6121_v11  ;;  %v4648_v62 = vpop.f32.mrb[9].mxu0 }
 0x219   : > { %v5010_v40 = vadd.f32 %v5009_v57, %v4979_v12  ;;  %v6324_v13 = vadd.f32 %v4648_v62, %v1897_v32  ;;  %v4941_v17 = vadd.f32 %v6321_v45, %v4940_v31  ;;  %v6292_v30 = vpop.f32.mrb[10].mxu0 }
 0x21a   : > { %v6325_v9 = vadd.f32 %v6292_v30, %v6122_v24  ;;  %v4651_v14 = vpop.f32.mrb[11].mxu0  ;;  %v4983_v11 = vmul.f32 %v6323_v48, %v6323_v48 }
 0x21b   : > { %v4942_v63 = vadd.f32 %v6324_v13, %v4941_v17  ;;  %v4981_v4 = vmul.f32 %v6324_v13, %v6324_v13  ;;  %v5011_v43 = vadd.f32 %v5010_v40, %v4980_v56  ;;  %v6326_v16 = vadd.f32 %v4651_v14, %v1900_v19 }
 0x21c   : > { %v5787_v58 = vpack.c.bf16 %v6325_v9, %v6323_v48  ;;  %v4984_v24 = vmul.f32 %v6325_v9, %v6325_v9 }
 0x21d   : > { %v5012_v50 = vadd.f32 %v5011_v43, %v4981_v4  ;;  %v5782_v54 = vpack.c.bf16 %v6326_v16, %v6324_v13  ;;  %v4943_v18 = vadd.f32 %v6326_v16, %v4942_v63  ;;  %v4982_v52 = vmul.f32 %v6326_v16, %v6326_v16 }
 0x21e   : > { %5843 = vst [vmem:[%s8451_s22 + $0x28] sm:$0xff] %v5787_v58  }
 0x21f   : > { %5842 = vst [vmem:[%s8451_s22 + $0x20] sm:$0xff] %v5782_v54   ;;  %v4944_v2 = vadd.f32 %v6323_v48, %v4943_v18  ;;  %v5013_v39 = vadd.f32 %v5012_v50, %v4982_v52  ;;  %v6295_v32 = vpop.f32.mrb[12].mxu0 }
 0x220   : > { %v6327_v0 = vadd.f32 %v6295_v32, %v8439_v41  ;;  %v4664_v36 = vpop.f32.mrb[13].mxu0 }
 0x221   : > { %v5014_v10 = vadd.f32 %v5013_v39, %v4983_v11  ;;  %v6328_v59 = vadd.f32 %v4664_v36, %v8441_v5  ;;  %v4945_v19 = vadd.f32 %v6325_v9, %v4944_v2  ;;  %v6296_v38 = vpop.f32.mrb[14].mxu0 }
 0x222   : > { %v6329_v37 = vadd.f32 %v6296_v38, %v8443_v55  ;;  %v4667_v26 = vpop.f32.mrb[15].mxu0  ;;  %v4987_v61 = vmul.f32 %v6327_v0, %v6327_v0 }
 0x223   : > { %v4946_v35 = vadd.f32 %v6328_v59, %v4945_v19  ;;  %v4985_v34 = vmul.f32 %v6328_v59, %v6328_v59  ;;  %v5015_v6 = vadd.f32 %v5014_v10, %v4984_v24  ;;  %v6330_v49 = vadd.f32 %v4667_v26, %v8445_v29 }
 0x224   : > { %v5797_v23 = vpack.c.bf16 %v6329_v37, %v6327_v0  ;;  %v4988_v55 = vmul.f32 %v6329_v37, %v6329_v37 }
 0x225   : > { %v5016_v25 = vadd.f32 %v5015_v6, %v4985_v34  ;;  %v5792_v41 = vpack.c.bf16 %v6330_v49, %v6328_v59  ;;  %v4947_v1 = vadd.f32 %v6330_v49, %v4946_v35  ;;  %v4986_v7 = vmul.f32 %v6330_v49, %v6330_v49 }
 0x226   : > { %5845 = vst [vmem:[%s8451_s22 + $0x38] sm:$0xff] %v5797_v23  }
 0x227   : > { %5844 = vst [vmem:[%s8451_s22 + $0x30] sm:$0xff] %v5792_v41   ;;  %v4948_v5 = vadd.f32 %v6327_v0, %v4947_v1  ;;  %v5017_v22 = vadd.f32 %v5016_v25, %v4986_v7  ;;  %v6299_v44 = vpop.f32.mrb[16].mxu0 }
 0x228   : > { %v6163_v3 = vpop.f32.mrb[16].mxu1  ;;  %v4680_v51 = vpop.f32.mrb[17].mxu0 }
 0x229   : > { %v5018_v28 = vadd.f32 %v5017_v22, %v4987_v61  ;;  %v6331_v45 = vadd.f32 %v6299_v44, %v6163_v3  ;;  %v2655_v27 = vpop.f32.mrb[17].mxu1  ;;  %v4949_v53 = vadd.f32 %v6329_v37, %v4948_v5  ;;  %v6300_v29 = vpop.f32.mrb[18].mxu0 }
 0x22a   : > { %v6332_v21 = vadd.f32 %v4680_v51, %v2655_v27  ;;  %v6164_v47 = vpop.f32.mrb[18].mxu1  ;;  %v4683_v46 = vpop.f32.mrb[19].mxu0 }
 0x22b   : > { %v5019_v15 = vadd.f32 %v5018_v28, %v4988_v55  ;;  %v6333_v60 = vadd.f32 %v6300_v29, %v6164_v47  ;;  %v2658_v20 = vpop.f32.mrb[19].mxu1  ;;  %v4991_v40 = vmul.f32 %v6331_v45, %v6331_v45 }
 0x22c   : > { %v4950_v42 = vadd.f32 %v6332_v21, %v4949_v53  ;;  %v4989_v33 = vmul.f32 %v6332_v21, %v6332_v21  ;;  %v6334_v12 = vadd.f32 %v4683_v46, %v2658_v20 }
 0x22d   : > { %v5807_v31 = vpack.c.bf16 %v6333_v60, %v6331_v45  ;;  %v4992_v43 = vmul.f32 %v6333_v60, %v6333_v60 }
 0x22e   : > { %v5020_v57 = vadd.f32 %v5019_v15, %v4989_v33  ;;  %v5802_v8 = vpack.c.bf16 %v6334_v12, %v6332_v21  ;;  %v4951_v48 = vadd.f32 %v6334_v12, %v4950_v42  ;;  %v4990_v62 = vmul.f32 %v6334_v12, %v6334_v12 }
 0x22f   : > { %5847 = vst [vmem:[%s8451_s22 + $0x48] sm:$0xff] %v5807_v31   ;;  %v6303_v56 = vpop.f32.mrb[20].mxu0 }
 0x230   : > { %5846 = vst [vmem:[%s8451_s22 + $0x40] sm:$0xff] %v5802_v8   ;;  %v4952_v13 = vadd.f32 %v6331_v45, %v4951_v48  ;;  %v5021_v17 = vadd.f32 %v5020_v57, %v4990_v62  ;;  %v6167_v30 = vpop.f32.mrb[20].mxu1  ;;  %v4696_v9 = vpop.f32.mrb[21].mxu0 }
 0x231   : > { %v6335_v14 = vadd.f32 %v6303_v56, %v6167_v30  ;;  %v2671_v63 = vpop.f32.mrb[21].mxu1  ;;  %v6304_v4 = vpop.f32.mrb[22].mxu0 }
 0x232   : > { %v5022_v16 = vadd.f32 %v5021_v17, %v4991_v40  ;;  %v6336_v58 = vadd.f32 %v4696_v9, %v2671_v63  ;;  %v4953_v50 = vadd.f32 %v6333_v60, %v4952_v13  ;;  %v6168_v54 = vpop.f32.mrb[22].mxu1  ;;  %v4699_v18 = vpop.f32.mrb[23].mxu0 }
 0x233   : > { %v6337_v52 = vadd.f32 %v6304_v4, %v6168_v54  ;;  %v2674_v11 = vpop.f32.mrb[23].mxu1  ;;  %v4995_v37 = vmul.f32 %v6335_v14, %v6335_v14 }
 0x234   : > { %v4954_v2 = vadd.f32 %v6336_v58, %v4953_v50  ;;  %v4993_v39 = vmul.f32 %v6336_v58, %v6336_v58  ;;  %v5023_v32 = vadd.f32 %v5022_v16, %v4992_v43  ;;  %v6338_v0 = vadd.f32 %v4699_v18, %v2674_v11 }
 0x235   : > { %v5817_v36 = vpack.c.bf16 %v6337_v52, %v6335_v14  ;;  %v4996_v41 = vmul.f32 %v6337_v52, %v6337_v52 }
 0x236   : > { %v5024_v24 = vadd.f32 %v5023_v32, %v4993_v39  ;;  %v5812_v10 = vpack.c.bf16 %v6338_v0, %v6336_v58  ;;  %v4955_v59 = vadd.f32 %v6338_v0, %v4954_v2  ;;  %v4994_v19 = vmul.f32 %v6338_v0, %v6338_v0 }
 0x237   : > { %5849 = vst [vmem:[%s8451_s22 + $0x58] sm:$0xff] %v5817_v36   ;;  %v6307_v38 = vpop.f32.mrb[24].mxu0 }
 0x238   : > { %5848 = vst [vmem:[%s8451_s22 + $0x50] sm:$0xff] %v5812_v10   ;;  %v4956_v26 = vadd.f32 %v6335_v14, %v4955_v59  ;;  %v5025_v35 = vadd.f32 %v5024_v24, %v4994_v19  ;;  %v6171_v34 = vpop.f32.mrb[24].mxu1  ;;  %v4712_v6 = vpop.f32.mrb[25].mxu0 }
 0x239   : > { %v6339_v49 = vadd.f32 %v6307_v38, %v6171_v34  ;;  %v2687_v23 = vpop.f32.mrb[25].mxu1  ;;  %v6308_v25 = vpop.f32.mrb[26].mxu0 }
 0x23a   : > { %v5026_v1 = vadd.f32 %v5025_v35, %v4995_v37  ;;  %v6340_v7 = vadd.f32 %v4712_v6, %v2687_v23  ;;  %v4957_v61 = vadd.f32 %v6337_v52, %v4956_v26  ;;  %v6172_v5 = vpop.f32.mrb[26].mxu1  ;;  %v4715_v22 = vpop.f32.mrb[27].mxu0 }
 0x23b   : > { %v6341_v44 = vadd.f32 %v6308_v25, %v6172_v5  ;;  %v2690_v3 = vpop.f32.mrb[27].mxu1  ;;  %v4999_v15 = vmul.f32 %v6339_v49, %v6339_v49 }
 0x23c   : > { %v4958_v51 = vadd.f32 %v6340_v7, %v4957_v61  ;;  %v4997_v55 = vmul.f32 %v6340_v7, %v6340_v7  ;;  %v5027_v28 = vadd.f32 %v5026_v1, %v4996_v41  ;;  %v6342_v45 = vadd.f32 %v4715_v22, %v2690_v3 }
 0x23d   : > { %v5827_v27 = vpack.c.bf16 %v6341_v44, %v6339_v49  ;;  %v5000_v8 = vmul.f32 %v6341_v44, %v6341_v44 }
 0x23e   : > { %v5028_v53 = vadd.f32 %v5027_v28, %v4997_v55  ;;  %v5822_v29 = vpack.c.bf16 %v6342_v45, %v6340_v7  ;;  %v4959_v21 = vadd.f32 %v6342_v45, %v4958_v51  ;;  %v4998_v47 = vmul.f32 %v6342_v45, %v6342_v45 }
 0x23f   : > { %5851 = vst [vmem:[%s8451_s22 + $0x68] sm:$0xff] %v5827_v27   ;;  %v6311_v46 = vpop.f32.mrb[28].mxu0 }
 0x240   : > { %5850 = vst [vmem:[%s8451_s22 + $0x60] sm:$0xff] %v5822_v29   ;;  %v4960_v60 = vadd.f32 %v6339_v49, %v4959_v21  ;;  %v5029_v20 = vadd.f32 %v5028_v53, %v4998_v47  ;;  %v6175_v42 = vpop.f32.mrb[28].mxu1  ;;  %v4728_v33 = vpop.f32.mrb[29].mxu0 }
 0x241   : > { %v6343_v12 = vadd.f32 %v6311_v46, %v6175_v42  ;;  %v2703_v31 = vpop.f32.mrb[29].mxu1  ;;  %v6312_v57 = vpop.f32.mrb[30].mxu0 }
 0x242   : > { %v5030_v48 = vadd.f32 %v5029_v20, %v4999_v15  ;;  %v6344_v62 = vadd.f32 %v4728_v33, %v2703_v31  ;;  %v4961_v56 = vadd.f32 %v6341_v44, %v4960_v60  ;;  %v6176_v40 = vpop.f32.mrb[30].mxu1  ;;  %v4731_v13 = vpop.f32.mrb[31].mxu0 }
 0x243   : > { %v6345_v17 = vadd.f32 %v6312_v57, %v6176_v40  ;;  %v2706_v30 = vpop.f32.mrb[31].mxu1  ;;  %v5003_v18 = vmul.f32 %v6343_v12, %v6343_v12 }
 0x244   : > { %v4962_v9 = vadd.f32 %v6344_v62, %v4961_v56  ;;  %v5001_v14 = vmul.f32 %v6344_v62, %v6344_v62  ;;  %v5031_v63 = vadd.f32 %v5030_v48, %v5000_v8  ;;  %v6346_v4 = vadd.f32 %v4731_v13, %v2706_v30 }
 0x245   : > { %v5837_v43 = vpack.c.bf16 %v6345_v17, %v6343_v12  ;;  %v5004_v2 = vmul.f32 %v6345_v17, %v6345_v17 }
 0x246   : > { %v5032_v16 = vadd.f32 %v5031_v63, %v5001_v14  ;;  %v5832_v58 = vpack.c.bf16 %v6346_v4, %v6344_v62  ;;  %v4963_v50 = vadd.f32 %v6346_v4, %v4962_v9  ;;  %v5002_v54 = vmul.f32 %v6346_v4, %v6346_v4 }
 0x247   : > { %5853 = vst [vmem:[%s8451_s22 + $0x78] sm:$0xff] %v5837_v43  }
 0x248   : > { %5852 = vst [vmem:[%s8451_s22 + $0x70] sm:$0xff] %v5832_v58   ;;  %v4964_v52 = vadd.f32 %v6343_v12, %v4963_v50  ;;  %v5033_v11 = vadd.f32 %v5032_v16, %v5002_v54 }
 0x24a   : > { %v4965_v39 = vadd.f32 %v6345_v17, %v4964_v52  ;;  %v5034_v32 = vadd.f32 %v5033_v11, %v5003_v18 }
 0x24c   : > { %v4966_v0 = vrot.slane %v4965_v39, 4  ;;  %v5035_v36 = vadd.f32 %v5034_v32, %v5004_v2 }
 0x24e   : > { %v4967_v24 = vadd.f32 %v4966_v0, %v4965_v39  ;;  %v5036_v10 = vrot.slane %v5035_v36, 4 }
 0x250   : > { %v4968_v59 = vrot.slane %v4967_v24, 2  ;;  %v5037_v19 = vadd.f32 %v5036_v10, %v5035_v36 }
 0x252   : > { %v4969_v38 = vadd.f32 %v4968_v59, %v4967_v24  ;;  %v5038_v37 = vrot.slane %v5037_v19, 2 }
 0x254   : > { %v4970_v26 = vrot.slane %v4969_v38, 1  ;;  %v5039_v35 = vadd.f32 %v5038_v37, %v5037_v19 }
 0x256   : > { %v4971_v34 = vadd.f32 %v4970_v26, %v4969_v38  ;;  %v5040_v6 = vrot.slane %v5039_v35, 1 }
 0x258   : > { %4972 = vst [vmem:[%s211_s25] sm:$0x1] %v4971_v34  ;;  %v5041_v49 = vadd.f32 %v5040_v6, %v5039_v35 }
 0x25a   : > { %5042 = vst [vmem:[%s214_s28] sm:$0x1] %v5041_v49 }
 0x25b PF: > { %s15_s15 = sadd.s32 1, %s6701_s15  }
 0x25c   : > { %p12_p4 = scmp.ge.s32.totalorder %s15_s15, 4  }
 0x25e   :  { %14 = sbr.rel (!%p12_p4) target bundleno = 1 (0x1), region = 92 }

</bundles_post_ra>
